<compile_context>
chip_gen: v7x
topology: tpu7x:2x2x1
jax: 0.10.0
libtpu: 0.0.40
codegen_flags: <defaults>
</compile_context>

<pallas_src>
import functools

import jax
import jax.numpy as jnp
from jax.experimental import pallas as pl
from jax.experimental.pallas import tpu as pltpu


def _ising_flow_kernel(state_ref, w1_ref, b1_ref, w2_ref, b2_ref, o_ref, *,
                       half, exp_in_bf16):
    """One (TB, D) batch tile: Linear -> LeakyReLU -> Linear -> exp -> mask, fused in VMEM."""
    xs = state_ref[...]                                          # (TB, D) f32

    # ---- mask factor: keep = 1 - (s1 + s2), straight off the f32 load (no casts) ----
    keep = 1.0 - (xs[:, :half] + xs[:, half:])                   # (TB, half) f32

    # ---- MLP: bf16 MXU operands, f32 accumulation ----
    # Spins are {0,1} so the f32->bf16 cast is exact; it is a VPU op hidden under the matmul.
    x = xs.astype(jnp.bfloat16)
    h = jnp.dot(x, w1_ref[...], preferred_element_type=jnp.float32) + b1_ref[...]
    h = jnp.maximum(h, 0.01 * h)                                  # LeakyReLU(0.01), VPU
    y = (jnp.dot(h.astype(jnp.bfloat16), w2_ref[...],
                 preferred_element_type=jnp.float32) + b2_ref[...])

    # exp on the EUP; bf16 roughly doubles EUP throughput on v6e/v7x (kept f32 on v5e).
    if exp_in_bf16:
        ey = jnp.exp(y.astype(jnp.bfloat16)).astype(jnp.float32)
    else:
        ey = jnp.exp(y)

    # Two lane-dense stores (for N with N^2 % 128 == 0, e.g. N=16, both halves are
    # fully lane-aligned -> unmasked vst). Smaller N remains correct (masked stores).
    o_ref[:, :half] = (ey[:, :half] * keep).astype(o_ref.dtype)
    o_ref[:, half:] = (ey[:, half:] * keep).astype(o_ref.dtype)


def prepare_params(w1, b1, w2, b2):
    """One-time weight prep: bf16 matmul operands + 2-D f32 biases.

    Do this once (at init / before the sampling loop) so each forward call does not
    re-read the f32 weights from HBM just to cast them.
    """
    w1_bf = jnp.asarray(w1, jnp.float32).astype(jnp.bfloat16)     # [D, H]
    w2_bf = jnp.asarray(w2, jnp.float32).astype(jnp.bfloat16)     # [H, D]
    b1_2d = jnp.asarray(b1, jnp.float32).reshape(1, -1)           # [1, H]
    b2_2d = jnp.asarray(b2, jnp.float32).reshape(1, -1)           # [1, D]
    return w1_bf, b1_2d, w2_bf, b2_2d


def _pick_batch_tile(B, block_b):
    """Tile rows: multiple of 8, <= block_b, <= B//2 (>=2 tiles for v7x megacore when
    possible), and dividing B when possible (avoids the jnp.pad HBM copy)."""
    cap = min(block_b, max(8, B // 2))
    cap = max(8, (cap // 8) * 8)
    for cand in range(cap, 7, -8):
        if B % cand == 0:
            return cand
    return cap  # no multiple-of-8 divisor <= cap; fall back to padding


def _exp_in_bf16_default():
    """bf16 exp only on chips whose EUP supports bf16 (v6e / v7x)."""
    try:
        kind = jax.devices()[0].device_kind.lower()
    except Exception:
        return False
    return ("v6" in kind) or ("v7" in kind)


def ising_flow_forward(state, params, *, N, block_b=1024, out_dtype=jnp.float32,
                       exp_in_bf16=None):
    """state: [B, 2*N^2] f32 (spins in {0,1}); params from prepare_params()."""
    w1_bf, b1_2d, w2_bf, b2_2d = params
    B, D = state.shape
    assert D == 2 * N * N, "state feature dim must be 2*N^2"
    H = w1_bf.shape[1]
    half = D // 2
    if exp_in_bf16 is None:
        exp_in_bf16 = _exp_in_bf16_default()

    # NOTE: for general N with N^2 % 128 != 0 the half-slices fall back to masked
    # stores; pad each half to a multiple of 128 on the host for peak store bandwidth.

    TB = _pick_batch_tile(B, block_b)
    grid_b = pl.cdiv(B, TB)
    Bp = grid_b * TB
    state = jnp.asarray(state, jnp.float32)
    if Bp != B:  # only when no multiple-of-8 divisor of B fits -> rare
        state = jnp.pad(state, ((0, Bp - B), (0, 0)))

    kernel = functools.partial(_ising_flow_kernel, half=half, exp_in_bf16=exp_in_bf16)

    out = pl.pallas_call(
        kernel,
        out_shape=jax.ShapeDtypeStruct((Bp, D), out_dtype),
        grid=(grid_b,),
        in_specs=[
            # state: one (TB, D) f32 tile per grid step -> automatic double-buffered DMA.
            pl.BlockSpec((TB, D), lambda i: (i, 0)),
            # weights / biases: constant index_map -> DMA'd once, VMEM-resident across steps.
            pl.BlockSpec((D, H), lambda i: (0, 0)),
            pl.BlockSpec((1, H), lambda i: (0, 0)),
            pl.BlockSpec((H, D), lambda i: (0, 0)),
            pl.BlockSpec((1, D), lambda i: (0, 0)),
        ],
        out_specs=pl.BlockSpec((TB, D), lambda i: (i, 0)),
        compiler_params=pltpu.CompilerParams(
            # Batch axis is embarrassingly parallel -> shards across the two
            # TensorCores on v7x; harmless on single-TC v5e/v6e.
            dimension_semantics=("parallel",),
            # Above v5e's 16 MiB default scoped limit, comfortably inside v6e's
            # 128 MiB and v7x's 64 MiB physical VMEM even at TB=1024.
            vmem_limit_bytes=32 * 1024 * 1024,
        ),
    )(state, w1_bf, b1_2d, w2_bf, b2_2d)

    return out if Bp == B else out[:B]


def init_params(key, N, n_hidden):
    """torch.nn.Linear default init: U[-1/sqrt(fan_in), 1/sqrt(fan_in)] (weights stored [in, out])."""
    D = 2 * N * N
    k1, k2, k3, k4 = jax.random.split(key, 4)
    lim1 = 1.0 / jnp.sqrt(jnp.float32(D))
    lim2 = 1.0 / jnp.sqrt(jnp.float32(n_hidden))
    w1 = jax.random.uniform(k1, (D, n_hidden), jnp.float32, -lim1, lim1)
    b1 = jax.random.uniform(k2, (n_hidden,), jnp.float32, -lim1, lim1)
    w2 = jax.random.uniform(k3, (n_hidden, D), jnp.float32, -lim2, lim2)
    b2 = jax.random.uniform(k4, (D,), jnp.float32, -lim2, lim2)
    return w1, b1, w2, b2


def reference_forward(state, w1, b1, w2, b2, N, exp_in_bf16):
    """Pure-JAX reference mirroring the PyTorch module at the kernel's precision
    (bf16 MXU operands, f32 accumulation, same exp dtype) -> self-consistency check."""
    half = N * N
    x = state.astype(jnp.bfloat16)
    h = jnp.dot(x, w1.astype(jnp.bfloat16),
                preferred_element_type=jnp.float32) + b1.reshape(1, -1)
    h = jnp.where(h > 0, h, 0.01 * h)
    y = jnp.dot(h.astype(jnp.bfloat16), w2.astype(jnp.bfloat16),
                preferred_element_type=jnp.float32) + b2.reshape(1, -1)
    ey = jnp.exp(y.astype(jnp.bfloat16)).astype(jnp.float32) if exp_in_bf16 else jnp.exp(y)
    mask = jnp.concatenate([state[:, :half] + state[:, half:]] * 2, axis=-1)
    return ey * (1.0 - mask)


if __name__ == "__main__":
    # N=16 -> D = 2*N^2 = 512 (lane-dense, 4x128), module-default hidden = 256.
    N = 16
    n_hidden = 256
    batch = 512           # _pick_batch_tile -> TB=256, grid of 2 tiles (feeds both v7x TCs)

    key = jax.random.PRNGKey(0)
    k_state, k_params = jax.random.split(key)

    D = 2 * N * N
    # Ising-style binary state in {0,1}, float32.
    state = jax.random.bernoulli(k_state, 0.5, (batch, D)).astype(jnp.float32)
    w1, b1, w2, b2 = init_params(k_params, N, n_hidden)
    params = prepare_params(w1, b1, w2, b2)   # one-time bf16/bias prep

    exp_in_bf16 = _exp_in_bf16_default()
    out = ising_flow_forward(state, params, N=N, exp_in_bf16=exp_in_bf16)
    out = jax.block_until_ready(out)

    ref = reference_forward(state, w1, b1, w2, b2, N, exp_in_bf16)
    assert out.shape == (batch, D) and out.dtype == jnp.float32
    max_err = float(jnp.max(jnp.abs(out - ref)))
    assert jnp.allclose(out, ref, rtol=2e-2, atol=2e-2), \
        f"mismatch vs reference (max abs err {max_err})"

    print("KERNEL_OK")
</pallas_src>

<mosaic_0001>
module attributes {stable_mosaic.version = 11 : i64} {
  func.func @_ising_flow_kernel(%arg0: i32, %arg1: memref<256x512xf32, #tpu.memory_space<vmem>>, %arg2: memref<512x256xbf16, #tpu.memory_space<vmem>>, %arg3: memref<1x256xf32, #tpu.memory_space<vmem>>, %arg4: memref<256x512xbf16, #tpu.memory_space<vmem>>, %arg5: memref<1x512xf32, #tpu.memory_space<vmem>>, %arg6: memref<256x512xf32, #tpu.memory_space<vmem>>) attributes {dimension_semantics = [#tpu.dimension_semantics<parallel>], iteration_bounds = array<i64: 2>, scalar_prefetch = 0 : i64, scratch_operands = 0 : i64, tpu.core_type = #tpu.core_type<tc>, window_params = [{transform_indices = @transform_0, window_bounds = array<i64: 256, 512>}, {pipeline_mode = #tpu.pipeline_mode<synchronous>, transform_indices = @transform_1, window_bounds = array<i64: 512, 256>}, {pipeline_mode = #tpu.pipeline_mode<synchronous>, transform_indices = @transform_2, window_bounds = array<i64: 1, 256>}, {pipeline_mode = #tpu.pipeline_mode<synchronous>, transform_indices = @transform_3, window_bounds = array<i64: 256, 512>}, {pipeline_mode = #tpu.pipeline_mode<synchronous>, transform_indices = @transform_4, window_bounds = array<i64: 1, 512>}, {transform_indices = @transform_5, window_bounds = array<i64: 256, 512>}]} {
    %c0 = arith.constant 0 : index
    %c0_0 = arith.constant 0 : index
    %0 = vector.load %arg1[%c0, %c0_0] : memref<256x512xf32, #tpu.memory_space<vmem>>, vector<256x512xf32>
    %1 = vector.extract_strided_slice %0 {offsets = [0, 0], sizes = [256, 256], strides = [1, 1]} : vector<256x512xf32> to vector<256x256xf32>
    %2 = vector.extract_strided_slice %0 {offsets = [0, 256], sizes = [256, 256], strides = [1, 1]} : vector<256x512xf32> to vector<256x256xf32>
    %3 = arith.addf %1, %2 : vector<256x256xf32>
    %cst = arith.constant 1.000000e+00 : f32
    %4 = vector.broadcast %cst : f32 to vector<256x256xf32>
    %5 = arith.subf %4, %3 : vector<256x256xf32>
    %6 = arith.truncf %0 : vector<256x512xf32> to vector<256x512xbf16>
    %c0_1 = arith.constant 0 : index
    %c0_2 = arith.constant 0 : index
    %7 = vector.load %arg2[%c0_1, %c0_2] : memref<512x256xbf16, #tpu.memory_space<vmem>>, vector<512x256xbf16>
    %cst_3 = arith.constant dense<0.000000e+00> : vector<256x256xf32>
    %8 = tpu.matmul %6, %7, %cst_3 {dimension_numbers = #tpu.dot_dimension_numbers<[1], [0], [0], [1], [0, 0, 1, 1], [], []>} : vector<256x512xbf16>, vector<512x256xbf16>, vector<256x256xf32> -> vector<256x256xf32>
    %c0_4 = arith.constant 0 : index
    %c0_5 = arith.constant 0 : index
    %9 = vector.load %arg3[%c0_4, %c0_5] : memref<1x256xf32, #tpu.memory_space<vmem>>, vector<1x256xf32>
    %10 = vector.broadcast %9 : vector<1x256xf32> to vector<256x256xf32>
    %11 = arith.addf %8, %10 : vector<256x256xf32>
    %cst_6 = arith.constant 0.00999999977 : f32
    %12 = vector.broadcast %cst_6 : f32 to vector<256x256xf32>
    %13 = arith.mulf %12, %11 : vector<256x256xf32>
    %14 = arith.maximumf %11, %13 : vector<256x256xf32>
    %15 = arith.truncf %14 : vector<256x256xf32> to vector<256x256xbf16>
    %c0_7 = arith.constant 0 : index
    %c0_8 = arith.constant 0 : index
    %16 = vector.load %arg4[%c0_7, %c0_8] : memref<256x512xbf16, #tpu.memory_space<vmem>>, vector<256x512xbf16>
    %cst_9 = arith.constant dense<0.000000e+00> : vector<256x512xf32>
    %17 = tpu.matmul %15, %16, %cst_9 {dimension_numbers = #tpu.dot_dimension_numbers<[1], [0], [0], [1], [0, 0, 1, 1], [], []>} : vector<256x256xbf16>, vector<256x512xbf16>, vector<256x512xf32> -> vector<256x512xf32>
    %c0_10 = arith.constant 0 : index
    %c0_11 = arith.constant 0 : index
    %18 = vector.load %arg5[%c0_10, %c0_11] : memref<1x512xf32, #tpu.memory_space<vmem>>, vector<1x512xf32>
    %19 = vector.broadcast %18 : vector<1x512xf32> to vector<256x512xf32>
    %20 = arith.addf %17, %19 : vector<256x512xf32>
    %21 = math.exp %20 : vector<256x512xf32>
    %22 = vector.extract_strided_slice %21 {offsets = [0, 0], sizes = [256, 256], strides = [1, 1]} : vector<256x512xf32> to vector<256x256xf32>
    %23 = arith.mulf %22, %5 : vector<256x256xf32>
    %c0_12 = arith.constant 0 : index
    %c0_13 = arith.constant 0 : index
    %24 = vector.load %arg6[%c0_12, %c0_13] : memref<256x512xf32, #tpu.memory_space<vmem>>, vector<256x256xf32>
    tpu.vector_store %arg6[%c0_12, %c0_13], %23 {strides = array<i32>} : memref<256x512xf32, #tpu.memory_space<vmem>>, vector<256x256xf32>,
    %25 = vector.extract_strided_slice %21 {offsets = [0, 256], sizes = [256, 256], strides = [1, 1]} : vector<256x512xf32> to vector<256x256xf32>
    %26 = arith.mulf %25, %5 : vector<256x256xf32>
    %c0_14 = arith.constant 0 : index
    %c256 = arith.constant 256 : index
    %27 = vector.load %arg6[%c0_14, %c256] : memref<256x512xf32, #tpu.memory_space<vmem>>, vector<256x256xf32>
    tpu.vector_store %arg6[%c0_14, %c256], %26 {strides = array<i32>} : memref<256x512xf32, #tpu.memory_space<vmem>>, vector<256x256xf32>,
    return
  }
  func.func @transform_0(%arg0: i32) -> (i32, i32) {
    %c0_i32 = arith.constant 0 : i32
    %c0_i32_0 = arith.constant 0 : i32
    return %arg0, %c0_i32 : i32, i32
  }
  func.func @transform_1(%arg0: i32) -> (i32, i32) {
    %c0_i32 = arith.constant 0 : i32
    %c0_i32_0 = arith.constant 0 : i32
    %c0_i32_1 = arith.constant 0 : i32
    return %c0_i32, %c0_i32_0 : i32, i32
  }
  func.func @transform_2(%arg0: i32) -> (i32, i32) {
    %c0_i32 = arith.constant 0 : i32
    %c0_i32_0 = arith.constant 0 : i32
    %c0_i32_1 = arith.constant 0 : i32
    return %c0_i32, %c0_i32_0 : i32, i32
  }
  func.func @transform_3(%arg0: i32) -> (i32, i32) {
    %c0_i32 = arith.constant 0 : i32
    %c0_i32_0 = arith.constant 0 : i32
    %c0_i32_1 = arith.constant 0 : i32
    return %c0_i32, %c0_i32_0 : i32, i32
  }
  func.func @transform_4(%arg0: i32) -> (i32, i32) {
    %c0_i32 = arith.constant 0 : i32
    %c0_i32_0 = arith.constant 0 : i32
    %c0_i32_1 = arith.constant 0 : i32
    return %c0_i32, %c0_i32_0 : i32, i32
  }
  func.func @transform_5(%arg0: i32) -> (i32, i32) {
    %c0_i32 = arith.constant 0 : i32
    %c0_i32_0 = arith.constant 0 : i32
    return %arg0, %c0_i32 : i32, i32
  }
}

</mosaic_0001>

<bundles_post_ra>
// kernel: tpu_custom_call.1
= control target key start
LH: loop header
LB: loop body
LE: loop exit
PB: predicated region body
PF: predicated region fallthrough
CT: control target
= control target key end

     0   :  { %10 = vsyncpa [#allocation3], 0  ;;  %s5510_s0 = inlined_call_operand.hbm [shape: f32[512,512], index: 0, kind: input, shape index: {}]   ;;  %s5511_s1 = inlined_call_operand.hbm [shape: bf16[512,256], index: 1, kind: input, shape index: {}]   ;;  %s5512_s2 = inlined_call_operand.vmem [shape: f32[1,256], index: 2, kind: input, shape index: {}]   ;;  %s5513_s3 = inlined_call_operand.hbm [shape: bf16[256,512], index: 3, kind: input, shape index: {}]   ;;  %s5514_s4 = inlined_call_operand.vmem [shape: f32[1,512], index: 4, kind: input, shape index: {}]   ;;  %s5515_s5 = inlined_call_operand.hbm [shape: f32[512,512], index: 5, kind: output, shape index: {}]  }
   0x1   :  { %12 = vsyncpa [#allocation3 + $0x1], 0 }
   0x2   :  { %13 = vsyncpa [#allocation6], 0 }
   0x3   :  { %14 = vsyncpa [#allocation4], 0 }
   0x4   :  { %16 = vsyncpa [#allocation4 + $0x1], 0  ;;  %s4032_s18 = smov 0   ;;  %s4034_s19 = smov 0  }
   0x5   :  { %s4036_s20 = smov 0   ;;  %s4038_s21 = smov 0  }
   0x6 LB: > { %s4053_s22 = sadd.s32 4294967295, %s3988_s21   ;;  %s2948_s23 = sadd.s32 4294967294, %s3988_s21   ;;  %s3988_s21 = sphi %s4038_s21, %s5762_s21   ;;  %s3984_s20 = sphi %s4036_s20, %s5761_s20   ;;  %s3980_s19 = sphi %s4034_s19, %s5760_s19   ;;  %s3976_s18 = sphi %s4032_s18, %s5759_s18  }
   0x7   : > { %p42_p0 = scmp.ne.s32.totalorder %s3980_s19, %s3976_s18  ;;  %p5516_p1 = scmp.eq.s32.totalorder %s4053_s22, 0 }
   0x8   : > { %p156_p3 = scmp.eq.s32.totalorder %s2948_s23, 1  ;;  %p2949_p5 = scmp.ge.s32.totalorder %s3988_s21, 1 }
   0x9   : > { %p4062_p4 = por %p5516_p1, %p42_p0  ;;  %p163_p7 = scmp.lt.s32.totalorder %s3988_s21, 3 }
   0xa   : > { %p4067_p6 = por %p156_p3, %p42_p0  ;;  %s3990_s27 = smov [#allocation5]  }
   0xb   : > { %s5607_s24 = scalar_select %p4062_p4, 1, 0 }
   0xc   : > { %s5608_s25 = scalar_select %p4067_p6, 1, 0 }
   0xd   : > { %p4072_p8 = pnand %p2949_p5, %p163_p7  ;;  %s175_s28 = sshll.u32 %s3990_s27, 4  ;;  %s4076_s28 = int_to_ptr.vmem [resolvable:$true] %s175_s28 }
   0xe   : > { %s3991_s30 = smov [#allocation7]   ;;  %s3832_s9 = scalar_lea.hbm %s5511_s1, 8192 }
   0xf   : > { %p3240_p9 = pneg %p4072_p8  ;;  %s191_s6 = sshll.u32 %s3991_s30, 4  ;;  %s4087_s6 = int_to_ptr.vmem [resolvable:$true] %s191_s6 }
  0x10   : > { %p3833_p12 = scmp.ne.s32.totalorder %s5511_s1, %s3832_s9  ;;  %p3839_p5 = scmp.lt.u32.totalorder %s3832_s9, %s5511_s1 }
  0x11   : > { %p4083_p11 = pnand %p3240_p9, %p5516_p1 }
  0x13   : > { %p3834_p13 = pneg %p4083_p11 }
  0x15   : > { %p3835_p0 = pnand %p3834_p13, %p3833_p12 }
  0x17   : > { %p3836_p3 = pneg %p3835_p0 }
  0x19   : > { %p3841_p7 = pnand %p3839_p5, %p3836_p3 }
  0x1b   : > { %3844 = shalt.err (!%p3841_p7)
}
  0x1c   : > { %s3845_s14 = scalar_lea.vmem %s4076_s28, 8192  ;;  %p3853_p2 = scmp.lt.s32.totalorder %s4076_s28, %s4076_s28 }
  0x1d   : > { %p3846_p9 = scmp.ne.s32.totalorder %s4076_s28, %s3845_s14  ;;  %p3854_p12 = scmp.lt.s32.totalorder %s3845_s14, %s3845_s14 }
  0x1f   : > { %p3848_p10 = pnand %p3846_p9, %p3834_p13  ;;  %p3855_p0 = por %p3854_p12, %p3853_p2 }
  0x21   : > { %p3849_p1 = pneg %p3848_p10 }
  0x23   : > { %p3856_p6 = pnand %p3855_p0, %p3849_p1 }
  0x25   : > { %3859 = shalt.err (!%p3856_p6)
}
  0x26   : > { %s3992_s15 = smov 128   ;;  %s3993_s16 = smov 8  }
  0x27   : > { %3243 = dma.hbm_to_vmem [thread:$0]  (!%p4083_p11), %s5511_s1, 8192, %s4076_s28, [#allocation6], %s3992_s15, %s3992_s15, %s3993_s16  }
  0x28   : > { %s3860_s7 = scalar_lea.hbm %s5513_s3, 8192 }
  0x29   : > { %p3861_p2 = scmp.ne.s32.totalorder %s5513_s3, %s3860_s7  ;;  %p3867_p10 = scmp.lt.u32.totalorder %s3860_s7, %s5513_s3 }
  0x2b   : > { %p3863_p1 = pnand %p3861_p2, %p3834_p13 }
  0x2d   : > { %p3864_p6 = pneg %p3863_p1 }
  0x2f   : > { %p3869_p3 = pnand %p3867_p10, %p3864_p6 }
  0x31   : > { %3872 = shalt.err (!%p3869_p3)
}
  0x32   : > { %s3873_s28 = scalar_lea.vmem %s4087_s6, 8192  ;;  %p3881_p12 = scmp.lt.s32.totalorder %s4087_s6, %s4087_s6 }
  0x33   : > { %p3874_p5 = scmp.ne.s32.totalorder %s4087_s6, %s3873_s28  ;;  %p3882_p0 = scmp.lt.s32.totalorder %s3873_s28, %s3873_s28 }
  0x35   : > { %p3876_p7 = pnand %p3874_p5, %p3834_p13  ;;  %p3883_p2 = por %p3882_p0, %p3881_p12 }
  0x37   : > { %p3877_p9 = pneg %p3876_p7 }
  0x39   : > { %p3884_p1 = pnand %p3883_p2, %p3877_p9 }
  0x3b   : > { %3887 = shalt.err (!%p3884_p1)
}
  0x3c   : > { %s3994_s12 = smov 256   ;;  %s3995_s13 = smov 16  }
  0x3d   : > { %3246 = dma.hbm_to_vmem [thread:$0]  (!%p4083_p11), %s5513_s3, 8192, %s4087_s6, [#allocation6], %s3994_s12, %s3994_s12, %s3995_s13  }
  0x3e   : > { %s4142_s16 = sadd.s32 1, %s3988_s21   ;;  %s29_s23 = sadd.s32 1, %s3984_s20 }
  0x3f   : > { %s26_s17 = ssub.s32 %s3988_s21, %s4142_s16  ;;  %p36_p6 = scmp.ne.s32.totalorder %s3984_s20, %s3980_s19 }
  0x40   : > { %p27_p13 = scmp.eq.s32.totalorder %s26_s17, 0  ;;  %p37_p10 = scmp.eq.s32.totalorder %s3988_s21, 0 }
  0x41   : > { %p5611_p5 = scmp.eq.s32.totalorder %s4053_s22, 1  ;;  %p3257_p9 = scmp.lt.s32.totalorder %s3988_s21, 2 }
  0x42   : > { %s4151_s27 = scalar_select %p27_p13, %s3984_s20, %s29_s23  }
  0x43   : > { %p38_p3 = por %p37_p10, %p36_p6  ;;  %p4155_p7 = por %p5611_p5, %p36_p6 }
  0x44   : > { %s208_s29 = sand.u32 1, %s3984_s20   ;;  %s3097_s6 = sshll.u32 %s3988_s21, 14 }
  0x45   : > { %s5612_s30 = scalar_select %p4155_p7, 1, 0 }
  0x46   : > { %s2953_s7 = sshll.u32 %s208_s29, 10  ;;  %s4165_s10 = scalar_lea.hbm %s5510_s0, %s3097_s6 }
  0x47   : > { %s212_s11 = scalar_lea.vmem [#allocation2], %s2953_s7  ;;  %p4169_p11 = pnand %p3257_p9, %p38_p3 }
  0x48   : > { %s220_s28 = sshll.u32 %s212_s11, 4  ;;  %s4173_s13 = scalar_lea.sflag [#allocation3], %s208_s29  ;;  %s4167_s28 = int_to_ptr.vmem [resolvable:$true] %s220_s28 }
  0x49   : > { %s3888_s14 = scalar_lea.hbm %s4165_s10, 16384  ;;  %p3890_p0 = pneg %p4169_p11 }
  0x4a   : > { %p3889_p12 = scmp.ne.s32.totalorder %s4165_s10, %s3888_s14  ;;  %s3893_s23 = scalar_lea.hbm %s5510_s0, 32768 }
  0x4b   : > { %p3894_p13 = scmp.lt.u32.totalorder %s4165_s10, %s5510_s0  ;;  %p3895_p6 = scmp.lt.u32.totalorder %s3893_s23, %s3888_s14 }
  0x4c   : > { %p3891_p2 = pnand %p3890_p0, %p3889_p12  ;;  %p3897_p3 = scmp.lt.u32.totalorder %s3888_s14, %s4165_s10 }
  0x4d   : > { %p3896_p10 = por %p3895_p6, %p3894_p13 }
  0x4e   : > { %p3892_p1 = pneg %p3891_p2 }
  0x4f   : > { %p3898_p5 = por %p3897_p3, %p3896_p10 }
  0x51   : > { %p3899_p9 = pnand %p3898_p5, %p3892_p1 }
  0x53   : > { %3902 = shalt.err (!%p3899_p9)
}
  0x54   : > { %s3903_s29 = scalar_lea.vmem %s4167_s28, 16384  ;;  %s3996_s8 = smov [#allocation2]  }
  0x55   : > { %p3904_p12 = scmp.ne.s32.totalorder %s4167_s28, %s3903_s29  ;;  %s3908_s9 = sshll.u32 %s3996_s8, 4  ;;  %s3909_s9 = int_to_ptr.vmem [resolvable:$false] %s3908_s9 }
  0x56   : > { %s3910_s11 = scalar_lea.vmem %s3909_s9, 32768  ;;  %p3911_p4 = scmp.lt.s32.totalorder %s4167_s28, %s3909_s9 }
  0x57   : > { %p3906_p2 = pnand %p3904_p12, %p3890_p0  ;;  %p3912_p13 = scmp.lt.s32.totalorder %s3910_s11, %s3903_s29 }
  0x59   : > { %p3907_p7 = pneg %p3906_p2  ;;  %p3913_p6 = por %p3912_p13, %p3911_p4 }
  0x5b   : > { %p3914_p10 = pnand %p3913_p6, %p3907_p7 }
  0x5d   : > { %3917 = shalt.err (!%p3914_p10)
}
  0x5e   : > { %s3997_s14 = smov 512   ;;  %s3998_s15 = smov 32  }
  0x5f   : > { %3250 = dma.hbm_to_vmem [thread:$0]  (!%p4169_p11), %s4165_s10, 16384, %s4167_s28, %s4173_s13, %s3997_s14, %s3997_s14, %s3998_s15  }
  0x60   : > { %232 = sbr.rel (%p4072_p8) target bundleno = 1022 (0x3fe), region = 40 }
  0x67   : > { %s4204_s17 = sand.u32 1, %s3980_s19   ;;  %p5614_p4 = scmp.ne.s32.totalorder %s5607_s24, 0 }
  0x68   : > { %s2958_s23 = sshll.u32 %s4204_s17, 10  ;;  %s235_s7 = scalar_lea.sflag [#allocation3], %s4204_s17 }
  0x69   : > { %s4210_s6 = scalar_lea.vmem [#allocation2], %s2958_s23 }
  0x6a   : > { %3963 = dma.done.wait (%p5614_p4), %s235_s7, 16384  }
  0x6b   : > { %3965 = vsyncadd (%p5614_p4), %s235_s7, 4294950912  ;;  %p5615_p7 = scmp.eq.s32.totalorder %s4053_s22, 0 }
  0x6d   : > { %3967 = dma.done.wait (%p5615_p7), [#allocation6], 16384   ;;  %p5616_p8 = pmov %p5615_p7 }
  0x6e   : > { %v3303_v0 = vld [vmem:[#allocation5 + $0x4] ss:$8 sps:$4 sm:$0xff]   ;;  %v3305_v1 = vld [vmem:[#allocation5] ss:$8 sps:$4 sm:$0xff]   ;;  %v3306_v2 = vld [vmem:[#allocation5 + $0x14] ss:$8 sps:$4 sm:$0xff]  }
  0x6f   : > { %3969 = vsyncadd (%p5616_p8), [#allocation6], 4294950912  ;;  %991 = vmatprep.subr.bf16.mxu0 %v3303_v0  ;;  %v3308_v3 = vld [vmem:[#allocation5 + $0x10] ss:$8 sps:$4 sm:$0xff]   ;;  %v3309_v4 = vld [vmem:[#allocation5 + $0x24] ss:$8 sps:$4 sm:$0xff]  }
  0x70   : > { %992 = vmatpush1.bf16.msra.mxu0 %v3305_v1  ;;  %v3311_v5 = vld [vmem:[#allocation5 + $0x20] ss:$8 sps:$4 sm:$0xff]   ;;  %v3312_v6 = vld [vmem:[#allocation5 + $0x34] ss:$8 sps:$4 sm:$0xff]   ;;  %v3314_v7 = vld [vmem:[#allocation5 + $0x30] ss:$8 sps:$4 sm:$0xff]  }
  0x71   : > { %993 = vmatprep.subr.bf16.mxu0 %v3306_v2  ;;  %v3315_v8 = vld [vmem:[#allocation5 + $0x44] ss:$8 sps:$4 sm:$0xff]   ;;  %v3317_v9 = vld [vmem:[#allocation5 + $0x40] ss:$8 sps:$4 sm:$0xff]   ;;  %v3318_v10 = vld [vmem:[#allocation5 + $0x54] ss:$8 sps:$4 sm:$0xff]  }
  0x72   : > { %v3320_v11 = vld [vmem:[#allocation5 + $0x50] ss:$8 sps:$4 sm:$0xff]   ;;  %v3321_v12 = vld [vmem:[#allocation5 + $0x64] ss:$8 sps:$4 sm:$0xff]   ;;  %v3323_v13 = vld [vmem:[#allocation5 + $0x60] ss:$8 sps:$4 sm:$0xff]  }
  0x73   : > { %v276_v14 = vld [vmem:[%s4210_s6 + $0x8] sm:$0xff]  ;;  %v4222_v15 = vld [vmem:[%s4210_s6 + $0x18] sm:$0xff]  ;;  %v275_v19 = vld [vmem:[%s4210_s6] sm:$0xff]  ;;  %s4724_s12 = scalar_lea.vmem [#allocation8], %s2958_s23  ;;  %s3099_s8 = sshll.u32 %s4053_s22, 14 }
  0x74   : > { %994 = vmatpush1.bf16.msra.mxu0 %v3308_v3  ;;  %v280_v16 = vld [vmem:[%s4210_s6 + $0x28] sm:$0xff]  ;;  %v4226_v17 = vld [vmem:[%s4210_s6 + $0x38] sm:$0xff]  ;;  %v4229_v18 = vadd.f32 %v4222_v15, %v276_v14  ;;  %v4236_v22 = vld [vmem:[%s4210_s6 + $0x10] sm:$0xff]  ;;  %s2856_s9 = sshll.u32 %s4724_s12, 4  ;;  %s5459_s15 = scalar_lea.hbm %s5515_s5, %s3099_s8  ;;  %s5461_s9 = int_to_ptr.vmem [resolvable:$true] %s2856_s9 }
  0x75   : > { %995 = vmatprep.subr.bf16.mxu0 %v3309_v4  ;;  %v4233_v20 = vadd.f32 %v4226_v17, %v280_v16  ;;  %v532_v21 = vpack.c.bf16 %v280_v16, %v276_v14  ;;  %v279_v23 = vld [vmem:[%s4210_s6 + $0x20] sm:$0xff]  ;;  %v4240_v24 = vld [vmem:[%s4210_s6 + $0x30] sm:$0xff]  ;;  %v4243_v26 = vadd.f32 %v4236_v22, %v275_v19  ;;  %v284_v46 = vld [vmem:[%s4210_s6 + $0x48] sm:$0xff]  ;;  %s2842_s22 = scalar_lea.sflag [#allocation4], %s4204_s17  ;;  %s3918_s23 = scalar_lea.vmem %s5461_s9, 16384 }
  0x76   : > { %v3324_v25 = vld [vmem:[#allocation5 + $0x74] ss:$8 sps:$4 sm:$0xff]   ;;  %v4246_v27 = vadd.f32 %v4240_v24, %v279_v23  ;;  %v3326_v28 = vld [vmem:[#allocation5 + $0x70] ss:$8 sps:$4 sm:$0xff]   ;;  %v3327_v29 = vld [vmem:[#allocation5 + $0x84] ss:$8 sps:$4 sm:$0xff]   ;;  %v531_v48 = vpack.c.bf16 %v279_v23, %v275_v19  ;;  %p3919_p11 = scmp.ne.s32.totalorder %s5461_s9, %s3918_s23 }
  0x77   : > { %1023 = vmatprep.mubr.bf16.mxu0 %v532_v21  ;;  %v3329_v30 = vld [vmem:[#allocation5 + $0x80] ss:$8 sps:$4 sm:$0xff]   ;;  %v3330_v31 = vld [vmem:[#allocation5 + $0x94] ss:$8 sps:$4 sm:$0xff]   ;;  %v3332_v32 = vld [vmem:[#allocation5 + $0x90] ss:$8 sps:$4 sm:$0xff]  }
  0x78   : > { %996 = vmatpush1.bf16.msra.mxu0 %v3311_v5  ;;  %v3333_v33 = vld [vmem:[#allocation5 + $0xa4] ss:$8 sps:$4 sm:$0xff]   ;;  %v3335_v34 = vld [vmem:[#allocation5 + $0xa0] ss:$8 sps:$4 sm:$0xff]   ;;  %v3336_v35 = vld [vmem:[#allocation5 + $0xb4] ss:$8 sps:$4 sm:$0xff]  }
  0x79   : > { %997 = vmatprep.subr.bf16.mxu0 %v3312_v6  ;;  %v3338_v36 = vld [vmem:[#allocation5 + $0xb0] ss:$8 sps:$4 sm:$0xff]   ;;  %v3339_v37 = vld [vmem:[#allocation5 + $0xc4] ss:$8 sps:$4 sm:$0xff]   ;;  %v3341_v38 = vld [vmem:[#allocation5 + $0xc0] ss:$8 sps:$4 sm:$0xff]  }
  0x7a   : > { %v3342_v39 = vld [vmem:[#allocation5 + $0xd4] ss:$8 sps:$4 sm:$0xff]   ;;  %v3344_v40 = vld [vmem:[#allocation5 + $0xd0] ss:$8 sps:$4 sm:$0xff]   ;;  %v3345_v41 = vld [vmem:[#allocation5 + $0xe4] ss:$8 sps:$4 sm:$0xff]  }
  0x7b   : > { %v3347_v42 = vld [vmem:[#allocation5 + $0xe0] ss:$8 sps:$4 sm:$0xff]   ;;  %v3348_v43 = vld [vmem:[#allocation5 + $0xf4] ss:$8 sps:$4 sm:$0xff]   ;;  %v3350_v44 = vld [vmem:[#allocation5 + $0xf0] ss:$8 sps:$4 sm:$0xff]  }
  0x7c   : > { %998 = vmatpush1.bf16.msra.mxu0 %v3314_v7  ;;  %v3353_v45 = vld [vmem:[#allocation5 + $0x104] ss:$8 sps:$4 sm:$0xff]   ;;  %v3351_v49 = vld [vmem:[#allocation5 + $0x100] ss:$8 sps:$4 sm:$0xff]   ;;  %v3356_v51 = vld [vmem:[#allocation5 + $0x114] ss:$8 sps:$4 sm:$0xff]  }
  0x7d   : > { %999 = vmatprep.subr.bf16.mxu0 %v3315_v8  ;;  %v288_v47 = vld [vmem:[%s4210_s6 + $0x68] sm:$0xff]  ;;  %v283_v52 = vld [vmem:[%s4210_s6 + $0x40] sm:$0xff]  ;;  %v3354_v54 = vld [vmem:[#allocation5 + $0x110] ss:$8 sps:$4 sm:$0xff]   ;;  %p5756_p0 = scmp.ne.s32.totalorder %s5612_s30, 0  ;;  %s3999_s7 = smov [#allocation8]  }
  0x7e   : > { %v536_v50 = vpack.c.bf16 %v288_v47, %v284_v46  ;;  %v287_v53 = vld [vmem:[%s4210_s6 + $0x60] sm:$0xff]  ;;  %v292_v55 = vld [vmem:[%s4210_s6 + $0x88] sm:$0xff]  ;;  %v4255_v58 = vld [vmem:[%s4210_s6 + $0x58] sm:$0xff] }
  0x7f   : > { %v296_v56 = vld [vmem:[%s4210_s6 + $0xa8] sm:$0xff]  ;;  %v4258_v59 = vld [vmem:[%s4210_s6 + $0x78] sm:$0xff]  ;;  %v4261_v60 = vadd.f32 %v4255_v58, %v284_v46  ;;  %v4267_v62 = vld [vmem:[%s4210_s6 + $0x50] sm:$0xff]  ;;  %v535_v3 = vpack.c.bf16 %v287_v53, %v283_v52  ;;  %p3920_p1 = pnand %p3919_p11, %p5756_p0 }
  0x80   : > { %1000 = vmatpush1.bf16.msra.mxu0 %v3317_v9  ;;  %v3359_v57 = vld [vmem:[#allocation5 + $0x124] ss:$8 sps:$4 sm:$0xff]   ;;  %v4264_v61 = vadd.f32 %v4258_v59, %v288_v47  ;;  %v4270_v63 = vld [vmem:[%s4210_s6 + $0x70] sm:$0xff]  ;;  %v4273_v0 = vadd.f32 %v4267_v62, %v283_v52  ;;  %v3357_v2 = vld [vmem:[#allocation5 + $0x120] ss:$8 sps:$4 sm:$0xff]   ;;  %v540_v5 = vpack.c.bf16 %v296_v56, %v292_v55 }
  0x81   : > { %1001 = vmatprep.subr.bf16.mxu0 %v3318_v10  ;;  %v4276_v1 = vadd.f32 %v4270_v63, %v287_v53  ;;  %v3362_v4 = vld [vmem:[#allocation5 + $0x134] ss:$8 sps:$4 sm:$0xff]   ;;  %v291_v6 = vld [vmem:[%s4210_s6 + $0x80] sm:$0xff]  ;;  %v3360_v8 = vld [vmem:[#allocation5 + $0x130] ss:$8 sps:$4 sm:$0xff]   ;;  %p3921_p3 = pneg %p3920_p1 }
  0x82   : > { %v295_v7 = vld [vmem:[%s4210_s6 + $0xa0] sm:$0xff]  ;;  %v300_v9 = vld [vmem:[%s4210_s6 + $0xc8] sm:$0xff]  ;;  %v4295_v19 = vld [vmem:[%s4210_s6 + $0x90] sm:$0xff] }
  0x83   : > { %v304_v10 = vld [vmem:[%s4210_s6 + $0xe8] sm:$0xff]  ;;  %v4298_v21 = vld [vmem:[%s4210_s6 + $0xb0] sm:$0xff]  ;;  %v4301_v23 = vadd.f32 %v4295_v19, %v291_v6  ;;  %v4337_v53 = vld [vmem:[%s4210_s6 + $0x118] sm:$0xff] }
  0x84   : > { %1002 = vmatpush1.bf16.msra.mxu0 %v3320_v11  ;;  %v3365_v11 = vld [vmem:[#allocation5 + $0x144] ss:$8 sps:$4 sm:$0xff]   ;;  %v3369_v46 = vld [vmem:[#allocation5 + $0x160] ss:$8 sps:$4 sm:$0xff]   ;;  %v3372_v52 = vld [vmem:[#allocation5 + $0x170] ss:$8 sps:$4 sm:$0xff]  }
  0x85   : > { %1003 = vmatprep.subr.bf16.mxu0 %v3321_v12  ;;  %v4283_v12 = vld [vmem:[%s4210_s6 + $0x98] sm:$0xff] }
  0x86   : > { %v4289_v14 = vadd.f32 %v4283_v12, %v292_v55 }
  0x88   : > { %1004 = vmatpush1.bf16.msra.mxu0 %v3323_v13  ;;  %v4286_v13 = vld [vmem:[%s4210_s6 + $0xb8] sm:$0xff] }
  0x89   : > { %1005 = vmatprep.subr.bf16.mxu0 %v3324_v25  ;;  %v4292_v16 = vadd.f32 %v4286_v13, %v296_v56  ;;  %v4304_v25 = vadd.f32 %v4298_v21, %v295_v7 }
  0x8b   : > { %5617 = vst [vmem:[#allocation12_spill] sm:$0xff] %v4292_v16  ;;  %5618 = vst [vmem:[#allocation13_spill] sm:$0xff] %v4304_v25 }
  0x8c   : > { %1006 = vmatpush1.bf16.msra.mxu0 %v3326_v28  ;;  %v3363_v28 = vld [vmem:[#allocation5 + $0x140] ss:$8 sps:$4 sm:$0xff]  }
  0x8d   : > { %1007 = vmatprep.subr.bf16.mxu0 %v3327_v29  ;;  %v539_v29 = vpack.c.bf16 %v295_v7, %v291_v6 }
  0x90   : > { %1008 = vmatpush1.bf16.msra.mxu0 %v3329_v30  ;;  %v3368_v30 = vld [vmem:[#allocation5 + $0x154] ss:$8 sps:$4 sm:$0xff]  }
  0x91   : > { %1009 = vmatprep.subr.bf16.mxu0 %v3330_v31  ;;  %v544_v31 = vpack.c.bf16 %v304_v10, %v300_v9 }
  0x94   : > { %1010 = vmatpush1.bf16.msra.mxu0 %v3332_v32  ;;  %v299_v32 = vld [vmem:[%s4210_s6 + $0xc0] sm:$0xff] }
  0x95   : > { %1011 = vmatprep.subr.bf16.mxu0 %v3333_v33  ;;  %v303_v33 = vld [vmem:[%s4210_s6 + $0xe0] sm:$0xff] }
  0x96   : > { %v543_v47 = vpack.c.bf16 %v303_v33, %v299_v32 }
  0x98   : > { %1012 = vmatpush1.bf16.msra.mxu0 %v3335_v34  ;;  %v3366_v34 = vld [vmem:[#allocation5 + $0x150] ss:$8 sps:$4 sm:$0xff]  }
  0x99   : > { %1013 = vmatprep.subr.bf16.mxu0 %v3336_v35  ;;  %v308_v35 = vld [vmem:[%s4210_s6 + $0x108] sm:$0xff] }
  0x9a   : > { %v4343_v55 = vadd.f32 %v4337_v53, %v308_v35 }
  0x9c   : > { %1014 = vmatpush1.bf16.msra.mxu0 %v3338_v36  ;;  %v312_v36 = vld [vmem:[%s4210_s6 + $0x128] sm:$0xff]  ;;  %5623 = vst [vmem:[#allocation18_spill] sm:$0xff] %v4343_v55 }
  0x9d   : > { %1015 = vmatprep.subr.bf16.mxu0 %v3339_v37  ;;  %v3371_v37 = vld [vmem:[#allocation5 + $0x164] ss:$8 sps:$4 sm:$0xff]  }
  0xa0   : > { %1016 = vmatpush1.bf16.msra.mxu0 %v3341_v38  ;;  %v4311_v38 = vld [vmem:[%s4210_s6 + $0xd8] sm:$0xff] }
  0xa1   : > { %1017 = vmatprep.subr.bf16.mxu0 %v3342_v39  ;;  %v4314_v39 = vld [vmem:[%s4210_s6 + $0xf8] sm:$0xff] }
  0xa4   : > { %1018 = vmatpush1.bf16.msra.mxu0 %v3344_v40  ;;  %v4317_v40 = vadd.f32 %v4311_v38, %v300_v9 }
  0xa5   : > { %1019 = vmatprep.subr.bf16.mxu0 %v3345_v41  ;;  %v4320_v41 = vadd.f32 %v4314_v39, %v304_v10  ;;  %v3375_v10 = vld [vmem:[#allocation5 + $0x180] ss:$8 sps:$4 sm:$0xff]  }
  0xa6   : > { %5619 = vst [vmem:[#allocation14_spill] sm:$0xff] %v4317_v40 }
  0xa7   : > { %5620 = vst [vmem:[#allocation15_spill] sm:$0xff] %v4320_v41 }
  0xa8   : > { %1020 = vmatpush1.bf16.msra.mxu0 %v3347_v42  ;;  %v4323_v42 = vld [vmem:[%s4210_s6 + $0xd0] sm:$0xff] }
  0xa9   : > { %1021 = vmatprep.subr.bf16.mxu0 %v3348_v43  ;;  %v4326_v43 = vld [vmem:[%s4210_s6 + $0xf0] sm:$0xff] }
  0xac   : > { %1022 = vmatpush1.bf16.msra.mxu0 %v3350_v44  ;;  %v4329_v44 = vadd.f32 %v4323_v42, %v299_v32  ;;  %v3378_v32 = vld [vmem:[#allocation5 + $0x190] ss:$8 sps:$4 sm:$0xff]  }
  0xad   : > { %1184 = vmatprep.subr.bf16.mxu0 %v3353_v45  ;;  %v4332_v45 = vadd.f32 %v4326_v43, %v303_v33 }
  0xae   : > { %5621 = vst [vmem:[#allocation16_spill] sm:$0xff] %v4329_v44 }
  0xaf   : > { %1024 = vmatmul.mubr.bf16.vlgmr.msra.gmra.mrb[0].mxu0 %v531_v48  ;;  %5622 = vst [vmem:[#allocation17_spill] sm:$0xff] %v4332_v45  ;;  %v3374_v48 = vld [vmem:[#allocation5 + $0x174] ss:$8 sps:$4 sm:$0xff]  }
  0xb0   : > { %1185 = vmatpush1.bf16.msra.mxu0 %v3351_v49  ;;  %1033 = vmatprep.mubr.bf16.mxu0 %v536_v50  ;;  %v548_v49 = vpack.c.bf16 %v312_v36, %v308_v35  ;;  %v307_v50 = vld [vmem:[%s4210_s6 + $0x100] sm:$0xff]  ;;  %v4377_v35 = vld [vmem:[%s4210_s6 + $0x150] sm:$0xff] }
  0xb1   : > { %1186 = vmatprep.subr.bf16.mxu0 %v3356_v51  ;;  %v311_v51 = vld [vmem:[%s4210_s6 + $0x120] sm:$0xff] }
  0xb4   : > { %1187 = vmatpush1.bf16.msra.mxu0 %v3354_v54  ;;  %v4340_v54 = vld [vmem:[%s4210_s6 + $0x138] sm:$0xff] }
  0xb5   : > { %1188 = vmatprep.subr.bf16.mxu0 %v3359_v57  ;;  %v4346_v56 = vadd.f32 %v4340_v54, %v312_v36  ;;  %v4349_v57 = vld [vmem:[%s4210_s6 + $0x110] sm:$0xff] }
  0xb6   : > { %v4357_v6 = vadd.f32 %v4349_v57, %v307_v50  ;;  %v4380_v36 = vld [vmem:[%s4210_s6 + $0x170] sm:$0xff] }
  0xb7   : > { %1034 = vmatmul.mubr.bf16.gmra.mrb[4].mxu0 %v535_v3  ;;  %5624 = vst [vmem:[#allocation19_spill] sm:$0xff] %v4346_v56  ;;  %v316_v3 = vld [vmem:[%s4210_s6 + $0x148] sm:$0xff] }
  0xb8   : > { %1043 = vmatprep.mubr.bf16.mxu0 %v540_v5  ;;  %1189 = vmatpush1.bf16.msra.mxu0 %v3357_v2  ;;  %v4352_v2 = vld [vmem:[%s4210_s6 + $0x130] sm:$0xff]  ;;  %v3377_v5 = vld [vmem:[#allocation5 + $0x184] ss:$8 sps:$4 sm:$0xff]   ;;  %5625 = vst [vmem:[#allocation20_spill] sm:$0xff] %v4357_v6 }
  0xb9   : > { %1190 = vmatprep.subr.bf16.mxu0 %v3362_v4  ;;  %v320_v4 = vld [vmem:[%s4210_s6 + $0x168] sm:$0xff]  ;;  %v4360_v7 = vadd.f32 %v4352_v2, %v311_v51 }
  0xba   : > { %v552_v9 = vpack.c.bf16 %v320_v4, %v316_v3 }
  0xbb   : > { %5626 = vst [vmem:[#allocation21_spill] sm:$0xff] %v4360_v7 }
  0xbc   : > { %1191 = vmatpush1.bf16.msra.mxu0 %v3360_v8  ;;  %v547_v8 = vpack.c.bf16 %v311_v51, %v307_v50 }
  0xbd   : > { %1192 = vmatprep.subr.bf16.mxu0 %v3365_v11  ;;  %v3380_v11 = vld [vmem:[#allocation5 + $0x194] ss:$8 sps:$4 sm:$0xff]  }
  0xbf   : > { %1044 = vmatmul.mubr.bf16.gmra.mrb[8].mxu0 %v539_v29  ;;  %v319_v29 = vld [vmem:[%s4210_s6 + $0x160] sm:$0xff] }
  0xc0   : > { %1053 = vmatprep.mubr.bf16.mxu0 %v544_v31  ;;  %1193 = vmatpush1.bf16.msra.mxu0 %v3363_v28  ;;  %v315_v28 = vld [vmem:[%s4210_s6 + $0x140] sm:$0xff]  ;;  %v4368_v31 = vld [vmem:[%s4210_s6 + $0x178] sm:$0xff] }
  0xc1   : > { %1194 = vmatprep.subr.bf16.mxu0 %v3368_v30  ;;  %v4365_v30 = vld [vmem:[%s4210_s6 + $0x158] sm:$0xff]  ;;  %v551_v50 = vpack.c.bf16 %v319_v29, %v315_v28 }
  0xc2   : > { %v4371_v33 = vadd.f32 %v4365_v30, %v316_v3  ;;  %v3386_v3 = vld [vmem:[#allocation5 + $0x1b4] ss:$8 sps:$4 sm:$0xff]  }
  0xc4   : > { %1195 = vmatpush1.bf16.msra.mxu0 %v3366_v34  ;;  %5627 = vst [vmem:[#allocation22_spill] sm:$0xff] %v4371_v33  ;;  %v4374_v34 = vadd.f32 %v4368_v31, %v320_v4  ;;  %v323_v4 = vld [vmem:[%s4210_s6 + $0x180] sm:$0xff] }
  0xc5   : > { %1196 = vmatprep.subr.bf16.mxu0 %v3371_v37  ;;  %v324_v37 = vld [vmem:[%s4210_s6 + $0x188] sm:$0xff] }
  0xc6   : > { %5628 = vst [vmem:[#allocation23_spill] sm:$0xff] %v4374_v34 }
  0xc7   : > { %1054 = vmatmul.mubr.bf16.gmra.mrb[12].mxu0 %v543_v47  ;;  %v3383_v47 = vld [vmem:[#allocation5 + $0x1a4] ss:$8 sps:$4 sm:$0xff]  }
  0xc8   : > { %1063 = vmatprep.mubr.bf16.mxu0 %v548_v49  ;;  %1197 = vmatpush1.bf16.msra.mxu0 %v3369_v46  ;;  %v328_v46 = vld [vmem:[%s4210_s6 + $0x1a8] sm:$0xff]  ;;  %v4388_v49 = vadd.f32 %v4380_v36, %v319_v29 }
  0xc9   : > { %1198 = vmatprep.subr.bf16.mxu0 %v3374_v48  ;;  %v4385_v48 = vadd.f32 %v4377_v35, %v315_v28  ;;  %v556_v51 = vpack.c.bf16 %v328_v46, %v324_v37  ;;  %v3392_v37 = vld [vmem:[#allocation5 + $0x1d4] ss:$8 sps:$4 sm:$0xff]   ;;  %v331_v46 = vld [vmem:[%s4210_s6 + $0x1c0] sm:$0xff] }
  0xca   : > { %5630 = vst [vmem:[#allocation25_spill] sm:$0xff] %v4388_v49 }
  0xcb   : > { %5629 = vst [vmem:[#allocation24_spill] sm:$0xff] %v4385_v48 }
  0xcc   : > { %1199 = vmatpush1.bf16.msra.mxu0 %v3372_v52  ;;  %v3381_v52 = vld [vmem:[#allocation5 + $0x1a0] ss:$8 sps:$4 sm:$0xff]  }
  0xcd   : > { %1200 = vmatprep.subr.bf16.mxu0 %v3377_v5  ;;  %v327_v5 = vld [vmem:[%s4210_s6 + $0x1a0] sm:$0xff] }
  0xce   : > { %v555_v28 = vpack.c.bf16 %v327_v5, %v323_v4 }
  0xcf   : > { %1064 = vmatmul.mubr.bf16.gmra.mrb[16].mxu0 %v547_v8  ;;  %v3384_v8 = vld [vmem:[#allocation5 + $0x1b0] ss:$8 sps:$4 sm:$0xff]  }
  0xd0   : > { %1073 = vmatprep.mubr.bf16.mxu0 %v552_v9  ;;  %1201 = vmatpush1.bf16.msra.mxu0 %v3375_v10  ;;  %v332_v9 = vld [vmem:[%s4210_s6 + $0x1c8] sm:$0xff] }
  0xd1   : > { %1202 = vmatprep.subr.bf16.mxu0 %v3380_v11  ;;  %v336_v10 = vld [vmem:[%s4210_s6 + $0x1e8] sm:$0xff] }
  0xd2   : > { %v3389_v11 = vld [vmem:[#allocation5 + $0x1c4] ss:$8 sps:$4 sm:$0xff]   ;;  %v560_v29 = vpack.c.bf16 %v336_v10, %v332_v9  ;;  %v3398_v9 = vld [vmem:[#allocation5 + $0x1f4] ss:$8 sps:$4 sm:$0xff]  }
  0xd3   : > { %v339_v10 = vld [vmem:[%s4210_s6 + $0x200] sm:$0xff] }
  0xd4   : > { %1203 = vmatpush1.bf16.msra.mxu0 %v3378_v32  ;;  %v3387_v32 = vld [vmem:[#allocation5 + $0x1c0] ss:$8 sps:$4 sm:$0xff]  }
  0xd5   : > { %1204 = vmatprep.subr.bf16.mxu0 %v3383_v47  ;;  %v335_v47 = vld [vmem:[%s4210_s6 + $0x1e0] sm:$0xff] }
  0xd6   : > { %v559_v4 = vpack.c.bf16 %v335_v47, %v331_v46  ;;  %v347_v47 = vld [vmem:[%s4210_s6 + $0x240] sm:$0xff] }
  0xd7   : > { %1074 = vmatmul.mubr.bf16.gmra.mrb[20].mxu0 %v551_v50  ;;  %v3390_v50 = vld [vmem:[#allocation5 + $0x1d0] ss:$8 sps:$4 sm:$0xff]  }
  0xd8   : > { %1083 = vmatprep.mubr.bf16.mxu0 %v556_v51  ;;  %1205 = vmatpush1.bf16.msra.mxu0 %v3381_v52  ;;  %v340_v51 = vld [vmem:[%s4210_s6 + $0x208] sm:$0xff] }
  0xd9   : > { %1206 = vmatprep.subr.bf16.mxu0 %v3386_v3  ;;  %v344_v52 = vld [vmem:[%s4210_s6 + $0x228] sm:$0xff] }
  0xda   : > { %v3395_v3 = vld [vmem:[#allocation5 + $0x1e4] ss:$8 sps:$4 sm:$0xff]   ;;  %v564_v5 = vpack.c.bf16 %v344_v52, %v340_v51 }
  0xdb   : > { %v356_v51 = vld [vmem:[%s4210_s6 + $0x288] sm:$0xff] }
  0xdc   : > { %1207 = vmatpush1.bf16.msra.mxu0 %v3384_v8  ;;  %v3393_v8 = vld [vmem:[#allocation5 + $0x1e0] ss:$8 sps:$4 sm:$0xff]  }
  0xdd   : > { %1208 = vmatprep.subr.bf16.mxu0 %v3389_v11  ;;  %v343_v11 = vld [vmem:[%s4210_s6 + $0x220] sm:$0xff]  ;;  %v360_v52 = vld [vmem:[%s4210_s6 + $0x2a8] sm:$0xff] }
  0xdf   : > { %1084 = vmatmul.mubr.bf16.gmra.mrb[24].mxu0 %v555_v28  ;;  %v3396_v28 = vld [vmem:[#allocation5 + $0x1f0] ss:$8 sps:$4 sm:$0xff]  }
  0xe0   : > { %1093 = vmatprep.mubr.bf16.mxu0 %v560_v29  ;;  %1209 = vmatpush1.bf16.msra.mxu0 %v3387_v32  ;;  %v348_v29 = vld [vmem:[%s4210_s6 + $0x248] sm:$0xff] }
  0xe1   : > { %1210 = vmatprep.subr.bf16.mxu0 %v3392_v37  ;;  %v352_v32 = vld [vmem:[%s4210_s6 + $0x268] sm:$0xff]  ;;  %v563_v37 = vpack.c.bf16 %v343_v11, %v339_v10 }
  0xe2   : > { %v568_v46 = vpack.c.bf16 %v352_v32, %v348_v29  ;;  %v368_v10 = vld [vmem:[%s4210_s6 + $0x2e8] sm:$0xff]  ;;  %v363_v29 = vld [vmem:[%s4210_s6 + $0x2c0] sm:$0xff] }
  0xe3   : > { %v367_v32 = vld [vmem:[%s4210_s6 + $0x2e0] sm:$0xff] }
  0xe4   : > { %1211 = vmatpush1.bf16.msra.mxu0 %v3390_v50  ;;  %v351_v50 = vld [vmem:[%s4210_s6 + $0x260] sm:$0xff] }
  0xe5   : > { %1212 = vmatprep.subr.bf16.mxu0 %v3395_v3  ;;  %v567_v3 = vpack.c.bf16 %v351_v50, %v347_v47  ;;  %v575_v47 = vpack.c.bf16 %v367_v32, %v363_v29 }
  0xe7   : > { %1094 = vmatmul.mubr.bf16.gmra.mrb[28].mxu0 %v559_v4  ;;  %v572_v4 = vpack.c.bf16 %v360_v52, %v356_v51  ;;  %v371_v51 = vld [vmem:[%s4210_s6 + $0x300] sm:$0xff] }
  0xe8   : > { %1103 = vmatprep.mubr.bf16.mxu0 %v564_v5  ;;  %1213 = vmatpush1.bf16.msra.mxu0 %v3393_v8  ;;  %v355_v5 = vld [vmem:[%s4210_s6 + $0x280] sm:$0xff] }
  0xe9   : > { %1214 = vmatprep.subr.bf16.mxu0 %v3398_v9  ;;  %v359_v8 = vld [vmem:[%s4210_s6 + $0x2a0] sm:$0xff]  ;;  %v364_v9 = vld [vmem:[%s4210_s6 + $0x2c8] sm:$0xff] }
  0xea   : > { %v571_v11 = vpack.c.bf16 %v359_v8, %v355_v5  ;;  %v375_v52 = vld [vmem:[%s4210_s6 + $0x320] sm:$0xff] }
  0xeb   : > { %v579_v5 = vpack.c.bf16 %v375_v52, %v371_v51  ;;  %v395_v51 = vld [vmem:[%s4210_s6 + $0x3c0] sm:$0xff] }
  0xec   : > { %1215 = vmatpush1.bf16.msra.mxu0 %v3396_v28  ;;  %v576_v28 = vpack.c.bf16 %v368_v10, %v364_v9  ;;  %v379_v9 = vld [vmem:[%s4210_s6 + $0x340] sm:$0xff] }
  0xed   : > { %v383_v10 = vld [vmem:[%s4210_s6 + $0x360] sm:$0xff] }
  0xee   : > { %v583_v29 = vpack.c.bf16 %v383_v10, %v379_v9  ;;  %v399_v52 = vld [vmem:[%s4210_s6 + $0x3e0] sm:$0xff] }
  0xef   : > { %1104 = vmatmul.mubr.bf16.gmra.mrb[32].mxu0 %v563_v37  ;;  %v372_v37 = vld [vmem:[%s4210_s6 + $0x308] sm:$0xff]  ;;  %v3402_v9 = vld [vmem:[#allocation7 + $0x24] ss:$16 sps:$4 sm:$0xff]   ;;  %v3404_v10 = vld [vmem:[#allocation7 + $0x20] ss:$16 sps:$4 sm:$0xff]  }
  0xf0   : > { %1113 = vmatprep.mubr.bf16.mxu0 %v568_v46  ;;  %v376_v46 = vld [vmem:[%s4210_s6 + $0x328] sm:$0xff] }
  0xf1   : > { %v580_v50 = vpack.c.bf16 %v376_v46, %v372_v37  ;;  %v387_v37 = vld [vmem:[%s4210_s6 + $0x380] sm:$0xff] }
  0xf2   : > { %v391_v46 = vld [vmem:[%s4210_s6 + $0x3a0] sm:$0xff] }
  0xf3   : > { %v587_v34 = vpack.c.bf16 %v391_v46, %v387_v37  ;;  %v541_v37 = vpack.c.bf16 %v4298_v21, %v4295_v19  ;;  %v3417_v46 = vld [vmem:[#allocation7 + $0xc4] ss:$16 sps:$4 sm:$0xff]   ;;  %v550_v19 = vpack.c.bf16 %v4340_v54, %v4337_v53  ;;  %v3425_v21 = vld [vmem:[#allocation7 + $0x100] ss:$16 sps:$4 sm:$0xff]  }
  0xf4   : > { %v3431_v53 = vld [vmem:[#allocation7 + $0x140] ss:$16 sps:$4 sm:$0xff]   ;;  %v3432_v54 = vld [vmem:[#allocation7 + $0x164] ss:$16 sps:$4 sm:$0xff]  }
  0xf7   : > { %1114 = vmatmul.mubr.bf16.gmra.mrb[36].mxu0 %v567_v3  ;;  %v380_v3 = vld [vmem:[%s4210_s6 + $0x348] sm:$0xff] }
  0xf8   : > { %1123 = vmatprep.mubr.bf16.mxu0 %v572_v4  ;;  %v384_v4 = vld [vmem:[%s4210_s6 + $0x368] sm:$0xff] }
  0xf9   : > { %v584_v8 = vpack.c.bf16 %v384_v4, %v380_v3  ;;  %v591_v3 = vpack.c.bf16 %v399_v52, %v395_v51  ;;  %v534_v4 = vpack.c.bf16 %v4226_v17, %v4222_v15  ;;  %v3408_v15 = vld [vmem:[#allocation7 + $0x64] ss:$16 sps:$4 sm:$0xff]   ;;  %v3410_v17 = vld [vmem:[#allocation7 + $0x60] ss:$16 sps:$4 sm:$0xff]   ;;  %v549_v51 = vpack.c.bf16 %v4352_v2, %v4349_v57  ;;  %v326_v52 = vld [vmem:[%s4210_s6 + $0x198] sm:$0xff] }
  0xfa   : > { %v553_v57 = vpack.c.bf16 %v4380_v36, %v4377_v35  ;;  %v3435_v2 = vld [vmem:[#allocation7 + $0x184] ss:$16 sps:$4 sm:$0xff]  }
  0xff   : > { %1124 = vmatmul.mubr.bf16.gmra.mrb[40].mxu0 %v571_v11  ;;  %v388_v11 = vld [vmem:[%s4210_s6 + $0x388] sm:$0xff] }
 0x100   : > { %1133 = vmatprep.mubr.bf16.mxu0 %v576_v28  ;;  %v392_v28 = vld [vmem:[%s4210_s6 + $0x3a8] sm:$0xff] }
 0x101   : > { %v588_v32 = vpack.c.bf16 %v392_v28, %v388_v11  ;;  %v533_v11 = vpack.c.bf16 %v4240_v24, %v4236_v22  ;;  %v3407_v28 = vld [vmem:[#allocation7 + $0x40] ss:$16 sps:$4 sm:$0xff]   ;;  %v542_v22 = vpack.c.bf16 %v4286_v13, %v4283_v12  ;;  %v3420_v12 = vld [vmem:[#allocation7 + $0xe4] ss:$16 sps:$4 sm:$0xff]  }
 0x102   : > { %v3413_v24 = vld [vmem:[#allocation7 + $0x80] ss:$16 sps:$4 sm:$0xff]  }
 0x103   : > { %v3422_v13 = vld [vmem:[#allocation7 + $0xe0] ss:$16 sps:$4 sm:$0xff]  }
 0x107   : > { %1134 = vmatmul.mubr.bf16.gmra.mrb[44].mxu0 %v575_v47  ;;  %v396_v47 = vld [vmem:[%s4210_s6 + $0x3c8] sm:$0xff] }
 0x108   : > { %1143 = vmatprep.mubr.bf16.mxu0 %v580_v50  ;;  %v400_v50 = vld [vmem:[%s4210_s6 + $0x3e8] sm:$0xff] }
 0x109   : > { %v592_v49 = vpack.c.bf16 %v400_v50, %v396_v47  ;;  %v545_v47 = vpack.c.bf16 %v4326_v43, %v4323_v42  ;;  %v3423_v50 = vld [vmem:[#allocation7 + $0x104] ss:$16 sps:$4 sm:$0xff]   ;;  %v554_v43 = vpack.c.bf16 %v4368_v31, %v4365_v30  ;;  %v3437_v31 = vld [vmem:[#allocation7 + $0x180] ss:$16 sps:$4 sm:$0xff]  }
 0x10a   : > { %v3429_v42 = vld [vmem:[#allocation7 + $0x144] ss:$16 sps:$4 sm:$0xff]  }
 0x10f   : > { %1144 = vmatmul.mubr.bf16.gmra.mrb[48].mxu0 %v579_v5  ;;  %v3399_v5 = vld [vmem:[#allocation7 + $0x4] ss:$16 sps:$4 sm:$0xff]  }
 0x110   : > { %1153 = vmatprep.mubr.bf16.mxu0 %v584_v8  ;;  %v3401_v8 = vld [vmem:[#allocation7] ss:$16 sps:$4 sm:$0xff]   ;;  %1943 = vmatprep.subr.bf16.mxu1 %v3399_v5 }
 0x111   : > { %1944 = vmatpush1.bf16.msra.mxu1 %v3401_v8  ;;  %v325_v5 = vld [vmem:[%s4210_s6 + $0x190] sm:$0xff] }
 0x112   : > { %1945 = vmatprep.subr.bf16.mxu1 %v3402_v9  ;;  %v329_v8 = vld [vmem:[%s4210_s6 + $0x1b0] sm:$0xff]  ;;  %v334_v9 = vld [vmem:[%s4210_s6 + $0x1d8] sm:$0xff] }
 0x113   : > { %v557_v35 = vpack.c.bf16 %v329_v8, %v325_v5  ;;  %v382_v5 = vld [vmem:[%s4210_s6 + $0x358] sm:$0xff] }
 0x114   : > { %v386_v8 = vld [vmem:[%s4210_s6 + $0x378] sm:$0xff] }
 0x115   : > { %1946 = vmatpush1.bf16.msra.mxu1 %v3404_v10  ;;  %v338_v10 = vld [vmem:[%s4210_s6 + $0x1f8] sm:$0xff] }
 0x116   : > { %v562_v36 = vpack.c.bf16 %v338_v10, %v334_v9  ;;  %v3444_v9 = vld [vmem:[#allocation7 + $0x1e4] ss:$16 sps:$4 sm:$0xff]   ;;  %v3446_v10 = vld [vmem:[#allocation7 + $0x1e0] ss:$16 sps:$4 sm:$0xff]  }
 0x117   : > { %1154 = vmatmul.mubr.bf16.gmra.mrb[52].mxu0 %v583_v29  ;;  %v537_v29 = vpack.c.bf16 %v4270_v63, %v4267_v62  ;;  %v546_v62 = vpack.c.bf16 %v4314_v39, %v4311_v38  ;;  %v3419_v63 = vld [vmem:[#allocation7 + $0xc0] ss:$16 sps:$4 sm:$0xff]   ;;  %v3426_v38 = vld [vmem:[#allocation7 + $0x124] ss:$16 sps:$4 sm:$0xff]  }
 0x118   : > { %1163 = vmatprep.mubr.bf16.mxu0 %v588_v32  ;;  %v3411_v32 = vld [vmem:[#allocation7 + $0x84] ss:$16 sps:$4 sm:$0xff]   ;;  %v3428_v39 = vld [vmem:[#allocation7 + $0x120] ss:$16 sps:$4 sm:$0xff]  }
 0x11f   : > { %1164 = vmatmul.mubr.bf16.gmra.mrb[56].mxu0 %v587_v34  ;;  %v3405_v34 = vld [vmem:[#allocation7 + $0x44] ss:$16 sps:$4 sm:$0xff]  }
 0x120   : > { %1173 = vmatprep.mubr.bf16.mxu0 %v592_v49  ;;  %v538_v49 = vpack.c.bf16 %v4258_v59, %v4255_v58  ;;  %1947 = vmatprep.subr.bf16.mxu1 %v3405_v34  ;;  %v3414_v58 = vld [vmem:[#allocation7 + $0xa4] ss:$16 sps:$4 sm:$0xff]   ;;  %v3416_v59 = vld [vmem:[#allocation7 + $0xa0] ss:$16 sps:$4 sm:$0xff]  }
 0x121   : > { %1948 = vmatpush1.bf16.msra.mxu1 %v3407_v28  ;;  %v337_v34 = vld [vmem:[%s4210_s6 + $0x1f0] sm:$0xff]  ;;  %v346_v28 = vld [vmem:[%s4210_s6 + $0x238] sm:$0xff] }
 0x122   : > { %1949 = vmatprep.subr.bf16.mxu1 %v3408_v15 }
 0x125   : > { %1950 = vmatpush1.bf16.msra.mxu1 %v3410_v17 }
 0x126   : > { %1951 = vmatprep.subr.bf16.mxu1 %v3411_v32  ;;  %v345_v32 = vld [vmem:[%s4210_s6 + $0x230] sm:$0xff] }
 0x127   : > { %1174 = vmatmul.mubr.bf16.gmra.mrb[60].mxu0 %v591_v3  ;;  %v330_v3 = vld [vmem:[%s4210_s6 + $0x1b8] sm:$0xff] }
 0x128   : > { %1216 = vmatprep.mubr.bf16.mxu0 %v534_v4  ;;  %v3434_v4 = vld [vmem:[#allocation7 + $0x160] ss:$16 sps:$4 sm:$0xff]   ;;  %v558_v30 = vpack.c.bf16 %v330_v3, %v326_v52 }
 0x129   : > { %1952 = vmatpush1.bf16.msra.mxu1 %v3413_v24  ;;  %v354_v24 = vld [vmem:[%s4210_s6 + $0x278] sm:$0xff]  ;;  %v3440_v52 = vld [vmem:[#allocation7 + $0x1a0] ss:$16 sps:$4 sm:$0xff]  }
 0x12a   : > { %1953 = vmatprep.subr.bf16.mxu1 %v3414_v58 }
 0x12d   : > { %1954 = vmatpush1.bf16.msra.mxu1 %v3416_v59 }
 0x12e   : > { %1955 = vmatprep.subr.bf16.mxu1 %v3417_v46  ;;  %v353_v46 = vld [vmem:[%s4210_s6 + $0x270] sm:$0xff] }
 0x12f   : > { %1217 = vmatmul.mubr.bf16.vlgmr.msra.gmra.mrb[0].mxu0 %v533_v11  ;;  %v333_v11 = vld [vmem:[%s4210_s6 + $0x1d0] sm:$0xff] }
 0x130   : > { %1226 = vmatprep.mubr.bf16.mxu0 %v538_v49  ;;  %v342_v49 = vld [vmem:[%s4210_s6 + $0x218] sm:$0xff]  ;;  %v561_v15 = vpack.c.bf16 %v337_v34, %v333_v11  ;;  %v381_v11 = vld [vmem:[%s4210_s6 + $0x350] sm:$0xff] }
 0x131   : > { %1956 = vmatpush1.bf16.msra.mxu1 %v3419_v63  ;;  %v566_v17 = vpack.c.bf16 %v346_v28, %v342_v49  ;;  %v362_v63 = vld [vmem:[%s4210_s6 + $0x2b8] sm:$0xff]  ;;  %v385_v34 = vld [vmem:[%s4210_s6 + $0x370] sm:$0xff] }
 0x132   : > { %1957 = vmatprep.subr.bf16.mxu1 %v3420_v12  ;;  %v390_v49 = vld [vmem:[%s4210_s6 + $0x398] sm:$0xff] }
 0x133   : > { %v394_v28 = vld [vmem:[%s4210_s6 + $0x3b8] sm:$0xff] }
 0x135   : > { %1958 = vmatpush1.bf16.msra.mxu1 %v3422_v13 }
 0x136   : > { %1959 = vmatprep.subr.bf16.mxu1 %v3423_v50  ;;  %v361_v50 = vld [vmem:[%s4210_s6 + $0x2b0] sm:$0xff] }
 0x137   : > { %1227 = vmatmul.mubr.bf16.gmra.mrb[4].mxu0 %v537_v29  ;;  %v341_v29 = vld [vmem:[%s4210_s6 + $0x210] sm:$0xff] }
 0x138   : > { %1236 = vmatprep.mubr.bf16.mxu0 %v542_v22  ;;  %v350_v22 = vld [vmem:[%s4210_s6 + $0x258] sm:$0xff]  ;;  %v565_v58 = vpack.c.bf16 %v345_v32, %v341_v29  ;;  %v590_v29 = vpack.c.bf16 %v394_v28, %v390_v49  ;;  %v389_v32 = vld [vmem:[%s4210_s6 + $0x390] sm:$0xff] }
 0x139   : > { %1960 = vmatpush1.bf16.msra.mxu1 %v3425_v21  ;;  %v570_v59 = vpack.c.bf16 %v354_v24, %v350_v22  ;;  %v370_v21 = vld [vmem:[%s4210_s6 + $0x2f8] sm:$0xff]  ;;  %v393_v22 = vld [vmem:[%s4210_s6 + $0x3b0] sm:$0xff] }
 0x13a   : > { %1961 = vmatprep.subr.bf16.mxu1 %v3426_v38  ;;  %v398_v24 = vld [vmem:[%s4210_s6 + $0x3d8] sm:$0xff] }
 0x13d   : > { %1962 = vmatpush1.bf16.msra.mxu1 %v3428_v39 }
 0x13e   : > { %1963 = vmatprep.subr.bf16.mxu1 %v3429_v42  ;;  %v369_v42 = vld [vmem:[%s4210_s6 + $0x2f0] sm:$0xff] }
 0x13f   : > { %1237 = vmatmul.mubr.bf16.gmra.mrb[8].mxu0 %v541_v37  ;;  %v349_v37 = vld [vmem:[%s4210_s6 + $0x250] sm:$0xff] }
 0x140   : > { %1246 = vmatprep.mubr.bf16.mxu0 %v546_v62  ;;  %v358_v62 = vld [vmem:[%s4210_s6 + $0x298] sm:$0xff]  ;;  %v569_v12 = vpack.c.bf16 %v353_v46, %v349_v37  ;;  %v397_v46 = vld [vmem:[%s4210_s6 + $0x3d0] sm:$0xff] }
 0x141   : > { %1964 = vmatpush1.bf16.msra.mxu1 %v3431_v53  ;;  %v574_v13 = vpack.c.bf16 %v362_v63, %v358_v62  ;;  %v378_v53 = vld [vmem:[%s4210_s6 + $0x338] sm:$0xff]  ;;  %v401_v62 = vld [vmem:[%s4210_s6 + $0x3f0] sm:$0xff] }
 0x142   : > { %1965 = vmatprep.subr.bf16.mxu1 %v3432_v54  ;;  %v3438_v54 = vld [vmem:[#allocation7 + $0x1a4] ss:$16 sps:$4 sm:$0xff]   ;;  %v593_v63 = vpack.c.bf16 %v401_v62, %v397_v46  ;;  %v3450_v46 = vld [vmem:[#allocation7 + $0x28] ss:$16 sps:$4 sm:$0xff]  }
 0x145   : > { %1966 = vmatpush1.bf16.msra.mxu1 %v3434_v4 }
 0x146   : > { %1967 = vmatprep.subr.bf16.mxu1 %v3435_v2  ;;  %v3443_v2 = vld [vmem:[#allocation7 + $0x1c0] ss:$16 sps:$4 sm:$0xff]  }
 0x147   : > { %1247 = vmatmul.mubr.bf16.gmra.mrb[12].mxu0 %v545_v47  ;;  %v357_v47 = vld [vmem:[%s4210_s6 + $0x290] sm:$0xff] }
 0x148   : > { %1256 = vmatprep.mubr.bf16.mxu0 %v550_v19  ;;  %v366_v19 = vld [vmem:[%s4210_s6 + $0x2d8] sm:$0xff]  ;;  %v573_v38 = vpack.c.bf16 %v361_v50, %v357_v47  ;;  %v659_v50 = vld [vmem:[%s5512_s2] sm:$0x3] }
 0x149   : > { %1968 = vmatpush1.bf16.msra.mxu1 %v3437_v31  ;;  %v578_v39 = vpack.c.bf16 %v370_v21, %v366_v19  ;;  %v377_v31 = vld [vmem:[%s4210_s6 + $0x330] sm:$0xff] }
 0x14a   : > { %1969 = vmatprep.subr.bf16.mxu1 %v3438_v54 }
 0x14d   : > { %1970 = vmatpush1.bf16.msra.mxu1 %v3440_v52 }
 0x14f   : > { %1257 = vmatmul.mubr.bf16.gmra.mrb[16].mxu0 %v549_v51  ;;  %v365_v51 = vld [vmem:[%s4210_s6 + $0x2d0] sm:$0xff] }
 0x150   : > { %1266 = vmatprep.mubr.bf16.mxu0 %v554_v43  ;;  %v374_v43 = vld [vmem:[%s4210_s6 + $0x318] sm:$0xff]  ;;  %v577_v3 = vpack.c.bf16 %v369_v42, %v365_v51 }
 0x151   : > { %v582_v4 = vpack.c.bf16 %v378_v53, %v374_v43 }
 0x157   : > { %1267 = vmatmul.mubr.bf16.gmra.mrb[20].mxu0 %v553_v57  ;;  %v3441_v57 = vld [vmem:[#allocation7 + $0x1c4] ss:$16 sps:$4 sm:$0xff]  }
 0x158   : > { %1276 = vmatprep.mubr.bf16.mxu0 %v558_v30  ;;  %1971 = vmatprep.subr.bf16.mxu1 %v3441_v57  ;;  %v373_v30 = vld [vmem:[%s4210_s6 + $0x310] sm:$0xff] }
 0x159   : > { %1972 = vmatpush1.bf16.msra.mxu1 %v3443_v2 }
 0x15a   : > { %1973 = vmatprep.subr.bf16.mxu1 %v3444_v9 }
 0x15d   : > { %1974 = vmatpush1.bf16.msra.mxu1 %v3446_v10 }
 0x15f   : > { %1277 = vmatmul.mubr.bf16.gmra.mrb[24].mxu0 %v557_v35  ;;  %v581_v35 = vpack.c.bf16 %v377_v31, %v373_v30 }
 0x160   : > { %1286 = vmatprep.mubr.bf16.mxu0 %v562_v36  ;;  %v586_v36 = vpack.c.bf16 %v386_v8, %v382_v5 }
 0x167   : > { %1287 = vmatmul.mubr.bf16.gmra.mrb[28].mxu0 %v561_v15  ;;  %v3449_v15 = vld [vmem:[#allocation7 + $0xc] ss:$16 sps:$4 sm:$0xff]  }
 0x168   : > { %1296 = vmatprep.mubr.bf16.mxu0 %v566_v17  ;;  %v585_v17 = vpack.c.bf16 %v385_v34, %v381_v11  ;;  %2136 = vmatprep.subr.bf16.mxu1 %v3449_v15  ;;  %v3447_v15 = vld [vmem:[#allocation7 + $0x8] ss:$16 sps:$4 sm:$0xff]  }
 0x16f   : > { %1297 = vmatmul.mubr.bf16.gmra.mrb[32].mxu0 %v565_v58  ;;  %v402_v58 = vld [vmem:[%s4210_s6 + $0x3f8] sm:$0xff] }
 0x170   : > { %1306 = vmatprep.mubr.bf16.mxu0 %v570_v59  ;;  %v589_v59 = vpack.c.bf16 %v393_v22, %v389_v32  ;;  %v594_v37 = vpack.c.bf16 %v402_v58, %v398_v24  ;;  %v3452_v22 = vld [vmem:[#allocation7 + $0x2c] ss:$16 sps:$4 sm:$0xff]  }
 0x177   : > { %1307 = vmatmul.mubr.bf16.gmra.mrb[36].mxu0 %v569_v12  ;;  %v661_v12 = vlaneseq }
 0x178   : > { %1316 = vmatprep.mubr.bf16.mxu0 %v574_v13 }
 0x179   : > { %v4492_v13 = vshrl.u32 %v661_v12, 7  ;;  %v3455_v12 = vld [vmem:[#allocation7 + $0x4c] ss:$16 sps:$4 sm:$0xff]  }
 0x17b   : > { %v5522_v47 = vsub.s32 0, %v4492_v13  ;;  %v5521_v19 = vsub.s32 1, %v4492_v13 }
 0x17d   : > { %v4501_v21 = vrot.slane %v659_v50, %v5522_v47 }
 0x17f   : > { %1317 = vmatmul.mubr.bf16.gmra.mrb[40].mxu0 %v573_v38  ;;  %v4505_v38 = vrot.slane %v659_v50, %v5521_v19 }
 0x180   : > { %1326 = vmatprep.mubr.bf16.mxu0 %v578_v39 }
 0x187   : > { %1327 = vmatmul.mubr.bf16.gmra.mrb[44].mxu0 %v577_v3 }
 0x188   : > { %1336 = vmatprep.mubr.bf16.mxu0 %v582_v4 }
 0x18f   : > { %1337 = vmatmul.mubr.bf16.gmra.mrb[48].mxu0 %v581_v35 }
 0x190   : > { %1346 = vmatprep.mubr.bf16.mxu0 %v586_v36 }
 0x197   : > { %1347 = vmatmul.mubr.bf16.gmra.mrb[52].mxu0 %v585_v17 }
 0x198   : > { %1356 = vmatprep.mubr.bf16.mxu0 %v590_v29 }
 0x19f   : > { %1357 = vmatmul.mubr.bf16.gmra.mrb[56].mxu0 %v589_v59 }
 0x1a0   : > { %1366 = vmatprep.mubr.bf16.mxu0 %v594_v37 }
 0x1a7   : > { %1367 = vmatmul.mubr.bf16.gmra.mrb[60].mxu0 %v593_v63 }
 0x202   : > { %v1218_v39 = vpop.f32.mrb[0].mxu0 }
 0x203   : > { %v3100_v51 = vadd.f32 %v1218_v39, %v4501_v21  ;;  %v1220_v42 = vpop.f32.mrb[1].mxu0 }
 0x204   : > { %v3101_v43 = vadd.f32 %v1220_v42, %v4505_v38  ;;  %v1222_v53 = vpop.f32.mrb[2].mxu0 }
 0x205   : > { %v1377_v54 = vmul.f32 0.01, %v3100_v51  ;;  %v3102_v52 = vadd.f32 %v1222_v53, %v4501_v21  ;;  %v1224_v3 = vpop.f32.mrb[3].mxu0 }
 0x206   : > { %v1378_v4 = vmul.f32 0.01, %v3101_v43  ;;  %v3103_v57 = vadd.f32 %v1224_v3, %v4505_v38 }
 0x207   : > { %v1379_v2 = vmul.f32 0.01, %v3102_v52  ;;  %v1441_v31 = vmax.f32 %v3100_v51, %v1377_v54 }
 0x208   : > { %v1380_v30 = vmul.f32 0.01, %v3103_v57  ;;  %v1442_v8 = vmax.f32 %v3101_v43, %v1378_v4  ;;  %v3453_v4 = vld [vmem:[#allocation7 + $0x48] ss:$16 sps:$4 sm:$0xff]  }
 0x209   : > { %v1443_v5 = vmax.f32 %v3102_v52, %v1379_v2 }
 0x20a   : > { %v1444_v9 = vmax.f32 %v3103_v57, %v1380_v30  ;;  %v1228_v10 = vpop.f32.mrb[4].mxu0 }
 0x20b   : > { %v3104_v35 = vadd.f32 %v1228_v10, %v4501_v21  ;;  %v1230_v36 = vpop.f32.mrb[5].mxu0  ;;  %v4512_v11 = vpack.c.bf16 %v1443_v5, %v1441_v31  ;;  %v3458_v31 = vld [vmem:[#allocation7 + $0x6c] ss:$16 sps:$4 sm:$0xff]  }
 0x20c   : > { %v3105_v34 = vadd.f32 %v1230_v36, %v4505_v38  ;;  %v1232_v49 = vpop.f32.mrb[6].mxu0  ;;  %v4515_v28 = vpack.c.bf16 %v1444_v9, %v1442_v8 }
 0x20d   : > { %v1381_v17 = vmul.f32 0.01, %v3104_v35  ;;  %v3106_v29 = vadd.f32 %v1232_v49, %v4501_v21  ;;  %v1234_v32 = vpop.f32.mrb[7].mxu0  ;;  %v3461_v49 = vld [vmem:[#allocation7 + $0x8c] ss:$16 sps:$4 sm:$0xff]  }
 0x20e   : > { %v1382_v24 = vmul.f32 0.01, %v3105_v34  ;;  %v3107_v58 = vadd.f32 %v1234_v32, %v4505_v38  ;;  %1975 = vmatprep.mubr.bf16.mxu1 %v4515_v28 }
 0x20f   : > { %v1383_v59 = vmul.f32 0.01, %v3106_v29  ;;  %1976 = vmatmul.mubr.bf16.vlgmr.msra.gmra.mrb[0].mxu1 %v4512_v11  ;;  %v1445_v62 = vmax.f32 %v3104_v35, %v1381_v17  ;;  %v3456_v35 = vld [vmem:[#allocation7 + $0x68] ss:$16 sps:$4 sm:$0xff]  }
 0x210   : > { %v1384_v37 = vmul.f32 0.01, %v3107_v58  ;;  %2137 = vmatpush1.bf16.msra.mxu1 %v3447_v15  ;;  %v1446_v50 = vmax.f32 %v3105_v34, %v1382_v24 }
 0x211   : > { %v1447_v63 = vmax.f32 %v3106_v29, %v1383_v59  ;;  %2138 = vmatprep.subr.bf16.mxu1 %v3452_v22 }
 0x212   : > { %v1448_v39 = vmax.f32 %v3107_v58, %v1384_v37  ;;  %v1238_v51 = vpop.f32.mrb[8].mxu0 }
 0x213   : > { %v3108_v42 = vadd.f32 %v1238_v51, %v4501_v21  ;;  %v1240_v43 = vpop.f32.mrb[9].mxu0  ;;  %v4522_v53 = vpack.c.bf16 %v1447_v63, %v1445_v62 }
 0x214   : > { %v3109_v54 = vadd.f32 %v1240_v43, %v4505_v38  ;;  %v1242_v52 = vpop.f32.mrb[10].mxu0  ;;  %v4525_v3 = vpack.c.bf16 %v1448_v39, %v1446_v50  ;;  %2139 = vmatpush1.bf16.msra.mxu1 %v3450_v46  ;;  %v3459_v46 = vld [vmem:[#allocation7 + $0x88] ss:$16 sps:$4 sm:$0xff]   ;;  %v3464_v50 = vld [vmem:[#allocation7 + $0xac] ss:$16 sps:$4 sm:$0xff]  }
 0x215   : > { %v1385_v57 = vmul.f32 0.01, %v3108_v42  ;;  %v3110_v2 = vadd.f32 %v1242_v52, %v4501_v21  ;;  %v1244_v30 = vpop.f32.mrb[11].mxu0  ;;  %2140 = vmatprep.subr.bf16.mxu1 %v3455_v12 }
 0x216   : > { %v1386_v5 = vmul.f32 0.01, %v3109_v54  ;;  %v3111_v8 = vadd.f32 %v1244_v30, %v4505_v38  ;;  %1985 = vmatprep.mubr.bf16.mxu1 %v4525_v3 }
 0x217   : > { %v1387_v9 = vmul.f32 0.01, %v3110_v2  ;;  %1986 = vmatmul.mubr.bf16.gmra.mrb[4].mxu1 %v4522_v53  ;;  %v1449_v36 = vmax.f32 %v3108_v42, %v1385_v57  ;;  %v3467_v57 = vld [vmem:[#allocation7 + $0xcc] ss:$16 sps:$4 sm:$0xff]  }
 0x218   : > { %v1388_v10 = vmul.f32 0.01, %v3111_v8  ;;  %2141 = vmatpush1.bf16.msra.mxu1 %v3453_v4  ;;  %v1450_v15 = vmax.f32 %v3109_v54, %v1386_v5  ;;  %v3462_v54 = vld [vmem:[#allocation7 + $0xa8] ss:$16 sps:$4 sm:$0xff]  }
 0x219   : > { %v1451_v34 = vmax.f32 %v3110_v2, %v1387_v9  ;;  %2142 = vmatprep.subr.bf16.mxu1 %v3458_v31 }
 0x21a   : > { %v1452_v17 = vmax.f32 %v3111_v8, %v1388_v10  ;;  %v1248_v29 = vpop.f32.mrb[12].mxu0 }
 0x21b   : > { %v3112_v32 = vadd.f32 %v1248_v29, %v4501_v21  ;;  %v1250_v22 = vpop.f32.mrb[13].mxu0  ;;  %v4532_v24 = vpack.c.bf16 %v1451_v34, %v1449_v36  ;;  %v3465_v34 = vld [vmem:[#allocation7 + $0xc8] ss:$16 sps:$4 sm:$0xff]   ;;  %v3470_v29 = vld [vmem:[#allocation7 + $0xec] ss:$16 sps:$4 sm:$0xff]  }
 0x21c   : > { %v3113_v58 = vadd.f32 %v1250_v22, %v4505_v38  ;;  %v1252_v59 = vpop.f32.mrb[14].mxu0  ;;  %v4535_v37 = vpack.c.bf16 %v1452_v17, %v1450_v15  ;;  %2143 = vmatpush1.bf16.msra.mxu1 %v3456_v35 }
 0x21d   : > { %v1389_v62 = vmul.f32 0.01, %v3112_v32  ;;  %v3114_v63 = vadd.f32 %v1252_v59, %v4501_v21  ;;  %v1254_v12 = vpop.f32.mrb[15].mxu0  ;;  %2144 = vmatprep.subr.bf16.mxu1 %v3461_v49 }
 0x21e   : > { %v1390_v39 = vmul.f32 0.01, %v3113_v58  ;;  %v3115_v51 = vadd.f32 %v1254_v12, %v4505_v38  ;;  %1995 = vmatprep.mubr.bf16.mxu1 %v4535_v37  ;;  %v3473_v12 = vld [vmem:[#allocation7 + $0x10c] ss:$16 sps:$4 sm:$0xff]  }
 0x21f   : > { %v1391_v42 = vmul.f32 0.01, %v3114_v63  ;;  %1996 = vmatmul.mubr.bf16.gmra.mrb[8].mxu1 %v4532_v24  ;;  %v1453_v52 = vmax.f32 %v3112_v32, %v1389_v62 }
 0x220   : > { %v1392_v43 = vmul.f32 0.01, %v3115_v51  ;;  %2145 = vmatpush1.bf16.msra.mxu1 %v3459_v46  ;;  %v1454_v2 = vmax.f32 %v3113_v58, %v1390_v39  ;;  %v3468_v46 = vld [vmem:[#allocation7 + $0xe8] ss:$16 sps:$4 sm:$0xff]  }
 0x221   : > { %v1455_v4 = vmax.f32 %v3114_v63, %v1391_v42  ;;  %2146 = vmatprep.subr.bf16.mxu1 %v3464_v50 }
 0x222   : > { %v1456_v30 = vmax.f32 %v3115_v51, %v1392_v43  ;;  %v1258_v31 = vpop.f32.mrb[16].mxu0 }
 0x223   : > { %v3116_v5 = vadd.f32 %v1258_v31, %v4501_v21  ;;  %v1260_v8 = vpop.f32.mrb[17].mxu0  ;;  %v4542_v9 = vpack.c.bf16 %v1455_v4, %v1453_v52 }
 0x224   : > { %v3117_v10 = vadd.f32 %v1260_v8, %v4505_v38  ;;  %v1262_v35 = vpop.f32.mrb[18].mxu0  ;;  %v4545_v36 = vpack.c.bf16 %v1456_v30, %v1454_v2  ;;  %2147 = vmatpush1.bf16.msra.mxu1 %v3462_v54  ;;  %v3471_v2 = vld [vmem:[#allocation7 + $0x108] ss:$16 sps:$4 sm:$0xff]   ;;  %v3476_v8 = vld [vmem:[#allocation7 + $0x12c] ss:$16 sps:$4 sm:$0xff]  }
 0x225   : > { %v1393_v49 = vmul.f32 0.01, %v3116_v5  ;;  %v3118_v15 = vadd.f32 %v1262_v35, %v4501_v21  ;;  %v1264_v17 = vpop.f32.mrb[19].mxu0  ;;  %2148 = vmatprep.subr.bf16.mxu1 %v3467_v57 }
 0x226   : > { %v1394_v32 = vmul.f32 0.01, %v3117_v10  ;;  %v3119_v22 = vadd.f32 %v1264_v17, %v4505_v38  ;;  %2005 = vmatprep.mubr.bf16.mxu1 %v4545_v36 }
 0x227   : > { %v1395_v58 = vmul.f32 0.01, %v3118_v15  ;;  %2006 = vmatmul.mubr.bf16.gmra.mrb[12].mxu1 %v4542_v9  ;;  %v1457_v62 = vmax.f32 %v3116_v5, %v1393_v49 }
 0x228   : > { %v1396_v59 = vmul.f32 0.01, %v3119_v22  ;;  %2149 = vmatpush1.bf16.msra.mxu1 %v3465_v34  ;;  %v1458_v50 = vmax.f32 %v3117_v10, %v1394_v32  ;;  %v3479_v32 = vld [vmem:[#allocation7 + $0x14c] ss:$16 sps:$4 sm:$0xff]  }
 0x229   : > { %v1459_v63 = vmax.f32 %v3118_v15, %v1395_v58  ;;  %2150 = vmatprep.subr.bf16.mxu1 %v3470_v29  ;;  %v3474_v15 = vld [vmem:[#allocation7 + $0x128] ss:$16 sps:$4 sm:$0xff]  }
 0x22a   : > { %v1460_v39 = vmax.f32 %v3119_v22, %v1396_v59  ;;  %v1268_v51 = vpop.f32.mrb[20].mxu0 }
 0x22b   : > { %v3120_v42 = vadd.f32 %v1268_v51, %v4501_v21  ;;  %v1270_v43 = vpop.f32.mrb[21].mxu0  ;;  %v4552_v54 = vpack.c.bf16 %v1459_v63, %v1457_v62  ;;  %v3477_v51 = vld [vmem:[#allocation7 + $0x148] ss:$16 sps:$4 sm:$0xff]  }
 0x22c   : > { %v3121_v52 = vadd.f32 %v1270_v43, %v4505_v38  ;;  %v1272_v4 = vpop.f32.mrb[22].mxu0  ;;  %v4555_v57 = vpack.c.bf16 %v1460_v39, %v1458_v50  ;;  %2151 = vmatpush1.bf16.msra.mxu1 %v3468_v46 }
 0x22d   : > { %v1397_v30 = vmul.f32 0.01, %v3120_v42  ;;  %v3122_v31 = vadd.f32 %v1272_v4, %v4501_v21  ;;  %v1274_v5 = vpop.f32.mrb[23].mxu0  ;;  %2152 = vmatprep.subr.bf16.mxu1 %v3473_v12 }
 0x22e   : > { %v1398_v10 = vmul.f32 0.01, %v3121_v52  ;;  %v3123_v35 = vadd.f32 %v1274_v5, %v4505_v38  ;;  %2015 = vmatprep.mubr.bf16.mxu1 %v4555_v57 }
 0x22f   : > { %v1399_v34 = vmul.f32 0.01, %v3122_v31  ;;  %2016 = vmatmul.mubr.bf16.gmra.mrb[16].mxu1 %v4552_v54  ;;  %v1461_v17 = vmax.f32 %v3120_v42, %v1397_v30 }
 0x230   : > { %v1400_v49 = vmul.f32 0.01, %v3123_v35  ;;  %2153 = vmatpush1.bf16.msra.mxu1 %v3471_v2  ;;  %v1462_v22 = vmax.f32 %v3121_v52, %v1398_v10  ;;  %v3482_v52 = vld [vmem:[#allocation7 + $0x16c] ss:$16 sps:$4 sm:$0xff]  }
 0x231   : > { %v1463_v29 = vmax.f32 %v3122_v31, %v1399_v34  ;;  %2154 = vmatprep.subr.bf16.mxu1 %v3476_v8  ;;  %v3480_v8 = vld [vmem:[#allocation7 + $0x168] ss:$16 sps:$4 sm:$0xff]   ;;  %v3485_v34 = vld [vmem:[#allocation7 + $0x18c] ss:$16 sps:$4 sm:$0xff]  }
 0x232   : > { %v1464_v58 = vmax.f32 %v3123_v35, %v1400_v49  ;;  %v1278_v59 = vpop.f32.mrb[24].mxu0 }
 0x233   : > { %v3124_v46 = vadd.f32 %v1278_v59, %v4501_v21  ;;  %v1280_v62 = vpop.f32.mrb[25].mxu0  ;;  %v4562_v63 = vpack.c.bf16 %v1463_v29, %v1461_v17 }
 0x234   : > { %v3125_v12 = vadd.f32 %v1280_v62, %v4505_v38  ;;  %v1282_v50 = vpop.f32.mrb[26].mxu0  ;;  %v4565_v39 = vpack.c.bf16 %v1464_v58, %v1462_v22  ;;  %2155 = vmatpush1.bf16.msra.mxu1 %v3474_v15 }
 0x235   : > { %v1401_v43 = vmul.f32 0.01, %v3124_v46  ;;  %v3126_v42 = vadd.f32 %v1282_v50, %v4501_v21  ;;  %v1284_v4 = vpop.f32.mrb[27].mxu0  ;;  %2156 = vmatprep.subr.bf16.mxu1 %v3479_v32  ;;  %v3483_v50 = vld [vmem:[#allocation7 + $0x188] ss:$16 sps:$4 sm:$0xff]  }
 0x236   : > { %v1402_v2 = vmul.f32 0.01, %v3125_v12  ;;  %v3127_v30 = vadd.f32 %v1284_v4, %v4505_v38  ;;  %2025 = vmatprep.mubr.bf16.mxu1 %v4565_v39 }
 0x237   : > { %v1403_v31 = vmul.f32 0.01, %v3126_v42  ;;  %2026 = vmatmul.mubr.bf16.gmra.mrb[20].mxu1 %v4562_v63  ;;  %v1465_v10 = vmax.f32 %v3124_v46, %v1401_v43 }
 0x238   : > { %v1404_v5 = vmul.f32 0.01, %v3127_v30  ;;  %2157 = vmatpush1.bf16.msra.mxu1 %v3477_v51  ;;  %v1466_v49 = vmax.f32 %v3125_v12, %v1402_v2  ;;  %v3488_v12 = vld [vmem:[#allocation7 + $0x1ac] ss:$16 sps:$4 sm:$0xff]  }
 0x239   : > { %v1467_v35 = vmax.f32 %v3126_v42, %v1403_v31  ;;  %2158 = vmatprep.subr.bf16.mxu1 %v3482_v52 }
 0x23a   : > { %v1468_v15 = vmax.f32 %v3127_v30, %v1404_v5  ;;  %v1288_v17 = vpop.f32.mrb[28].mxu0  ;;  %v3486_v30 = vld [vmem:[#allocation7 + $0x1a8] ss:$16 sps:$4 sm:$0xff]  }
 0x23b   : > { %v3128_v29 = vadd.f32 %v1288_v17, %v4501_v21  ;;  %v1290_v32 = vpop.f32.mrb[29].mxu0  ;;  %v4572_v22 = vpack.c.bf16 %v1467_v35, %v1465_v10 }
 0x23c   : > { %v3129_v58 = vadd.f32 %v1290_v32, %v4505_v38  ;;  %v1292_v59 = vpop.f32.mrb[30].mxu0  ;;  %v4575_v62 = vpack.c.bf16 %v1468_v15, %v1466_v49  ;;  %2159 = vmatpush1.bf16.msra.mxu1 %v3480_v8  ;;  %v3491_v8 = vld [vmem:[#allocation7 + $0x1cc] ss:$16 sps:$4 sm:$0xff]  }
 0x23d   : > { %v1405_v51 = vmul.f32 0.01, %v3128_v29  ;;  %v3130_v46 = vadd.f32 %v1292_v59, %v4501_v21  ;;  %v1294_v43 = vpop.f32.mrb[31].mxu0  ;;  %2160 = vmatprep.subr.bf16.mxu1 %v3485_v34 }
 0x23e   : > { %v1406_v42 = vmul.f32 0.01, %v3129_v58  ;;  %v3131_v4 = vadd.f32 %v1294_v43, %v4505_v38  ;;  %2035 = vmatprep.mubr.bf16.mxu1 %v4575_v62 }
 0x23f   : > { %v1407_v52 = vmul.f32 0.01, %v3130_v46  ;;  %2036 = vmatmul.mubr.bf16.gmra.mrb[24].mxu1 %v4572_v22  ;;  %v1469_v31 = vmax.f32 %v3128_v29, %v1405_v51 }
 0x240   : > { %v1408_v2 = vmul.f32 0.01, %v3131_v4  ;;  %2161 = vmatpush1.bf16.msra.mxu1 %v3483_v50  ;;  %v1470_v10 = vmax.f32 %v3129_v58, %v1406_v42  ;;  %v3489_v50 = vld [vmem:[#allocation7 + $0x1c8] ss:$16 sps:$4 sm:$0xff]   ;;  %v3494_v58 = vld [vmem:[#allocation7 + $0x1ec] ss:$16 sps:$4 sm:$0xff]  }
 0x241   : > { %v1471_v5 = vmax.f32 %v3130_v46, %v1407_v52  ;;  %2162 = vmatprep.subr.bf16.mxu1 %v3488_v12  ;;  %v3492_v52 = vld [vmem:[#allocation7 + $0x1e8] ss:$16 sps:$4 sm:$0xff]  }
 0x242   : > { %v1472_v35 = vmax.f32 %v3131_v4, %v1408_v2  ;;  %v1298_v49 = vpop.f32.mrb[32].mxu0 }
 0x243   : > { %v3132_v34 = vadd.f32 %v1298_v49, %v4501_v21  ;;  %v1300_v15 = vpop.f32.mrb[33].mxu0  ;;  %v4582_v17 = vpack.c.bf16 %v1471_v5, %v1469_v31 }
 0x244   : > { %v3133_v32 = vadd.f32 %v1300_v15, %v4505_v38  ;;  %v1302_v59 = vpop.f32.mrb[34].mxu0  ;;  %v4585_v43 = vpack.c.bf16 %v1472_v35, %v1470_v10  ;;  %2163 = vmatpush1.bf16.msra.mxu1 %v3486_v30 }
 0x245   : > { %v1409_v19 = vmul.f32 0.01, %v3132_v34  ;;  %v3134_v29 = vadd.f32 %v1302_v59, %v4501_v21  ;;  %v1304_v51 = vpop.f32.mrb[35].mxu0  ;;  %2164 = vmatprep.subr.bf16.mxu1 %v3491_v8 }
 0x246   : > { %v1410_v46 = vmul.f32 0.01, %v3133_v32  ;;  %v3135_v12 = vadd.f32 %v1304_v51, %v4505_v38  ;;  %2045 = vmatprep.mubr.bf16.mxu1 %v4585_v43 }
 0x247   : > { %v1411_v42 = vmul.f32 0.01, %v3134_v29  ;;  %2046 = vmatmul.mubr.bf16.gmra.mrb[28].mxu1 %v4582_v17  ;;  %v1473_v2 = vmax.f32 %v3132_v34, %v1409_v19 }
 0x248   : > { %v1412_v4 = vmul.f32 0.01, %v3135_v12  ;;  %2165 = vmatpush1.bf16.msra.mxu1 %v3489_v50  ;;  %v1474_v31 = vmax.f32 %v3133_v32, %v1410_v46 }
 0x249   : > { %v1475_v30 = vmax.f32 %v3134_v29, %v1411_v42  ;;  %2166 = vmatprep.subr.bf16.mxu1 %v3494_v58 }
 0x24a   : > { %v1476_v5 = vmax.f32 %v3135_v12, %v1412_v4  ;;  %v1308_v10 = vpop.f32.mrb[36].mxu0 }
 0x24b   : > { %v3136_v8 = vadd.f32 %v1308_v10, %v4501_v21  ;;  %v1310_v35 = vpop.f32.mrb[37].mxu0  ;;  %v4592_v49 = vpack.c.bf16 %v1475_v30, %v1473_v2 }
 0x24c   : > { %v3137_v15 = vadd.f32 %v1310_v35, %v4505_v38  ;;  %v1312_v59 = vpop.f32.mrb[38].mxu0  ;;  %v4595_v51 = vpack.c.bf16 %v1476_v5, %v1474_v31  ;;  %2167 = vmatpush1.bf16.msra.mxu1 %v3492_v52 }
 0x24d   : > { %v1413_v47 = vmul.f32 0.01, %v3136_v8  ;;  %v3138_v50 = vadd.f32 %v1312_v59, %v4501_v21  ;;  %v1314_v19 = vpop.f32.mrb[39].mxu0 }
 0x24e   : > { %v1414_v34 = vmul.f32 0.01, %v3137_v15  ;;  %v3139_v32 = vadd.f32 %v1314_v19, %v4505_v38  ;;  %2055 = vmatprep.mubr.bf16.mxu1 %v4595_v51 }
 0x24f   : > { %v1415_v29 = vmul.f32 0.01, %v3138_v50  ;;  %2056 = vmatmul.mubr.bf16.gmra.mrb[32].mxu1 %v4592_v49  ;;  %v1477_v46 = vmax.f32 %v3136_v8, %v1413_v47 }
 0x250   : > { %v1416_v58 = vmul.f32 0.01, %v3139_v32  ;;  %v1478_v42 = vmax.f32 %v3137_v15, %v1414_v34 }
 0x251   : > { %v1479_v12 = vmax.f32 %v3138_v50, %v1415_v29 }
 0x252   : > { %v1480_v4 = vmax.f32 %v3139_v32, %v1416_v58  ;;  %v1318_v2 = vpop.f32.mrb[40].mxu0 }
 0x253   : > { %v3140_v52 = vadd.f32 %v1318_v2, %v4501_v21  ;;  %v1320_v30 = vpop.f32.mrb[41].mxu0  ;;  %v4602_v31 = vpack.c.bf16 %v1479_v12, %v1477_v46 }
 0x254   : > { %v3141_v5 = vadd.f32 %v1320_v30, %v4505_v38  ;;  %v1322_v10 = vpop.f32.mrb[42].mxu0  ;;  %v4605_v35 = vpack.c.bf16 %v1480_v4, %v1478_v42 }
 0x255   : > { %v1417_v59 = vmul.f32 0.01, %v3140_v52  ;;  %v3142_v19 = vadd.f32 %v1322_v10, %v4501_v21  ;;  %v1324_v33 = vpop.f32.mrb[43].mxu0 }
 0x256   : > { %v1418_v48 = vmul.f32 0.01, %v3141_v5  ;;  %v3143_v47 = vadd.f32 %v1324_v33, %v4505_v38  ;;  %2065 = vmatprep.mubr.bf16.mxu1 %v4605_v35 }
 0x257   : > { %v1419_v8 = vmul.f32 0.01, %v3142_v19  ;;  %2066 = vmatmul.mubr.bf16.gmra.mrb[36].mxu1 %v4602_v31  ;;  %v1481_v50 = vmax.f32 %v3140_v52, %v1417_v59 }
 0x258   : > { %v1420_v15 = vmul.f32 0.01, %v3143_v47  ;;  %v1482_v32 = vmax.f32 %v3141_v5, %v1418_v48 }
 0x259   : > { %v1483_v34 = vmax.f32 %v3142_v19, %v1419_v8 }
 0x25a   : > { %v1484_v29 = vmax.f32 %v3143_v47, %v1420_v15  ;;  %v1328_v58 = vpop.f32.mrb[44].mxu0 }
 0x25b   : > { %v3144_v46 = vadd.f32 %v1328_v58, %v4501_v21  ;;  %v1330_v12 = vpop.f32.mrb[45].mxu0  ;;  %v4612_v42 = vpack.c.bf16 %v1483_v34, %v1481_v50 }
 0x25c   : > { %v3145_v4 = vadd.f32 %v1330_v12, %v4505_v38  ;;  %v1332_v2 = vpop.f32.mrb[46].mxu0  ;;  %v4615_v33 = vpack.c.bf16 %v1484_v29, %v1482_v32 }
 0x25d   : > { %v1421_v30 = vmul.f32 0.01, %v3144_v46  ;;  %v3146_v10 = vadd.f32 %v1332_v2, %v4501_v21  ;;  %v1334_v56 = vpop.f32.mrb[47].mxu0 }
 0x25e   : > { %v1422_v7 = vmul.f32 0.01, %v3145_v4  ;;  %v3147_v52 = vadd.f32 %v1334_v56, %v4505_v38  ;;  %2075 = vmatprep.mubr.bf16.mxu1 %v4615_v33 }
 0x25f   : > { %v1423_v48 = vmul.f32 0.01, %v3146_v10  ;;  %2076 = vmatmul.mubr.bf16.gmra.mrb[40].mxu1 %v4612_v42  ;;  %v1485_v59 = vmax.f32 %v3144_v46, %v1421_v30 }
 0x260   : > { %v1424_v5 = vmul.f32 0.01, %v3147_v52  ;;  %v1486_v47 = vmax.f32 %v3145_v4, %v1422_v7 }
 0x261   : > { %v1487_v19 = vmax.f32 %v3146_v10, %v1423_v48 }
 0x262   : > { %v1488_v8 = vmax.f32 %v3147_v52, %v1424_v5  ;;  %v1338_v15 = vpop.f32.mrb[48].mxu0 }
 0x263   : > { %v3148_v50 = vadd.f32 %v1338_v15, %v4501_v21  ;;  %v1340_v34 = vpop.f32.mrb[49].mxu0  ;;  %v4622_v32 = vpack.c.bf16 %v1487_v19, %v1485_v59 }
 0x264   : > { %v3149_v29 = vadd.f32 %v1340_v34, %v4505_v38  ;;  %v1342_v58 = vpop.f32.mrb[50].mxu0  ;;  %v4625_v56 = vpack.c.bf16 %v1488_v8, %v1486_v47 }
 0x265   : > { %v1425_v12 = vmul.f32 0.01, %v3148_v50  ;;  %v3150_v2 = vadd.f32 %v1342_v58, %v4501_v21  ;;  %v1344_v55 = vpop.f32.mrb[51].mxu0 }
 0x266   : > { %v1426_v6 = vmul.f32 0.01, %v3149_v29  ;;  %v3151_v46 = vadd.f32 %v1344_v55, %v4505_v38  ;;  %2085 = vmatprep.mubr.bf16.mxu1 %v4625_v56 }
 0x267   : > { %v1427_v7 = vmul.f32 0.01, %v3150_v2  ;;  %2086 = vmatmul.mubr.bf16.gmra.mrb[44].mxu1 %v4622_v32  ;;  %v1489_v30 = vmax.f32 %v3148_v50, %v1425_v12 }
 0x268   : > { %v1428_v4 = vmul.f32 0.01, %v3151_v46  ;;  %v1490_v52 = vmax.f32 %v3149_v29, %v1426_v6 }
 0x269   : > { %v1491_v10 = vmax.f32 %v3150_v2, %v1427_v7 }
 0x26a   : > { %v1492_v48 = vmax.f32 %v3151_v46, %v1428_v4  ;;  %v1348_v5 = vpop.f32.mrb[52].mxu0 }
 0x26b   : > { %v3152_v59 = vadd.f32 %v1348_v5, %v4501_v21  ;;  %v1350_v19 = vpop.f32.mrb[53].mxu0  ;;  %v4632_v47 = vpack.c.bf16 %v1491_v10, %v1489_v30 }
 0x26c   : > { %v3153_v8 = vadd.f32 %v1350_v19, %v4505_v38  ;;  %v1352_v15 = vpop.f32.mrb[54].mxu0  ;;  %v4635_v55 = vpack.c.bf16 %v1492_v48, %v1490_v52 }
 0x26d   : > { %v1429_v34 = vmul.f32 0.01, %v3152_v59  ;;  %v3154_v58 = vadd.f32 %v1352_v15, %v4501_v21  ;;  %v1354_v41 = vpop.f32.mrb[55].mxu0 }
 0x26e   : > { %v1430_v45 = vmul.f32 0.01, %v3153_v8  ;;  %v3155_v50 = vadd.f32 %v1354_v41, %v4505_v38  ;;  %2095 = vmatprep.mubr.bf16.mxu1 %v4635_v55 }
 0x26f   : > { %v1431_v6 = vmul.f32 0.01, %v3154_v58  ;;  %2096 = vmatmul.mubr.bf16.gmra.mrb[48].mxu1 %v4632_v47  ;;  %v1493_v12 = vmax.f32 %v3152_v59, %v1429_v34 }
 0x270   : > { %v1432_v29 = vmul.f32 0.01, %v3155_v50  ;;  %v1494_v46 = vmax.f32 %v3153_v8, %v1430_v45 }
 0x271   : > { %v1495_v2 = vmax.f32 %v3154_v58, %v1431_v6 }
 0x272   : > { %v1496_v7 = vmax.f32 %v3155_v50, %v1432_v29  ;;  %v1358_v4 = vpop.f32.mrb[56].mxu0 }
 0x273   : > { %v3156_v30 = vadd.f32 %v1358_v4, %v4501_v21  ;;  %v1360_v10 = vpop.f32.mrb[57].mxu0  ;;  %v4642_v52 = vpack.c.bf16 %v1495_v2, %v1493_v12 }
 0x274   : > { %v3157_v48 = vadd.f32 %v1360_v10, %v4505_v38  ;;  %v1362_v5 = vpop.f32.mrb[58].mxu0  ;;  %v4645_v41 = vpack.c.bf16 %v1496_v7, %v1494_v46 }
 0x275   : > { %v1433_v19 = vmul.f32 0.01, %v3156_v30  ;;  %v3158_v15 = vadd.f32 %v1362_v5, %v4501_v21  ;;  %v1364_v40 = vpop.f32.mrb[59].mxu0 }
 0x276   : > { %v1434_v44 = vmul.f32 0.01, %v3157_v48  ;;  %v3159_v59 = vadd.f32 %v1364_v40, %v4505_v38  ;;  %2105 = vmatprep.mubr.bf16.mxu1 %v4645_v41 }
 0x277   : > { %v1435_v45 = vmul.f32 0.01, %v3158_v15  ;;  %2106 = vmatmul.mubr.bf16.gmra.mrb[52].mxu1 %v4642_v52  ;;  %v1497_v34 = vmax.f32 %v3156_v30, %v1433_v19 }
 0x278   : > { %v1436_v8 = vmul.f32 0.01, %v3159_v59  ;;  %v1498_v50 = vmax.f32 %v3157_v48, %v1434_v44 }
 0x279   : > { %v1499_v58 = vmax.f32 %v3158_v15, %v1435_v45 }
 0x27a   : > { %v1500_v6 = vmax.f32 %v3159_v59, %v1436_v8  ;;  %v1368_v29 = vpop.f32.mrb[60].mxu0 }
 0x27b   : > { %v3160_v12 = vadd.f32 %v1368_v29, %v4501_v21  ;;  %v1370_v2 = vpop.f32.mrb[61].mxu0  ;;  %v4652_v46 = vpack.c.bf16 %v1499_v58, %v1497_v34 }
 0x27c   : > { %v3161_v7 = vadd.f32 %v1370_v2, %v4505_v38  ;;  %v1372_v4 = vpop.f32.mrb[62].mxu0  ;;  %v4655_v40 = vpack.c.bf16 %v1500_v6, %v1498_v50  ;;  %v5568_v50 = vsub.f32 1.0, %v4246_v27 }
 0x27d   : > { %v1437_v10 = vmul.f32 0.01, %v3160_v12  ;;  %v3162_v5 = vadd.f32 %v1372_v4, %v4501_v21  ;;  %v1374_v16 = vpop.f32.mrb[63].mxu0 }
 0x27e   : > { %v1438_v25 = vmul.f32 0.01, %v3161_v7  ;;  %v3163_v30 = vadd.f32 %v1374_v16, %v4505_v38  ;;  %2115 = vmatprep.mubr.bf16.mxu1 %v4655_v40  ;;  %v1601_v16 = vld [vmem:[%s5514_s4] sm:$0xf]  ;;  %v5632_v38 = vsub.s32 1, %v4492_v13 }
 0x27f   : > { %v1439_v44 = vmul.f32 0.01, %v3162_v5  ;;  %2116 = vmatmul.mubr.bf16.gmra.mrb[56].mxu1 %v4652_v46  ;;  %v1501_v19 = vmax.f32 %v3160_v12, %v1437_v10  ;;  %v5567_v12 = vsub.f32 1.0, %v4233_v20 }
 0x280   : > { %v1440_v48 = vmul.f32 0.01, %v3163_v30  ;;  %v1502_v59 = vmax.f32 %v3161_v7, %v1438_v25  ;;  %v5631_v25 = vsub.s32 0, %v4492_v13 }
 0x281   : > { %v1503_v15 = vmax.f32 %v3162_v5, %v1439_v44 }
 0x282   : > { %v1504_v45 = vmax.f32 %v3163_v30, %v1440_v48  ;;  %v4694_v21 = vrot.slane %v1601_v16, %v5631_v25  ;;  %v5563_v25 = vsub.f32 1.0, %v4273_v0 }
 0x283   : > { %v4661_v8 = vpack.c.bf16 %v1503_v15, %v1501_v19 }
 0x284   : > { %v4663_v34 = vpack.c.bf16 %v1504_v45, %v1502_v59 }
 0x286   : > { %2125 = vmatprep.mubr.bf16.mxu1 %v4663_v34 }
 0x287   : > { %2126 = vmatmul.mubr.bf16.gmra.mrb[60].mxu1 %v4661_v8 }
 0x288   : > { %2168 = vmatprep.mubr.bf16.mxu1 %v4515_v28 }
 0x28f   : > { %2169 = vmatmul.mubr.bf16.vlgmr.msra.gmra.mrb[64].mxu1 %v4512_v11  ;;  %v4699_v11 = vrot.slane %v1601_v16, %v5632_v38 }
 0x290   : > { %2178 = vmatprep.mubr.bf16.mxu1 %v4525_v3 }
 0x297   : > { %2179 = vmatmul.mubr.bf16.gmra.mrb[68].mxu1 %v4522_v53 }
 0x298   : > { %2188 = vmatprep.mubr.bf16.mxu1 %v4535_v37 }
 0x29f   : > { %2189 = vmatmul.mubr.bf16.gmra.mrb[72].mxu1 %v4532_v24 }
 0x2a0   : > { %2198 = vmatprep.mubr.bf16.mxu1 %v4545_v36 }
 0x2a7   : > { %2199 = vmatmul.mubr.bf16.gmra.mrb[76].mxu1 %v4542_v9 }
 0x2a8   : > { %2208 = vmatprep.mubr.bf16.mxu1 %v4555_v57 }
 0x2af   : > { %2209 = vmatmul.mubr.bf16.gmra.mrb[80].mxu1 %v4552_v54 }
 0x2b0   : > { %2218 = vmatprep.mubr.bf16.mxu1 %v4565_v39 }
 0x2b7   : > { %2219 = vmatmul.mubr.bf16.gmra.mrb[84].mxu1 %v4562_v63 }
 0x2b8   : > { %2228 = vmatprep.mubr.bf16.mxu1 %v4575_v62 }
 0x2bf   : > { %2229 = vmatmul.mubr.bf16.gmra.mrb[88].mxu1 %v4572_v22 }
 0x2c0   : > { %2238 = vmatprep.mubr.bf16.mxu1 %v4585_v43 }
 0x2c7   : > { %2239 = vmatmul.mubr.bf16.gmra.mrb[92].mxu1 %v4582_v17 }
 0x2c8   : > { %2248 = vmatprep.mubr.bf16.mxu1 %v4595_v51 }
 0x2cf   : > { %2249 = vmatmul.mubr.bf16.gmra.mrb[96].mxu1 %v4592_v49 }
 0x2d0   : > { %2258 = vmatprep.mubr.bf16.mxu1 %v4605_v35 }
 0x2d7   : > { %2259 = vmatmul.mubr.bf16.gmra.mrb[100].mxu1 %v4602_v31 }
 0x2d8   : > { %2268 = vmatprep.mubr.bf16.mxu1 %v4615_v33  ;;  %v5571_v33 = vsub.f32 1.0, %v4243_v26 }
 0x2df   : > { %2269 = vmatmul.mubr.bf16.gmra.mrb[104].mxu1 %v4612_v42 }
 0x2e0   : > { %2278 = vmatprep.mubr.bf16.mxu1 %v4625_v56 }
 0x2e2   : > { %v1977_v28 = vpop.f32.mrb[0].mxu1 }
 0x2e3   : > { %v1978_v53 = vadd.f32 %v1977_v28, %v4694_v21  ;;  %v1979_v3 = vpop.f32.mrb[1].mxu1 }
 0x2e4   : > { %v1980_v24 = vadd.f32 %v1979_v3, %v4699_v11  ;;  %v1981_v37 = vpop.f32.mrb[2].mxu1 }
 0x2e5   : > { %v2329_v9 = vmul.f32 1.442695, %v1978_v53  ;;  %v1982_v36 = vadd.f32 %v1981_v37, %v4694_v21  ;;  %v1983_v54 = vpop.f32.mrb[3].mxu1  ;;  %v5562_v53 = vsub.f32 1.0, %v4261_v60 }
 0x2e6   : > { %v2331_v57 = vmul.f32 1.442695, %v1980_v24  ;;  %v1984_v63 = vadd.f32 %v1983_v54, %v4699_v11  ;;  %v5560_v24 = vsub.f32 1.0, %v4276_v1 }
 0x2e7   : > { %3495 = vpow2.f32 %v2329_v9  ;;  %v2337_v39 = vmul.f32 1.442695, %v1982_v36  ;;  %2279 = vmatmul.mubr.bf16.gmra.mrb[108].mxu1 %v4622_v32  ;;  %v5559_v36 = vsub.f32 1.0, %v4264_v61 }
 0x2e8   : > { %3497 = vpow2.f32 %v2331_v57  ;;  %v2339_v22 = vmul.f32 1.442695, %v1984_v63  ;;  %2288 = vmatprep.mubr.bf16.mxu1 %v4635_v55  ;;  %v5570_v55 = vsub.f32 1.0, %v4229_v18 }
 0x2e9   : > { %3499 = vpow2.f32 %v2337_v39 }
 0x2ea   : > { %3501 = vpow2.f32 %v2339_v22  ;;  %v1987_v62 = vpop.f32.mrb[4].mxu1 }
 0x2eb   : > { %v1988_v17 = vadd.f32 %v1987_v62, %v4694_v21  ;;  %v1989_v43 = vpop.f32.mrb[5].mxu1 }
 0x2ec   : > { %v1990_v49 = vadd.f32 %v1989_v43, %v4699_v11  ;;  %v1991_v51 = vpop.f32.mrb[6].mxu1 }
 0x2ed   : > { %v2345_v31 = vmul.f32 1.442695, %v1988_v17  ;;  %v1992_v35 = vadd.f32 %v1991_v51, %v4694_v21  ;;  %v1993_v42 = vpop.f32.mrb[7].mxu1 }
 0x2ee   : > { %v2347_v32 = vmul.f32 1.442695, %v1990_v49  ;;  %v1994_v56 = vadd.f32 %v1993_v42, %v4699_v11 }
 0x2ef   : > { %3503 = vpow2.f32 %v2345_v31  ;;  %v2353_v58 = vmul.f32 1.442695, %v1992_v35  ;;  %2289 = vmatmul.mubr.bf16.gmra.mrb[112].mxu1 %v4632_v47 }
 0x2f0   : > { %3505 = vpow2.f32 %v2347_v32  ;;  %v2355_v6 = vmul.f32 1.442695, %v1994_v56  ;;  %2298 = vmatprep.mubr.bf16.mxu1 %v4645_v41  ;;  %v5555_v32 = vsub.f32 1.0, %v4301_v23 }
 0x2f1   : > { %v3496_v29 = vpop.eup %3495  ;;  %3507 = vpow2.f32 %v2353_v58 }
 0x2f2   : > { %v3498_v2 = vpop.eup %3497  ;;  %v2585_v7 = vmul.f32 %v3496_v29, %v5571_v33  ;;  %3509 = vpow2.f32 %v2355_v6  ;;  %v1997_v4 = vpop.f32.mrb[8].mxu1  ;;  %v5554_v6 = vsub.f32 1.0, %v4289_v14  ;;  %v3790_v33 = vld [vmem:[%s4210_s6 + $0x2b8] sm:$0xff] }
 0x2f3   : > { %v3500_v10 = vpop.eup %3499  ;;  %v2586_v47 = vmul.f32 %v3498_v2, %v5570_v55  ;;  %v1998_v5 = vadd.f32 %v1997_v4, %v4694_v21  ;;  %v1999_v30 = vpop.f32.mrb[9].mxu1  ;;  %v5633_v2 = vld [vmem:[#allocation13_spill] sm:$0xff] }
 0x2f4   : > { %v3502_v44 = vpop.eup %3501  ;;  %2649 = vst [vmem:[%s4724_s12] sm:$0xff] %v2585_v7  ;;  %v2587_v41 = vmul.f32 %v3500_v10, %v5568_v50  ;;  %v2000_v48 = vadd.f32 %v1999_v30, %v4699_v11  ;;  %v2001_v19 = vpop.f32.mrb[10].mxu1  ;;  %v5552_v7 = vsub.f32 1.0, %v5633_v2  ;;  %v3787_v50 = vld [vmem:[%s4210_s6 + $0x2a0] sm:$0xff]  ;;  %v3789_v55 = vld [vmem:[%s4210_s6 + $0x2a8] sm:$0xff] }
 0x2f5   : > { %2650 = vst [vmem:[%s4724_s12 + $0x8] sm:$0xff] %v2586_v47  ;;  %v2588_v15 = vmul.f32 %v3502_v44, %v5567_v12  ;;  %v2361_v59 = vmul.f32 1.442695, %v1998_v5  ;;  %v2002_v45 = vadd.f32 %v2001_v19, %v4694_v21  ;;  %v2003_v16 = vpop.f32.mrb[11].mxu1  ;;  %v5634_v47 = vld [vmem:[#allocation12_spill] sm:$0xff] }
 0x2f6   : > { %2651 = vst [vmem:[%s4724_s12 + $0x20] sm:$0xff] %v2587_v41  ;;  %v2363_v38 = vmul.f32 1.442695, %v2000_v48  ;;  %v2004_v28 = vadd.f32 %v2003_v16, %v4699_v11  ;;  %v5551_v5 = vsub.f32 1.0, %v5634_v47 }
 0x2f7   : > { %2652 = vst [vmem:[%s4724_s12 + $0x28] sm:$0xff] %v2588_v15  ;;  %3511 = vpow2.f32 %v2361_v59  ;;  %v2369_v3 = vmul.f32 1.442695, %v2002_v45  ;;  %2299 = vmatmul.mubr.bf16.gmra.mrb[116].mxu1 %v4642_v52 }
 0x2f8   : > { %3513 = vpow2.f32 %v2363_v38  ;;  %v2371_v37 = vmul.f32 1.442695, %v2004_v28  ;;  %2308 = vmatprep.mubr.bf16.mxu1 %v4655_v40 }
 0x2f9   : > { %v3504_v9 = vpop.eup %3503  ;;  %3515 = vpow2.f32 %v2369_v3 }
 0x2fa   : > { %v3506_v54 = vpop.eup %3505  ;;  %v2589_v57 = vmul.f32 %v3504_v9, %v5563_v25  ;;  %3517 = vpow2.f32 %v2371_v37  ;;  %v2007_v63 = vpop.f32.mrb[12].mxu1  ;;  %v5635_v9 = vld [vmem:[#allocation16_spill] sm:$0xff]  ;;  %v3782_v25 = vld [vmem:[%s4210_s6 + $0x278] sm:$0xff] }
 0x2fb   : > { %v3508_v52 = vpop.eup %3507  ;;  %v2590_v39 = vmul.f32 %v3506_v54, %v5562_v53  ;;  %v2008_v22 = vadd.f32 %v2007_v63, %v4694_v21  ;;  %v2009_v62 = vpop.f32.mrb[13].mxu1  ;;  %v5547_v54 = vsub.f32 1.0, %v5635_v9  ;;  %v3781_v53 = vld [vmem:[%s4210_s6 + $0x268] sm:$0xff] }
 0x2fc   : > { %v3510_v40 = vpop.eup %3509  ;;  %2653 = vst [vmem:[%s4724_s12 + $0x40] sm:$0xff] %v2589_v57  ;;  %v2591_v17 = vmul.f32 %v3508_v52, %v5560_v24  ;;  %v2010_v43 = vadd.f32 %v2009_v62, %v4699_v11  ;;  %v2011_v49 = vpop.f32.mrb[14].mxu1  ;;  %v5636_v52 = vld [vmem:[#allocation14_spill] sm:$0xff]  ;;  %v5637_v62 = vld [vmem:[#allocation17_spill] sm:$0xff]  ;;  %v3779_v24 = vld [vmem:[%s4210_s6 + $0x260] sm:$0xff] }
 0x2fd   : > { %2654 = vst [vmem:[%s4724_s12 + $0x48] sm:$0xff] %v2590_v39  ;;  %v2592_v51 = vmul.f32 %v3510_v40, %v5559_v36  ;;  %v2377_v31 = vmul.f32 1.442695, %v2008_v22  ;;  %v2012_v35 = vadd.f32 %v2011_v49, %v4694_v21  ;;  %v2013_v42 = vpop.f32.mrb[15].mxu1  ;;  %v5546_v39 = vsub.f32 1.0, %v5636_v52  ;;  %v5638_v49 = vld [vmem:[#allocation15_spill] sm:$0xff] }
 0x2fe   : > { %2655 = vst [vmem:[%s4724_s12 + $0x60] sm:$0xff] %v2591_v17  ;;  %v2379_v56 = vmul.f32 1.442695, %v2010_v43  ;;  %v2014_v58 = vadd.f32 %v2013_v42, %v4699_v11  ;;  %v5544_v40 = vsub.f32 1.0, %v5637_v62 }
 0x2ff   : > { %2656 = vst [vmem:[%s4724_s12 + $0x68] sm:$0xff] %v2592_v51  ;;  %3519 = vpow2.f32 %v2377_v31  ;;  %v2385_v29 = vmul.f32 1.442695, %v2012_v35  ;;  %2309 = vmatmul.mubr.bf16.gmra.mrb[120].mxu1 %v4652_v46  ;;  %v5543_v51 = vsub.f32 1.0, %v5638_v49 }
 0x300   : > { %3521 = vpow2.f32 %v2379_v56  ;;  %v2387_v4 = vmul.f32 1.442695, %v2014_v58  ;;  %2318 = vmatprep.mubr.bf16.mxu1 %v4663_v34 }
 0x301   : > { %v3512_v10 = vpop.eup %3511  ;;  %3523 = vpow2.f32 %v2385_v29 }
 0x302   : > { %v3514_v30 = vpop.eup %3513  ;;  %v2593_v44 = vmul.f32 %v3512_v10, %v5555_v32  ;;  %3525 = vpow2.f32 %v2387_v4  ;;  %v2017_v41 = vpop.f32.mrb[16].mxu1  ;;  %v3774_v32 = vld [vmem:[%s4210_s6 + $0x238] sm:$0xff] }
 0x303   : > { %v3516_v46 = vpop.eup %3515  ;;  %v2594_v48 = vmul.f32 %v3514_v30, %v5554_v6  ;;  %v2018_v19 = vadd.f32 %v2017_v41, %v4694_v21  ;;  %v2019_v15 = vpop.f32.mrb[17].mxu1  ;;  %v3773_v6 = vld [vmem:[%s4210_s6 + $0x228] sm:$0xff] }
 0x304   : > { %v3518_v34 = vpop.eup %3517  ;;  %2657 = vst [vmem:[%s4724_s12 + $0x80] sm:$0xff] %v2593_v44  ;;  %v2595_v59 = vmul.f32 %v3516_v46, %v5552_v7  ;;  %v2020_v45 = vadd.f32 %v2019_v15, %v4699_v11  ;;  %v2021_v16 = vpop.f32.mrb[18].mxu1  ;;  %v5639_v15 = vld [vmem:[#allocation20_spill] sm:$0xff] }
 0x305   : > { %2658 = vst [vmem:[%s4724_s12 + $0x88] sm:$0xff] %v2594_v48  ;;  %v2596_v38 = vmul.f32 %v3518_v34, %v5551_v5  ;;  %v2393_v28 = vmul.f32 1.442695, %v2018_v19  ;;  %v2022_v3 = vadd.f32 %v2021_v16, %v4694_v21  ;;  %v2023_v37 = vpop.f32.mrb[19].mxu1  ;;  %v5539_v34 = vsub.f32 1.0, %v5639_v15  ;;  %v5640_v16 = vld [vmem:[#allocation18_spill] sm:$0xff] }
 0x306   : > { %2659 = vst [vmem:[%s4724_s12 + $0xa0] sm:$0xff] %v2595_v59  ;;  %v2395_v57 = vmul.f32 1.442695, %v2020_v45  ;;  %v2024_v63 = vadd.f32 %v2023_v37, %v4699_v11  ;;  %v3771_v7 = vld [vmem:[%s4210_s6 + $0x220] sm:$0xff] }
 0x307   : > { %2660 = vst [vmem:[%s4724_s12 + $0xa8] sm:$0xff] %v2596_v38  ;;  %3527 = vpow2.f32 %v2393_v28  ;;  %v2401_v22 = vmul.f32 1.442695, %v2022_v3  ;;  %2319 = vmatmul.mubr.bf16.gmra.mrb[124].mxu1 %v4661_v8  ;;  %v5538_v38 = vsub.f32 1.0, %v5640_v16  ;;  %v5641_v3 = vld [vmem:[#allocation21_spill] sm:$0xff] }
 0x308   : > { %3529 = vpow2.f32 %v2395_v57  ;;  %v2403_v17 = vmul.f32 1.442695, %v2024_v63  ;;  %v5536_v37 = vsub.f32 1.0, %v5641_v3 }
 0x309   : > { %v3520_v43 = vpop.eup %3519  ;;  %3531 = vpow2.f32 %v2401_v22  ;;  %v5642_v22 = vld [vmem:[#allocation19_spill] sm:$0xff] }
 0x30a   : > { %v3522_v31 = vpop.eup %3521  ;;  %v2597_v35 = vmul.f32 %v3520_v43, %v5547_v54  ;;  %3533 = vpow2.f32 %v2403_v17  ;;  %v2027_v42 = vpop.f32.mrb[20].mxu1  ;;  %v5535_v17 = vsub.f32 1.0, %v5642_v22  ;;  %v3766_v54 = vld [vmem:[%s4210_s6 + $0x1f8] sm:$0xff] }
 0x30b   : > { %v3524_v56 = vpop.eup %3523  ;;  %v2598_v8 = vmul.f32 %v3522_v31, %v5546_v39  ;;  %v2028_v58 = vadd.f32 %v2027_v42, %v4694_v21  ;;  %v2029_v29 = vpop.f32.mrb[21].mxu1  ;;  %v3765_v39 = vld [vmem:[%s4210_s6 + $0x1e8] sm:$0xff] }
 0x30c   : > { %v3526_v4 = vpop.eup %3525  ;;  %2661 = vst [vmem:[%s4724_s12 + $0xc0] sm:$0xff] %v2597_v35  ;;  %v2599_v10 = vmul.f32 %v3524_v56, %v5544_v40  ;;  %v2030_v30 = vadd.f32 %v2029_v29, %v4699_v11  ;;  %v2031_v44 = vpop.f32.mrb[22].mxu1  ;;  %v3763_v40 = vld [vmem:[%s4210_s6 + $0x1e0] sm:$0xff] }
 0x30d   : > { %2662 = vst [vmem:[%s4724_s12 + $0xc8] sm:$0xff] %v2598_v8  ;;  %v2600_v41 = vmul.f32 %v3526_v4, %v5543_v51  ;;  %v2409_v46 = vmul.f32 1.442695, %v2028_v58  ;;  %v2032_v48 = vadd.f32 %v2031_v44, %v4694_v21  ;;  %v2033_v19 = vpop.f32.mrb[23].mxu1 }
 0x30e   : > { %2663 = vst [vmem:[%s4724_s12 + $0xe0] sm:$0xff] %v2599_v10  ;;  %v2411_v59 = vmul.f32 1.442695, %v2030_v30  ;;  %v2034_v45 = vadd.f32 %v2033_v19, %v4699_v11  ;;  %v5643_v19 = vld [vmem:[#allocation24_spill] sm:$0xff] }
 0x30f   : > { %2664 = vst [vmem:[%s4724_s12 + $0xe8] sm:$0xff] %v2600_v41  ;;  %3535 = vpow2.f32 %v2409_v46  ;;  %v2417_v28 = vmul.f32 1.442695, %v2032_v48 }
 0x310   : > { %3537 = vpow2.f32 %v2411_v59  ;;  %v2419_v57 = vmul.f32 1.442695, %v2034_v45  ;;  %v5537_v59 = vsub.f32 1.0, %v5643_v19 }
 0x311   : > { %v3528_v63 = vpop.eup %3527  ;;  %3539 = vpow2.f32 %v2417_v28 }
 0x312   : > { %v3530_v43 = vpop.eup %3529  ;;  %v2601_v31 = vmul.f32 %v3528_v63, %v5539_v34  ;;  %3541 = vpow2.f32 %v2419_v57  ;;  %v2037_v35 = vpop.f32.mrb[24].mxu1  ;;  %v5644_v57 = vld [vmem:[#allocation22_spill] sm:$0xff]  ;;  %v3758_v34 = vld [vmem:[%s4210_s6 + $0x1b8] sm:$0xff] }
 0x313   : > { %v3532_v42 = vpop.eup %3531  ;;  %v2602_v56 = vmul.f32 %v3530_v43, %v5538_v38  ;;  %v2038_v8 = vadd.f32 %v2037_v35, %v4694_v21  ;;  %v2039_v58 = vpop.f32.mrb[25].mxu1  ;;  %v5540_v63 = vsub.f32 1.0, %v5644_v57  ;;  %v3757_v38 = vld [vmem:[%s4210_s6 + $0x1a8] sm:$0xff] }
 0x314   : > { %v3534_v29 = vpop.eup %3533  ;;  %2665 = vst [vmem:[%s4724_s12 + $0x100] sm:$0xff] %v2601_v31  ;;  %v2603_v4 = vmul.f32 %v3532_v42, %v5536_v37  ;;  %v2040_v10 = vadd.f32 %v2039_v58, %v4699_v11  ;;  %v2041_v30 = vpop.f32.mrb[26].mxu1  ;;  %v5645_v31 = vld [vmem:[#allocation25_spill] sm:$0xff]  ;;  %v3755_v37 = vld [vmem:[%s4210_s6 + $0x1a0] sm:$0xff] }
 0x315   : > { %2666 = vst [vmem:[%s4724_s12 + $0x108] sm:$0xff] %v2602_v56  ;;  %v2604_v44 = vmul.f32 %v3534_v29, %v5535_v17  ;;  %v2425_v41 = vmul.f32 1.442695, %v2038_v8  ;;  %v2042_v46 = vadd.f32 %v2041_v30, %v4694_v21  ;;  %v2043_v48 = vpop.f32.mrb[27].mxu1  ;;  %v5541_v35 = vsub.f32 1.0, %v5645_v31  ;;  %v5646_v8 = vld [vmem:[#allocation23_spill] sm:$0xff] }
 0x316   : > { %2667 = vst [vmem:[%s4724_s12 + $0x120] sm:$0xff] %v2603_v4  ;;  %v2427_v45 = vmul.f32 1.442695, %v2040_v10  ;;  %v2044_v28 = vadd.f32 %v2043_v48, %v4699_v11  ;;  %v5542_v58 = vsub.f32 1.0, %v5646_v8  ;;  %v3751_v4 = vld [vmem:[%s4210_s6 + $0x180] sm:$0xff]  ;;  %v3752_v10 = vld [vmem:[%s4210_s6 + $0x190] sm:$0xff] }
 0x317   : > { %2668 = vst [vmem:[%s4724_s12 + $0x128] sm:$0xff] %v2604_v44  ;;  %3543 = vpow2.f32 %v2425_v41  ;;  %v2433_v43 = vmul.f32 1.442695, %v2042_v46  ;;  %v4828_v30 = vadd.f32 %v3752_v10, %v3751_v4  ;;  %v3753_v48 = vld [vmem:[%s4210_s6 + $0x188] sm:$0xff] }
 0x318   : > { %3545 = vpow2.f32 %v2427_v45  ;;  %v2435_v42 = vmul.f32 1.442695, %v2044_v28  ;;  %v3754_v45 = vld [vmem:[%s4210_s6 + $0x198] sm:$0xff] }
 0x319   : > { %v3536_v56 = vpop.eup %3535  ;;  %3547 = vpow2.f32 %v2433_v43  ;;  %v4834_v28 = vadd.f32 %v3754_v45, %v3753_v48 }
 0x31a   : > { %v3538_v29 = vpop.eup %3537  ;;  %v2605_v44 = vmul.f32 %v3536_v56, %v5537_v59  ;;  %3549 = vpow2.f32 %v2435_v42  ;;  %v2047_v41 = vpop.f32.mrb[28].mxu1  ;;  %v3756_v56 = vld [vmem:[%s4210_s6 + $0x1b0] sm:$0xff] }
 0x31b   : > { %v3540_v46 = vpop.eup %3539  ;;  %v2606_v43 = vmul.f32 %v3538_v29, %v5540_v63  ;;  %v2048_v17 = vadd.f32 %v2047_v41, %v4694_v21  ;;  %v2049_v4 = vpop.f32.mrb[29].mxu1  ;;  %v4841_v42 = vadd.f32 %v3756_v56, %v3755_v37  ;;  %v4849_v29 = vadd.f32 %v3758_v34, %v3757_v38 }
 0x31c   : > { %v3542_v10 = vpop.eup %3541  ;;  %2669 = vst [vmem:[%s4724_s12 + $0x140] sm:$0xff] %v2605_v44  ;;  %v2607_v59 = vmul.f32 %v3540_v46, %v5541_v35  ;;  %v2050_v48 = vadd.f32 %v2049_v4, %v4699_v11  ;;  %v2051_v45 = vpop.f32.mrb[30].mxu1  ;;  %v5545_v44 = vsub.f32 1.0, %v4828_v30  ;;  %v5548_v35 = vsub.f32 1.0, %v4834_v28 }
 0x31d   : > { %2670 = vst [vmem:[%s4724_s12 + $0x148] sm:$0xff] %v2606_v43  ;;  %v2608_v41 = vmul.f32 %v3542_v10, %v5542_v58  ;;  %v2441_v63 = vmul.f32 1.442695, %v2048_v17  ;;  %v2052_v37 = vadd.f32 %v2051_v45, %v4694_v21  ;;  %v2053_v56 = vpop.f32.mrb[31].mxu1  ;;  %v5549_v38 = vsub.f32 1.0, %v4841_v42  ;;  %v3760_v45 = vld [vmem:[%s4210_s6 + $0x1d0] sm:$0xff] }
 0x31e   : > { %2671 = vst [vmem:[%s4724_s12 + $0x160] sm:$0xff] %v2607_v59  ;;  %v2443_v46 = vmul.f32 1.442695, %v2050_v48  ;;  %v2054_v4 = vadd.f32 %v2053_v56, %v4699_v11  ;;  %v5550_v10 = vsub.f32 1.0, %v4849_v29  ;;  %v3759_v48 = vld [vmem:[%s4210_s6 + $0x1c0] sm:$0xff] }
 0x31f   : > { %2672 = vst [vmem:[%s4724_s12 + $0x168] sm:$0xff] %v2608_v41  ;;  %3551 = vpow2.f32 %v2441_v63  ;;  %v2449_v34 = vmul.f32 1.442695, %v2052_v37  ;;  %v4864_v56 = vadd.f32 %v3760_v45, %v3759_v48 }
 0x320   : > { %3553 = vpow2.f32 %v2443_v46  ;;  %v2451_v17 = vmul.f32 1.442695, %v2054_v4  ;;  %v3761_v46 = vld [vmem:[%s4210_s6 + $0x1c8] sm:$0xff]  ;;  %v3762_v4 = vld [vmem:[%s4210_s6 + $0x1d8] sm:$0xff] }
 0x321   : > { %v3544_v43 = vpop.eup %3543  ;;  %3555 = vpow2.f32 %v2449_v34  ;;  %v4870_v34 = vadd.f32 %v3762_v4, %v3761_v46 }
 0x322   : > { %v3546_v59 = vpop.eup %3545  ;;  %v2609_v63 = vmul.f32 %v3544_v43, %v5545_v44  ;;  %3557 = vpow2.f32 %v2451_v17  ;;  %v2057_v41 = vpop.f32.mrb[32].mxu1  ;;  %v3764_v43 = vld [vmem:[%s4210_s6 + $0x1f0] sm:$0xff] }
 0x323   : > { %v3548_v37 = vpop.eup %3547  ;;  %v2610_v58 = vmul.f32 %v3546_v59, %v5548_v35  ;;  %v2058_v51 = vadd.f32 %v2057_v41, %v4694_v21  ;;  %v2059_v48 = vpop.f32.mrb[33].mxu1  ;;  %v4877_v17 = vadd.f32 %v3764_v43, %v3763_v40  ;;  %v4885_v59 = vadd.f32 %v3766_v54, %v3765_v39 }
 0x324   : > { %v3550_v45 = vpop.eup %3549  ;;  %2673 = vst [vmem:[%s4724_s12 + $0x180] sm:$0xff] %v2609_v63  ;;  %v2611_v44 = vmul.f32 %v3548_v37, %v5549_v38  ;;  %v2060_v46 = vadd.f32 %v2059_v48, %v4699_v11  ;;  %v2061_v4 = vpop.f32.mrb[34].mxu1  ;;  %v5553_v63 = vsub.f32 1.0, %v4864_v56  ;;  %v5556_v38 = vsub.f32 1.0, %v4870_v34 }
 0x325   : > { %2674 = vst [vmem:[%s4724_s12 + $0x188] sm:$0xff] %v2610_v58  ;;  %v2612_v41 = vmul.f32 %v3550_v45, %v5550_v10  ;;  %v2457_v35 = vmul.f32 1.442695, %v2058_v51  ;;  %v2062_v40 = vadd.f32 %v2061_v4, %v4694_v21  ;;  %v2063_v43 = vpop.f32.mrb[35].mxu1  ;;  %v5557_v39 = vsub.f32 1.0, %v4877_v17  ;;  %v3768_v4 = vld [vmem:[%s4210_s6 + $0x210] sm:$0xff] }
 0x326   : > { %2675 = vst [vmem:[%s4724_s12 + $0x1a0] sm:$0xff] %v2611_v44  ;;  %v2459_v37 = vmul.f32 1.442695, %v2060_v46  ;;  %v2064_v48 = vadd.f32 %v2063_v43, %v4699_v11  ;;  %v5558_v45 = vsub.f32 1.0, %v4885_v59  ;;  %v3767_v46 = vld [vmem:[%s4210_s6 + $0x200] sm:$0xff] }
 0x327   : > { %2676 = vst [vmem:[%s4724_s12 + $0x1a8] sm:$0xff] %v2612_v41  ;;  %3559 = vpow2.f32 %v2457_v35  ;;  %v2465_v54 = vmul.f32 1.442695, %v2062_v40  ;;  %v4900_v43 = vadd.f32 %v3768_v4, %v3767_v46 }
 0x328   : > { %3561 = vpow2.f32 %v2459_v37  ;;  %v2467_v51 = vmul.f32 1.442695, %v2064_v48  ;;  %v3769_v37 = vld [vmem:[%s4210_s6 + $0x208] sm:$0xff]  ;;  %v3770_v48 = vld [vmem:[%s4210_s6 + $0x218] sm:$0xff] }
 0x329   : > { %v3552_v58 = vpop.eup %3551  ;;  %3563 = vpow2.f32 %v2465_v54  ;;  %v4906_v54 = vadd.f32 %v3770_v48, %v3769_v37 }
 0x32a   : > { %v3554_v44 = vpop.eup %3553  ;;  %v2613_v35 = vmul.f32 %v3552_v58, %v5553_v63  ;;  %3565 = vpow2.f32 %v2467_v51  ;;  %v2067_v41 = vpop.f32.mrb[36].mxu1  ;;  %v3772_v58 = vld [vmem:[%s4210_s6 + $0x230] sm:$0xff] }
 0x32b   : > { %v3556_v40 = vpop.eup %3555  ;;  %v2614_v10 = vmul.f32 %v3554_v44, %v5556_v38  ;;  %v2068_v5 = vadd.f32 %v2067_v41, %v4694_v21  ;;  %v2069_v46 = vpop.f32.mrb[37].mxu1  ;;  %v4913_v51 = vadd.f32 %v3772_v58, %v3771_v7  ;;  %v4921_v44 = vadd.f32 %v3774_v32, %v3773_v6 }
 0x32c   : > { %v3558_v4 = vpop.eup %3557  ;;  %2677 = vst [vmem:[%s4724_s12 + $0x1c0] sm:$0xff] %v2613_v35  ;;  %v2615_v63 = vmul.f32 %v3556_v40, %v5557_v39  ;;  %v2070_v37 = vadd.f32 %v2069_v46, %v4699_v11  ;;  %v2071_v48 = vpop.f32.mrb[38].mxu1  ;;  %v5561_v35 = vsub.f32 1.0, %v4900_v43  ;;  %v5564_v39 = vsub.f32 1.0, %v4906_v54 }
 0x32d   : > { %2678 = vst [vmem:[%s4724_s12 + $0x1c8] sm:$0xff] %v2614_v10  ;;  %v2616_v41 = vmul.f32 %v3558_v4, %v5558_v45  ;;  %v2473_v38 = vmul.f32 1.442695, %v2068_v5  ;;  %v2072_v7 = vadd.f32 %v2071_v48, %v4694_v21  ;;  %v2073_v58 = vpop.f32.mrb[39].mxu1  ;;  %v5565_v6 = vsub.f32 1.0, %v4913_v51  ;;  %v3776_v48 = vld [vmem:[%s4210_s6 + $0x250] sm:$0xff] }
 0x32e   : > { %2679 = vst [vmem:[%s4724_s12 + $0x1e0] sm:$0xff] %v2615_v63  ;;  %v2475_v40 = vmul.f32 1.442695, %v2070_v37  ;;  %v2074_v46 = vadd.f32 %v2073_v58, %v4699_v11  ;;  %v5566_v4 = vsub.f32 1.0, %v4921_v44  ;;  %v3775_v37 = vld [vmem:[%s4210_s6 + $0x240] sm:$0xff] }
 0x32f   : > { %2680 = vst [vmem:[%s4724_s12 + $0x1e8] sm:$0xff] %v2616_v41  ;;  %3567 = vpow2.f32 %v2473_v38  ;;  %v2481_v32 = vmul.f32 1.442695, %v2072_v7  ;;  %v4936_v58 = vadd.f32 %v3776_v48, %v3775_v37 }
 0x330   : > { %3569 = vpow2.f32 %v2475_v40  ;;  %v2483_v5 = vmul.f32 1.442695, %v2074_v46  ;;  %v3777_v40 = vld [vmem:[%s4210_s6 + $0x248] sm:$0xff]  ;;  %v3778_v46 = vld [vmem:[%s4210_s6 + $0x258] sm:$0xff] }
 0x331   : > { %v3560_v10 = vpop.eup %3559  ;;  %3571 = vpow2.f32 %v2481_v32  ;;  %v4942_v32 = vadd.f32 %v3778_v46, %v3777_v40 }
 0x332   : > { %v3562_v63 = vpop.eup %3561  ;;  %v2617_v38 = vmul.f32 %v3560_v10, %v5561_v35  ;;  %3573 = vpow2.f32 %v2483_v5  ;;  %v2077_v41 = vpop.f32.mrb[40].mxu1  ;;  %v3780_v10 = vld [vmem:[%s4210_s6 + $0x270] sm:$0xff] }
 0x333   : > { %v3564_v7 = vpop.eup %3563  ;;  %5647 = vst [vmem:[#allocation13_spill] sm:$0xff] %v4942_v32  ;;  %v2618_v45 = vmul.f32 %v3562_v63, %v5564_v39  ;;  %v2078_v36 = vadd.f32 %v2077_v41, %v4694_v21  ;;  %v2079_v37 = vpop.f32.mrb[41].mxu1  ;;  %v4949_v5 = vadd.f32 %v3780_v10, %v3779_v24  ;;  %v4957_v63 = vadd.f32 %v3782_v25, %v3781_v53 }
 0x334   : > { %v3566_v48 = vpop.eup %3565  ;;  %2681 = vst [vmem:[%s4724_s12 + $0x200] sm:$0xff] %v2617_v38  ;;  %v2619_v35 = vmul.f32 %v3564_v7, %v5565_v6  ;;  %v2080_v40 = vadd.f32 %v2079_v37, %v4699_v11  ;;  %v2081_v46 = vpop.f32.mrb[42].mxu1  ;;  %v5569_v38 = vsub.f32 1.0, %v4936_v58  ;;  %v5572_v6 = vsub.f32 1.0, %v4942_v32 }
 0x335   : > { %5648 = vst [vmem:[#allocation12_spill] sm:$0xff] %v4949_v5  ;;  %5649 = vst [vmem:[#allocation16_spill] sm:$0xff] %v4957_v63  ;;  %v2620_v41 = vmul.f32 %v3566_v48, %v5566_v4  ;;  %v2489_v39 = vmul.f32 1.442695, %v2078_v36  ;;  %v2082_v24 = vadd.f32 %v2081_v46, %v4694_v21  ;;  %v2083_v10 = vpop.f32.mrb[43].mxu1  ;;  %v5573_v53 = vsub.f32 1.0, %v4949_v5 }
 0x336   : > { %2682 = vst [vmem:[%s4724_s12 + $0x208] sm:$0xff] %v2618_v45  ;;  %2683 = vst [vmem:[%s4724_s12 + $0x220] sm:$0xff] %v2619_v35  ;;  %v2491_v7 = vmul.f32 1.442695, %v2080_v40  ;;  %v2084_v37 = vadd.f32 %v2083_v10, %v4699_v11  ;;  %v5574_v48 = vsub.f32 1.0, %v4957_v63  ;;  %v3783_v40 = vld [vmem:[%s4210_s6 + $0x280] sm:$0xff] }
 0x337   : > { %2684 = vst [vmem:[%s4724_s12 + $0x228] sm:$0xff] %v2620_v41  ;;  %3575 = vpow2.f32 %v2489_v39  ;;  %v2497_v25 = vmul.f32 1.442695, %v2082_v24  ;;  %v3784_v46 = vld [vmem:[%s4210_s6 + $0x290] sm:$0xff]  ;;  %v3797_v63 = vld [vmem:[%s4210_s6 + $0x2e8] sm:$0xff] }
 0x338   : > { %3577 = vpow2.f32 %v2491_v7  ;;  %v2499_v36 = vmul.f32 1.442695, %v2084_v37  ;;  %v4972_v10 = vadd.f32 %v3784_v46, %v3783_v40  ;;  %v3785_v7 = vld [vmem:[%s4210_s6 + $0x288] sm:$0xff]  ;;  %v3786_v37 = vld [vmem:[%s4210_s6 + $0x298] sm:$0xff] }
 0x339   : > { %v3568_v45 = vpop.eup %3567  ;;  %3579 = vpow2.f32 %v2497_v25  ;;  %v4978_v25 = vadd.f32 %v3786_v37, %v3785_v7 }
 0x33a   : > { %v3570_v35 = vpop.eup %3569  ;;  %5650 = vst [vmem:[#allocation14_spill] sm:$0xff] %v4972_v10  ;;  %v2621_v39 = vmul.f32 %v3568_v45, %v5569_v38  ;;  %3581 = vpow2.f32 %v2499_v36  ;;  %v2087_v41 = vpop.f32.mrb[44].mxu1  ;;  %v3788_v45 = vld [vmem:[%s4210_s6 + $0x2b0] sm:$0xff] }
 0x33b   : > { %v3572_v24 = vpop.eup %3571  ;;  %5651 = vst [vmem:[#allocation17_spill] sm:$0xff] %v4978_v25  ;;  %v2622_v4 = vmul.f32 %v3570_v35, %v5572_v6  ;;  %v2088_v12 = vadd.f32 %v2087_v41, %v4694_v21  ;;  %v2089_v40 = vpop.f32.mrb[45].mxu1  ;;  %v4985_v36 = vadd.f32 %v3788_v45, %v3787_v50  ;;  %v4993_v35 = vadd.f32 %v3790_v33, %v3789_v55  ;;  %v3795_v55 = vld [vmem:[%s4210_s6 + $0x2e0] sm:$0xff] }
 0x33c   : > { %v3574_v46 = vpop.eup %3573  ;;  %2685 = vst [vmem:[%s4724_s12 + $0x240] sm:$0xff] %v2621_v39  ;;  %v2623_v38 = vmul.f32 %v3572_v24, %v5573_v53  ;;  %v2090_v7 = vadd.f32 %v2089_v40, %v4699_v11  ;;  %v2091_v37 = vpop.f32.mrb[46].mxu1  ;;  %v5575_v39 = vsub.f32 1.0, %v4972_v10  ;;  %v5579_v53 = vsub.f32 1.0, %v4978_v25  ;;  %v3798_v25 = vld [vmem:[%s4210_s6 + $0x2f8] sm:$0xff] }
 0x33d   : > { %5652 = vst [vmem:[#allocation15_spill] sm:$0xff] %v4985_v36  ;;  %5653 = vst [vmem:[#allocation20_spill] sm:$0xff] %v4993_v35  ;;  %v2624_v41 = vmul.f32 %v3574_v46, %v5574_v48  ;;  %v2505_v6 = vmul.f32 1.442695, %v2088_v12  ;;  %v2092_v50 = vadd.f32 %v2091_v37, %v4694_v21  ;;  %v2093_v45 = vpop.f32.mrb[47].mxu1  ;;  %v3792_v37 = vld [vmem:[%s4210_s6 + $0x2d0] sm:$0xff] }
 0x33e   : > { %2686 = vst [vmem:[%s4724_s12 + $0x248] sm:$0xff] %v2622_v4  ;;  %2687 = vst [vmem:[%s4724_s12 + $0x260] sm:$0xff] %v2623_v38  ;;  %v2507_v24 = vmul.f32 1.442695, %v2090_v7  ;;  %v2094_v40 = vadd.f32 %v2093_v45, %v4699_v11  ;;  %v3791_v7 = vld [vmem:[%s4210_s6 + $0x2c0] sm:$0xff] }
 0x33f   : > { %2688 = vst [vmem:[%s4724_s12 + $0x268] sm:$0xff] %v2624_v41  ;;  %3583 = vpow2.f32 %v2505_v6  ;;  %v2513_v33 = vmul.f32 1.442695, %v2092_v50  ;;  %v5008_v45 = vadd.f32 %v3792_v37, %v3791_v7 }
 0x340   : > { %3585 = vpow2.f32 %v2507_v24  ;;  %v2515_v12 = vmul.f32 1.442695, %v2094_v40  ;;  %v3793_v24 = vld [vmem:[%s4210_s6 + $0x2c8] sm:$0xff]  ;;  %v3794_v40 = vld [vmem:[%s4210_s6 + $0x2d8] sm:$0xff] }
 0x341   : > { %v3576_v4 = vpop.eup %3575  ;;  %3587 = vpow2.f32 %v2513_v33  ;;  %5654 = vst [vmem:[#allocation18_spill] sm:$0xff] %v5008_v45  ;;  %v5014_v33 = vadd.f32 %v3794_v40, %v3793_v24 }
 0x342   : > { %v3578_v38 = vpop.eup %3577  ;;  %v2625_v6 = vmul.f32 %v3576_v4, %v5575_v39  ;;  %3589 = vpow2.f32 %v2515_v12  ;;  %v2097_v41 = vpop.f32.mrb[48].mxu1  ;;  %v3796_v4 = vld [vmem:[%s4210_s6 + $0x2f0] sm:$0xff]  ;;  %v5657_v39 = vsub.f32 1.0, %v4985_v36 }
 0x343   : > { %v3580_v50 = vpop.eup %3579  ;;  %5655 = vst [vmem:[#allocation21_spill] sm:$0xff] %v5014_v33  ;;  %v2626_v48 = vmul.f32 %v3578_v38, %v5579_v53  ;;  %v2098_v46 = vadd.f32 %v2097_v41, %v4694_v21  ;;  %v2099_v7 = vpop.f32.mrb[49].mxu1  ;;  %v5021_v12 = vadd.f32 %v3796_v4, %v3795_v55  ;;  %v5029_v38 = vadd.f32 %v3798_v25, %v3797_v63 }
 0x344   : > { %v3582_v37 = vpop.eup %3581  ;;  %2689 = vst [vmem:[%s4724_s12 + $0x280] sm:$0xff] %v2625_v6  ;;  %v2627_v10 = vmul.f32 %v3580_v50, %v5657_v39  ;;  %v2100_v24 = vadd.f32 %v2099_v7, %v4699_v11  ;;  %v2101_v40 = vpop.f32.mrb[50].mxu1  ;;  %v5659_v41 = vsub.f32 1.0, %v4993_v35  ;;  %v5581_v6 = vsub.f32 1.0, %v5008_v45  ;;  %v3805_v35 = vld [vmem:[%s4210_s6 + $0x328] sm:$0xff] }
 0x345   : > { %5656 = vst [vmem:[#allocation19_spill] sm:$0xff] %v5021_v12  ;;  %5658 = vst [vmem:[#allocation24_spill] sm:$0xff] %v5029_v38  ;;  %v2521_v5 = vmul.f32 1.442695, %v2098_v46  ;;  %v2102_v55 = vadd.f32 %v2101_v40, %v4694_v21  ;;  %v2103_v4 = vpop.f32.mrb[51].mxu1  ;;  %v5585_v7 = vsub.f32 1.0, %v5014_v33 }
 0x346   : > { %2690 = vst [vmem:[%s4724_s12 + $0x288] sm:$0xff] %v2626_v48  ;;  %v2628_v53 = vmul.f32 %v3582_v37, %v5659_v41  ;;  %2691 = vst [vmem:[%s4724_s12 + $0x2a0] sm:$0xff] %v2627_v10  ;;  %v2523_v39 = vmul.f32 1.442695, %v2100_v24  ;;  %v2104_v50 = vadd.f32 %v2103_v4, %v4699_v11  ;;  %v3799_v24 = vld [vmem:[%s4210_s6 + $0x300] sm:$0xff]  ;;  %v3800_v40 = vld [vmem:[%s4210_s6 + $0x310] sm:$0xff] }
 0x347   : > { %3591 = vpow2.f32 %v2521_v5  ;;  %v2529_v63 = vmul.f32 1.442695, %v2102_v55  ;;  %v5044_v41 = vadd.f32 %v3800_v40, %v3799_v24  ;;  %v3801_v4 = vld [vmem:[%s4210_s6 + $0x308] sm:$0xff]  ;;  %v3803_v48 = vld [vmem:[%s4210_s6 + $0x320] sm:$0xff]  ;;  %v3806_v33 = vld [vmem:[%s4210_s6 + $0x338] sm:$0xff] }
 0x348   : > { %2692 = vst [vmem:[%s4724_s12 + $0x2a8] sm:$0xff] %v2628_v53  ;;  %3593 = vpow2.f32 %v2523_v39  ;;  %v2531_v25 = vmul.f32 1.442695, %v2104_v50  ;;  %v3802_v39 = vld [vmem:[%s4210_s6 + $0x318] sm:$0xff] }
 0x349   : > { %v3584_v46 = vpop.eup %3583  ;;  %3595 = vpow2.f32 %v2529_v63  ;;  %5660 = vst [vmem:[#allocation22_spill] sm:$0xff] %v5044_v41  ;;  %v5050_v50 = vadd.f32 %v3802_v39, %v3801_v4 }
 0x34a   : > { %v3586_v10 = vpop.eup %3585  ;;  %v2629_v5 = vmul.f32 %v3584_v46, %v5581_v6  ;;  %3597 = vpow2.f32 %v2531_v25  ;;  %v2107_v53 = vpop.f32.mrb[52].mxu1  ;;  %v3804_v46 = vld [vmem:[%s4210_s6 + $0x330] sm:$0xff]  ;;  %v5663_v6 = vsub.f32 1.0, %v5021_v12 }
 0x34b   : > { %v3588_v55 = vpop.eup %3587  ;;  %5661 = vst [vmem:[#allocation25_spill] sm:$0xff] %v5050_v50  ;;  %v2630_v63 = vmul.f32 %v3586_v10, %v5585_v7  ;;  %v2108_v37 = vadd.f32 %v2107_v53, %v4694_v21  ;;  %v2109_v24 = vpop.f32.mrb[53].mxu1  ;;  %v5057_v25 = vadd.f32 %v3804_v46, %v3803_v48  ;;  %v5065_v10 = vadd.f32 %v3806_v33, %v3805_v35  ;;  %v3811_v33 = vld [vmem:[%s4210_s6 + $0x360] sm:$0xff] }
 0x34c   : > { %v3590_v40 = vpop.eup %3589  ;;  %2693 = vst [vmem:[%s4724_s12 + $0x2c0] sm:$0xff] %v2629_v5  ;;  %v2631_v45 = vmul.f32 %v3588_v55, %v5663_v6  ;;  %v2110_v4 = vadd.f32 %v2109_v24, %v4699_v11  ;;  %v2111_v39 = vpop.f32.mrb[54].mxu1  ;;  %v5665_v53 = vsub.f32 1.0, %v5029_v38  ;;  %v5587_v5 = vsub.f32 1.0, %v5044_v41  ;;  %v3813_v38 = vld [vmem:[%s4210_s6 + $0x368] sm:$0xff] }
 0x34d   : > { %5662 = vst [vmem:[#allocation23_spill] sm:$0xff] %v5057_v25  ;;  %5664 = vst [vmem:[#allocation26_spill] sm:$0xff] %v5065_v10  ;;  %v2537_v36 = vmul.f32 1.442695, %v2108_v37  ;;  %v2112_v48 = vadd.f32 %v2111_v39, %v4694_v21  ;;  %v2113_v46 = vpop.f32.mrb[55].mxu1  ;;  %v5591_v24 = vsub.f32 1.0, %v5050_v50 }
 0x34e   : > { %2694 = vst [vmem:[%s4724_s12 + $0x2c8] sm:$0xff] %v2630_v63  ;;  %v2632_v7 = vmul.f32 %v3590_v40, %v5665_v53  ;;  %2695 = vst [vmem:[%s4724_s12 + $0x2e0] sm:$0xff] %v2631_v45  ;;  %v2539_v6 = vmul.f32 1.442695, %v2110_v4  ;;  %v2114_v55 = vadd.f32 %v2113_v46, %v4699_v11  ;;  %v3807_v4 = vld [vmem:[%s4210_s6 + $0x340] sm:$0xff]  ;;  %v3808_v39 = vld [vmem:[%s4210_s6 + $0x350] sm:$0xff] }
 0x34f   : > { %3599 = vpow2.f32 %v2537_v36  ;;  %v2545_v35 = vmul.f32 1.442695, %v2112_v48  ;;  %v5080_v53 = vadd.f32 %v3808_v39, %v3807_v4  ;;  %v3809_v46 = vld [vmem:[%s4210_s6 + $0x348] sm:$0xff]  ;;  %v3814_v50 = vld [vmem:[%s4210_s6 + $0x378] sm:$0xff] }
 0x350   : > { %2696 = vst [vmem:[%s4724_s12 + $0x2e8] sm:$0xff] %v2632_v7  ;;  %3601 = vpow2.f32 %v2539_v6  ;;  %v2547_v37 = vmul.f32 1.442695, %v2114_v55  ;;  %v3810_v6 = vld [vmem:[%s4210_s6 + $0x358] sm:$0xff] }
 0x351   : > { %v3592_v63 = vpop.eup %3591  ;;  %3603 = vpow2.f32 %v2545_v35  ;;  %5666 = vst [vmem:[#allocation27_spill] sm:$0xff] %v5080_v53  ;;  %v5086_v55 = vadd.f32 %v3810_v6, %v3809_v46 }
 0x352   : > { %v3594_v45 = vpop.eup %3593  ;;  %v2633_v36 = vmul.f32 %v3592_v63, %v5587_v5  ;;  %3605 = vpow2.f32 %v2547_v37  ;;  %v2117_v7 = vpop.f32.mrb[56].mxu1  ;;  %v3812_v63 = vld [vmem:[%s4210_s6 + $0x370] sm:$0xff]  ;;  %v5668_v5 = vsub.f32 1.0, %v5057_v25 }
 0x353   : > { %v3596_v48 = vpop.eup %3595  ;;  %5667 = vst [vmem:[#allocation28_spill] sm:$0xff] %v5086_v55  ;;  %v2634_v35 = vmul.f32 %v3594_v45, %v5591_v24  ;;  %v2118_v40 = vadd.f32 %v2117_v7, %v4694_v21  ;;  %v2119_v4 = vpop.f32.mrb[57].mxu1  ;;  %v5093_v37 = vadd.f32 %v3812_v63, %v3811_v33  ;;  %v5101_v45 = vadd.f32 %v3814_v50, %v3813_v38 }
 0x354   : > { %v3598_v39 = vpop.eup %3597  ;;  %2697 = vst [vmem:[%s4724_s12 + $0x300] sm:$0xff] %v2633_v36  ;;  %v2635_v41 = vmul.f32 %v3596_v48, %v5668_v5  ;;  %v2120_v46 = vadd.f32 %v2119_v4, %v4699_v11  ;;  %v2121_v6 = vpop.f32.mrb[58].mxu1  ;;  %v5669_v7 = vsub.f32 1.0, %v5065_v10  ;;  %v5593_v36 = vsub.f32 1.0, %v5080_v53 }
 0x355   : > { %2698 = vst [vmem:[%s4724_s12 + $0x308] sm:$0xff] %v2634_v35  ;;  %v2553_v12 = vmul.f32 1.442695, %v2118_v40  ;;  %v2122_v33 = vadd.f32 %v2121_v6, %v4694_v21  ;;  %v2123_v63 = vpop.f32.mrb[59].mxu1  ;;  %v5597_v4 = vsub.f32 1.0, %v5086_v55  ;;  %v1617_v53 = vsub.s32 3, %v4492_v13 }
 0x356   : > { %v2636_v24 = vmul.f32 %v3598_v39, %v5669_v7  ;;  %2699 = vst [vmem:[%s4724_s12 + $0x320] sm:$0xff] %v2635_v41  ;;  %v2555_v5 = vmul.f32 1.442695, %v2120_v46  ;;  %v2124_v48 = vadd.f32 %v2123_v63, %v4699_v11  ;;  %v3815_v41 = vld [vmem:[%s4210_s6 + $0x380] sm:$0xff]  ;;  %v3816_v46 = vld [vmem:[%s4210_s6 + $0x390] sm:$0xff]  ;;  %v3817_v63 = vld [vmem:[%s4210_s6 + $0x388] sm:$0xff] }
 0x357   : > { %3607 = vpow2.f32 %v2553_v12  ;;  %v2561_v38 = vmul.f32 1.442695, %v2122_v33  ;;  %v5116_v7 = vadd.f32 %v3816_v46, %v3815_v41  ;;  %v5673_v25 = vsub.f32 1.0, %v5101_v45 }
 0x358   : > { %2700 = vst [vmem:[%s4724_s12 + $0x328] sm:$0xff] %v2636_v24  ;;  %3609 = vpow2.f32 %v2555_v5  ;;  %v2563_v40 = vmul.f32 1.442695, %v2124_v48  ;;  %v3818_v5 = vld [vmem:[%s4210_s6 + $0x398] sm:$0xff] }
 0x359   : > { %v3600_v35 = vpop.eup %3599  ;;  %3611 = vpow2.f32 %v2561_v38  ;;  %5670 = vst [vmem:[#allocation29_spill] sm:$0xff] %v5116_v7  ;;  %v5122_v48 = vadd.f32 %v3818_v5, %v3817_v63  ;;  %v1613_v38 = vsub.s32 2, %v4492_v13  ;;  %v5672_v63 = vsub.f32 1.0, %v5093_v37 }
 0x35a   : > { %v3602_v6 = vpop.eup %3601  ;;  %v2637_v12 = vmul.f32 %v3600_v35, %v5593_v36  ;;  %3613 = vpow2.f32 %v2563_v40  ;;  %v2127_v24 = vpop.f32.mrb[60].mxu1  ;;  %v3819_v36 = vld [vmem:[%s4210_s6 + $0x3a0] sm:$0xff]  ;;  %v3820_v40 = vld [vmem:[%s4210_s6 + $0x3b0] sm:$0xff] }
 0x35b   : > { %v3604_v33 = vpop.eup %3603  ;;  %5671 = vst [vmem:[#allocation30_spill] sm:$0xff] %v5122_v48  ;;  %v2638_v41 = vmul.f32 %v3602_v6, %v5597_v4  ;;  %v2128_v46 = vadd.f32 %v2127_v24, %v4694_v21  ;;  %v2129_v39 = vpop.f32.mrb[61].mxu1  ;;  %v5130_v50 = vadd.f32 %v3820_v40, %v3819_v36  ;;  %v3821_v6 = vld [vmem:[%s4210_s6 + $0x3a8] sm:$0xff]  ;;  %v3822_v4 = vld [vmem:[%s4210_s6 + $0x3b8] sm:$0xff] }
 0x35c   : > { %v3606_v35 = vpop.eup %3605  ;;  %2701 = vst [vmem:[%s4724_s12 + $0x340] sm:$0xff] %v2637_v12  ;;  %v2639_v5 = vmul.f32 %v3604_v33, %v5672_v63  ;;  %v2130_v55 = vadd.f32 %v2129_v39, %v4699_v11  ;;  %v2131_v10 = vpop.f32.mrb[62].mxu1  ;;  %v5139_v24 = vadd.f32 %v3822_v4, %v3821_v6  ;;  %v5600_v12 = vsub.f32 1.0, %v5116_v7 }
 0x35d   : > { %2702 = vst [vmem:[%s4724_s12 + $0x348] sm:$0xff] %v2638_v41  ;;  %v2640_v32 = vmul.f32 %v3606_v35, %v5673_v25  ;;  %v2569_v36 = vmul.f32 1.442695, %v2128_v46  ;;  %v2132_v40 = vadd.f32 %v2131_v10, %v4694_v21  ;;  %v2133_v13 = vpop.f32.mrb[63].mxu1  ;;  %v5602_v63 = vsub.f32 1.0, %v5122_v48  ;;  %v3824_v35 = vld [vmem:[%s4210_s6 + $0x3c0] sm:$0xff] }
 0x35e   : > { %2703 = vst [vmem:[%s4724_s12 + $0x360] sm:$0xff] %v2639_v5  ;;  %v2571_v33 = vmul.f32 1.442695, %v2130_v55  ;;  %v2134_v39 = vadd.f32 %v2133_v13, %v4699_v11  ;;  %v3823_v25 = vld [vmem:[%s5514_s4] sm:$0xf]  ;;  %v5604_v21 = vsub.f32 1.0, %v5130_v50 }
 0x35f   : > { %2704 = vst [vmem:[%s4724_s12 + $0x368] sm:$0xff] %v2640_v32  ;;  %3615 = vpow2.f32 %v2569_v36  ;;  %v2577_v4 = vmul.f32 1.442695, %v2132_v40  ;;  %v5153_v41 = vrot.slane %v3823_v25, %v1613_v38  ;;  %v5156_v55 = vrot.slane %v3823_v25, %v1617_v53  ;;  %v3825_v5 = vld [vmem:[%s4210_s6 + $0x3d0] sm:$0xff]  ;;  %v3826_v40 = vld [vmem:[%s4210_s6 + $0x3c8] sm:$0xff]  ;;  %v3827_v13 = vld [vmem:[%s4210_s6 + $0x3d8] sm:$0xff] }
 0x360   : > { %3617 = vpow2.f32 %v2571_v33  ;;  %v2579_v10 = vmul.f32 1.442695, %v2134_v39  ;;  %v5161_v38 = vadd.f32 %v3825_v5, %v3824_v35  ;;  %v5167_v33 = vadd.f32 %v3827_v13, %v3826_v40  ;;  %v3828_v5 = vld [vmem:[%s4210_s6 + $0x3e0] sm:$0xff]  ;;  %v3830_v46 = vld [vmem:[%s4210_s6 + $0x3e8] sm:$0xff]  ;;  %v3831_v48 = vld [vmem:[%s4210_s6 + $0x3f8] sm:$0xff] }
 0x361   : > { %v3608_v11 = vpop.eup %3607  ;;  %3619 = vpow2.f32 %v2577_v4 }
 0x362   : > { %v3610_v32 = vpop.eup %3609  ;;  %v2641_v6 = vmul.f32 %v3608_v11, %v5600_v12  ;;  %3621 = vpow2.f32 %v2579_v10  ;;  %v2170_v36 = vpop.f32.mrb[64].mxu1  ;;  %v3829_v11 = vld [vmem:[%s4210_s6 + $0x3f0] sm:$0xff]  ;;  %s3922_s6 = sshll.u32 %s3999_s7, 4  ;;  %s3923_s6 = int_to_ptr.vmem [resolvable:$false] %s3922_s6 }
 0x363   : > { %v3612_v53 = vpop.eup %3611  ;;  %v2642_v39 = vmul.f32 %v3610_v32, %v5602_v63  ;;  %v2171_v4 = vadd.f32 %v2170_v36, %v5153_v41  ;;  %v2172_v25 = vpop.f32.mrb[65].mxu1  ;;  %v5174_v10 = vadd.f32 %v3829_v11, %v3828_v5  ;;  %v5182_v32 = vadd.f32 %v3831_v48, %v3830_v46  ;;  %s3924_s24 = scalar_lea.vmem %s3923_s6, 32768  ;;  %p3925_p5 = scmp.lt.s32.totalorder %s5461_s9, %s3923_s6 }
 0x364   : > { %v3614_v35 = vpop.eup %3613  ;;  %2705 = vst [vmem:[%s4724_s12 + $0x380] sm:$0xff] %v2641_v6  ;;  %v2643_v12 = vmul.f32 %v3612_v53, %v5604_v21  ;;  %v2173_v40 = vadd.f32 %v2172_v25, %v5156_v55  ;;  %v2174_v13 = vpop.f32.mrb[66].mxu1  ;;  %v5674_v36 = vsub.f32 1.0, %v5139_v24  ;;  %v5605_v6 = vsub.f32 1.0, %v5161_v38  ;;  %p3926_p9 = scmp.lt.s32.totalorder %s3924_s24, %s3918_s23 }
 0x365   : > { %2706 = vst [vmem:[%s4724_s12 + $0x388] sm:$0xff] %v2642_v39  ;;  %v2333_v7 = vmul.f32 1.442695, %v2171_v4  ;;  %v2175_v5 = vadd.f32 %v2174_v13, %v5153_v41  ;;  %v2176_v11 = vpop.f32.mrb[67].mxu1  ;;  %v5606_v25 = vsub.f32 1.0, %v5167_v33  ;;  %v529_v46 = vsub.f32 1.0, %v5174_v10 }
 0x366   : > { %v2644_v63 = vmul.f32 %v3614_v35, %v5674_v36  ;;  %2707 = vst [vmem:[%s4724_s12 + $0x3a0] sm:$0xff] %v2643_v12  ;;  %v2335_v53 = vmul.f32 1.442695, %v2173_v40  ;;  %v2177_v21 = vadd.f32 %v2176_v11, %v5156_v55  ;;  %v530_v35 = vsub.f32 1.0, %v5182_v32  ;;  %p3927_p12 = por %p3926_p9, %p3925_p5 }
 0x367   : > { %3623 = vpow2.f32 %v2333_v7  ;;  %v2341_v48 = vmul.f32 1.442695, %v2175_v5 }
 0x368   : > { %2708 = vst [vmem:[%s4724_s12 + $0x3a8] sm:$0xff] %v2644_v63  ;;  %3625 = vpow2.f32 %v2335_v53  ;;  %v2343_v39 = vmul.f32 1.442695, %v2177_v21  ;;  %p3928_p2 = pnand %p3927_p12, %p3921_p3 }
 0x369   : > { %v3616_v4 = vpop.eup %3615  ;;  %3627 = vpow2.f32 %v2341_v48 }
 0x36a   : > { %v3618_v13 = vpop.eup %3617  ;;  %v2645_v12 = vmul.f32 %v3616_v4, %v5605_v6  ;;  %3629 = vpow2.f32 %v2343_v39  ;;  %v2180_v40 = vpop.f32.mrb[68].mxu1 }
 0x36b   : > { %v3620_v63 = vpop.eup %3619  ;;  %v2646_v7 = vmul.f32 %v3618_v13, %v5606_v25  ;;  %v2181_v36 = vadd.f32 %v2180_v40, %v5153_v41  ;;  %v2182_v21 = vpop.f32.mrb[69].mxu1 }
 0x36c   : > { %v3622_v5 = vpop.eup %3621  ;;  %2709 = vst [vmem:[%s4724_s12 + $0x3c0] sm:$0xff] %v2645_v12  ;;  %v2647_v11 = vmul.f32 %v3620_v63, %v529_v46  ;;  %v2183_v53 = vadd.f32 %v2182_v21, %v5156_v55  ;;  %v2184_v48 = vpop.f32.mrb[70].mxu1 }
 0x36d   : > { %2710 = vst [vmem:[%s4724_s12 + $0x3c8] sm:$0xff] %v2646_v7  ;;  %v2648_v39 = vmul.f32 %v3622_v5, %v530_v35  ;;  %v2349_v4 = vmul.f32 1.442695, %v2181_v36  ;;  %v2185_v6 = vadd.f32 %v2184_v48, %v5153_v41  ;;  %v2186_v13 = vpop.f32.mrb[71].mxu1  ;;  %v5675_v5 = vsub.f32 1.0, %v4243_v26 }
 0x36e   : > { %2711 = vst [vmem:[%s4724_s12 + $0x3e0] sm:$0xff] %v2647_v11  ;;  %v2351_v25 = vmul.f32 1.442695, %v2183_v53  ;;  %v2187_v40 = vadd.f32 %v2186_v13, %v5156_v55  ;;  %v5676_v53 = vsub.f32 1.0, %v4229_v18 }
 0x36f   : > { %2712 = vst [vmem:[%s4724_s12 + $0x3e8] sm:$0xff] %v2648_v39  ;;  %3631 = vpow2.f32 %v2349_v4  ;;  %v2357_v12 = vmul.f32 1.442695, %v2185_v6  ;;  %v5677_v4 = vsub.f32 1.0, %v4246_v27 }
 0x370   : > { %3633 = vpow2.f32 %v2351_v25  ;;  %v2359_v63 = vmul.f32 1.442695, %v2187_v40 }
 0x371   : > { %v3624_v21 = vpop.eup %3623  ;;  %3635 = vpow2.f32 %v2357_v12 }
 0x372   : > { %v3626_v7 = vpop.eup %3625  ;;  %v2713_v36 = vmul.f32 %v3624_v21, %v5675_v5  ;;  %3637 = vpow2.f32 %v2359_v63  ;;  %v2190_v48 = vpop.f32.mrb[72].mxu1  ;;  %v5678_v63 = vsub.f32 1.0, %v4233_v20  ;;  %v5679_v20 = vsub.f32 1.0, %v4273_v0 }
 0x373   : > { %v3628_v11 = vpop.eup %3627  ;;  %v2714_v13 = vmul.f32 %v3626_v7, %v5676_v53  ;;  %v2191_v39 = vadd.f32 %v2190_v48, %v5153_v41  ;;  %v2192_v6 = vpop.f32.mrb[73].mxu1 }
 0x374   : > { %v3630_v25 = vpop.eup %3629  ;;  %2777 = vst [vmem:[%s4724_s12 + $0x10] sm:$0xff] %v2713_v36  ;;  %v2715_v40 = vmul.f32 %v3628_v11, %v5677_v4  ;;  %v2193_v12 = vadd.f32 %v2192_v6, %v5156_v55  ;;  %v2194_v26 = vpop.f32.mrb[74].mxu1  ;;  %v5680_v4 = vsub.f32 1.0, %v4261_v60 }
 0x375   : > { %2778 = vst [vmem:[%s4724_s12 + $0x18] sm:$0xff] %v2714_v13  ;;  %v2716_v21 = vmul.f32 %v3630_v25, %v5678_v63  ;;  %v2365_v5 = vmul.f32 1.442695, %v2191_v39  ;;  %v2195_v18 = vadd.f32 %v2194_v26, %v5153_v41  ;;  %v2196_v7 = vpop.f32.mrb[75].mxu1 }
 0x376   : > { %2779 = vst [vmem:[%s4724_s12 + $0x30] sm:$0xff] %v2715_v40  ;;  %v2367_v53 = vmul.f32 1.442695, %v2193_v12  ;;  %v2197_v48 = vadd.f32 %v2196_v7, %v5156_v55  ;;  %v5682_v7 = vsub.f32 1.0, %v4264_v61  ;;  %v5683_v61 = vsub.f32 1.0, %v4301_v23 }
 0x377   : > { %2780 = vst [vmem:[%s4724_s12 + $0x38] sm:$0xff] %v2716_v21  ;;  %3639 = vpow2.f32 %v2365_v5  ;;  %v2373_v27 = vmul.f32 1.442695, %v2195_v18  ;;  %v5681_v21 = vsub.f32 1.0, %v4276_v1 }
 0x378   : > { %3641 = vpow2.f32 %v2367_v53  ;;  %v2375_v36 = vmul.f32 1.442695, %v2197_v48 }
 0x379   : > { %v3632_v11 = vpop.eup %3631  ;;  %3643 = vpow2.f32 %v2373_v27 }
 0x37a   : > { %v3634_v13 = vpop.eup %3633  ;;  %v2717_v39 = vmul.f32 %v3632_v11, %v5679_v20  ;;  %3645 = vpow2.f32 %v2375_v36  ;;  %v2200_v6 = vpop.f32.mrb[76].mxu1 }
 0x37b   : > { %v3636_v25 = vpop.eup %3635  ;;  %v2718_v40 = vmul.f32 %v3634_v13, %v5680_v4  ;;  %v2201_v12 = vadd.f32 %v2200_v6, %v5153_v41  ;;  %v2202_v26 = vpop.f32.mrb[77].mxu1 }
 0x37c   : > { %v3638_v63 = vpop.eup %3637  ;;  %2781 = vst [vmem:[%s4724_s12 + $0x50] sm:$0xff] %v2717_v39  ;;  %v2719_v5 = vmul.f32 %v3636_v25, %v5681_v21  ;;  %v2203_v18 = vadd.f32 %v2202_v26, %v5156_v55  ;;  %v2204_v0 = vpop.f32.mrb[78].mxu1 }
 0x37d   : > { %2782 = vst [vmem:[%s4724_s12 + $0x58] sm:$0xff] %v2718_v40  ;;  %v2720_v53 = vmul.f32 %v3638_v63, %v5682_v7  ;;  %v2381_v48 = vmul.f32 1.442695, %v2201_v12  ;;  %v2205_v60 = vadd.f32 %v2204_v0, %v5153_v41  ;;  %v2206_v27 = vpop.f32.mrb[79].mxu1  ;;  %v5684_v40 = vsub.f32 1.0, %v4289_v14 }
 0x37e   : > { %2783 = vst [vmem:[%s4724_s12 + $0x70] sm:$0xff] %v2719_v5  ;;  %v2383_v36 = vmul.f32 1.442695, %v2203_v18  ;;  %v2207_v11 = vadd.f32 %v2206_v27, %v5156_v55  ;;  %v5685_v5 = vsub.f32 1.0, %v5633_v2  ;;  %v5686_v7 = vsub.f32 1.0, %v5634_v47 }
 0x37f   : > { %2784 = vst [vmem:[%s4724_s12 + $0x78] sm:$0xff] %v2720_v53  ;;  %3647 = vpow2.f32 %v2381_v48  ;;  %v2389_v1 = vmul.f32 1.442695, %v2205_v60  ;;  %v5687_v47 = vsub.f32 1.0, %v5635_v9 }
 0x380   : > { %3649 = vpow2.f32 %v2383_v36  ;;  %v2391_v13 = vmul.f32 1.442695, %v2207_v11 }
 0x381   : > { %v3640_v20 = vpop.eup %3639  ;;  %3651 = vpow2.f32 %v2389_v1 }
 0x382   : > { %v3642_v39 = vpop.eup %3641  ;;  %v2721_v6 = vmul.f32 %v3640_v20, %v5683_v61  ;;  %3653 = vpow2.f32 %v2391_v13  ;;  %v2210_v25 = vpop.f32.mrb[80].mxu1 }
 0x383   : > { %v3644_v4 = vpop.eup %3643  ;;  %v2722_v12 = vmul.f32 %v3642_v39, %v5684_v40  ;;  %v2211_v26 = vadd.f32 %v2210_v25, %v5153_v41  ;;  %v2212_v63 = vpop.f32.mrb[81].mxu1 }
 0x384   : > { %v3646_v21 = vpop.eup %3645  ;;  %2785 = vst [vmem:[%s4724_s12 + $0x90] sm:$0xff] %v2721_v6  ;;  %v2723_v18 = vmul.f32 %v3644_v4, %v5685_v5  ;;  %v2213_v0 = vadd.f32 %v2212_v63, %v5156_v55  ;;  %v2214_v23 = vpop.f32.mrb[82].mxu1  ;;  %v5688_v6 = vsub.f32 1.0, %v5636_v52  ;;  %v5690_v5 = vsub.f32 1.0, %v5638_v49 }
 0x385   : > { %2786 = vst [vmem:[%s4724_s12 + $0x98] sm:$0xff] %v2722_v12  ;;  %v2724_v53 = vmul.f32 %v3646_v21, %v5686_v7  ;;  %v2397_v48 = vmul.f32 1.442695, %v2211_v26  ;;  %v2215_v14 = vadd.f32 %v2214_v23, %v5153_v41  ;;  %v2216_v60 = vpop.f32.mrb[83].mxu1  ;;  %v5689_v26 = vsub.f32 1.0, %v5637_v62 }
 0x386   : > { %2787 = vst [vmem:[%s4724_s12 + $0xb0] sm:$0xff] %v2723_v18  ;;  %v2399_v27 = vmul.f32 1.442695, %v2213_v0  ;;  %v2217_v36 = vadd.f32 %v2216_v60, %v5156_v55  ;;  %v5691_v49 = vsub.f32 1.0, %v5639_v15 }
 0x387   : > { %2788 = vst [vmem:[%s4724_s12 + $0xb8] sm:$0xff] %v2724_v53  ;;  %3655 = vpow2.f32 %v2397_v48  ;;  %v2405_v2 = vmul.f32 1.442695, %v2215_v14 }
 0x388   : > { %3657 = vpow2.f32 %v2399_v27  ;;  %v2407_v11 = vmul.f32 1.442695, %v2217_v36 }
 0x389   : > { %v3648_v1 = vpop.eup %3647  ;;  %3659 = vpow2.f32 %v2405_v2 }
 0x38a   : > { %v3650_v13 = vpop.eup %3649  ;;  %v2725_v20 = vmul.f32 %v3648_v1, %v5687_v47  ;;  %3661 = vpow2.f32 %v2407_v11  ;;  %v2220_v39 = vpop.f32.mrb[84].mxu1  ;;  %v5692_v11 = vsub.f32 1.0, %v5640_v16 }
 0x38b   : > { %v3652_v61 = vpop.eup %3651  ;;  %v2726_v25 = vmul.f32 %v3650_v13, %v5688_v6  ;;  %v2221_v4 = vadd.f32 %v2220_v39, %v5153_v41  ;;  %v2222_v40 = vpop.f32.mrb[85].mxu1  ;;  %v5693_v39 = vsub.f32 1.0, %v5641_v3 }
 0x38c   : > { %v3654_v12 = vpop.eup %3653  ;;  %2789 = vst [vmem:[%s4724_s12 + $0xd0] sm:$0xff] %v2725_v20  ;;  %v2727_v63 = vmul.f32 %v3652_v61, %v5689_v26  ;;  %v2223_v21 = vadd.f32 %v2222_v40, %v5156_v55  ;;  %v2224_v9 = vpop.f32.mrb[86].mxu1 }
 0x38d   : > { %2790 = vst [vmem:[%s4724_s12 + $0xd8] sm:$0xff] %v2726_v25  ;;  %v2728_v18 = vmul.f32 %v3654_v12, %v5690_v5  ;;  %v2413_v0 = vmul.f32 1.442695, %v2221_v4  ;;  %v2225_v52 = vadd.f32 %v2224_v9, %v5153_v41  ;;  %v2226_v23 = vpop.f32.mrb[87].mxu1  ;;  %v5694_v25 = vsub.f32 1.0, %v5642_v22 }
 0x38e   : > { %2791 = vst [vmem:[%s4724_s12 + $0xf0] sm:$0xff] %v2727_v63  ;;  %v2415_v7 = vmul.f32 1.442695, %v2223_v21  ;;  %v2227_v53 = vadd.f32 %v2226_v23, %v5156_v55  ;;  %v5695_v22 = vsub.f32 1.0, %v5643_v19  ;;  %v5696_v23 = vsub.f32 1.0, %v5644_v57 }
 0x38f   : > { %2792 = vst [vmem:[%s4724_s12 + $0xf8] sm:$0xff] %v2728_v18  ;;  %3663 = vpow2.f32 %v2413_v0  ;;  %v2421_v62 = vmul.f32 1.442695, %v2225_v52 }
 0x390   : > { %3665 = vpow2.f32 %v2415_v7  ;;  %v2423_v48 = vmul.f32 1.442695, %v2227_v53 }
 0x391   : > { %v3656_v14 = vpop.eup %3655  ;;  %3667 = vpow2.f32 %v2421_v62 }
 0x392   : > { %v3658_v60 = vpop.eup %3657  ;;  %v2729_v27 = vmul.f32 %v3656_v14, %v5691_v49  ;;  %3669 = vpow2.f32 %v2423_v48  ;;  %v2230_v36 = vpop.f32.mrb[88].mxu1  ;;  %v5697_v14 = vsub.f32 1.0, %v5645_v31 }
 0x393   : > { %v3660_v2 = vpop.eup %3659  ;;  %v2730_v1 = vmul.f32 %v3658_v60, %v5692_v11  ;;  %v2231_v13 = vadd.f32 %v2230_v36, %v5153_v41  ;;  %v2232_v47 = vpop.f32.mrb[89].mxu1 }
 0x394   : > { %v3662_v20 = vpop.eup %3661  ;;  %2793 = vst [vmem:[%s4724_s12 + $0x110] sm:$0xff] %v2729_v27  ;;  %v2731_v61 = vmul.f32 %v3660_v2, %v5693_v39  ;;  %v2233_v6 = vadd.f32 %v2232_v47, %v5156_v55  ;;  %v2234_v15 = vpop.f32.mrb[90].mxu1  ;;  %v5698_v27 = vsub.f32 1.0, %v5646_v8  ;;  %v5699_v8 = vsub.f32 1.0, %v4828_v30 }
 0x395   : > { %2794 = vst [vmem:[%s4724_s12 + $0x118] sm:$0xff] %v2730_v1  ;;  %v2732_v4 = vmul.f32 %v3662_v20, %v5694_v25  ;;  %v2429_v40 = vmul.f32 1.442695, %v2231_v13  ;;  %v2235_v16 = vadd.f32 %v2234_v15, %v5153_v41  ;;  %v2236_v12 = vpop.f32.mrb[91].mxu1  ;;  %v5700_v25 = vsub.f32 1.0, %v4834_v28 }
 0x396   : > { %2795 = vst [vmem:[%s4724_s12 + $0x130] sm:$0xff] %v2731_v61  ;;  %v2431_v26 = vmul.f32 1.442695, %v2233_v6  ;;  %v2237_v63 = vadd.f32 %v2236_v12, %v5156_v55 }
 0x397   : > { %2796 = vst [vmem:[%s4724_s12 + $0x138] sm:$0xff] %v2732_v4  ;;  %3671 = vpow2.f32 %v2429_v40  ;;  %v2437_v3 = vmul.f32 1.442695, %v2235_v16 }
 0x398   : > { %3673 = vpow2.f32 %v2431_v26  ;;  %v2439_v21 = vmul.f32 1.442695, %v2237_v63  ;;  %v5701_v26 = vsub.f32 1.0, %v4841_v42 }
 0x399   : > { %v3664_v9 = vpop.eup %3663  ;;  %3675 = vpow2.f32 %v2437_v3 }
 0x39a   : > { %v3666_v5 = vpop.eup %3665  ;;  %v2733_v18 = vmul.f32 %v3664_v9, %v5695_v22  ;;  %3677 = vpow2.f32 %v2439_v21  ;;  %v2240_v0 = vpop.f32.mrb[92].mxu1  ;;  %v5702_v21 = vsub.f32 1.0, %v4849_v29  ;;  %v5703_v29 = vsub.f32 1.0, %v4864_v56 }
 0x39b   : > { %v3668_v52 = vpop.eup %3667  ;;  %v2734_v7 = vmul.f32 %v3666_v5, %v5696_v23  ;;  %v2241_v53 = vadd.f32 %v2240_v0, %v5153_v41  ;;  %v2242_v62 = vpop.f32.mrb[93].mxu1 }
 0x39c   : > { %v3670_v48 = vpop.eup %3669  ;;  %2797 = vst [vmem:[%s4724_s12 + $0x150] sm:$0xff] %v2733_v18  ;;  %v2735_v60 = vmul.f32 %v3668_v52, %v5697_v14  ;;  %v2243_v49 = vadd.f32 %v2242_v62, %v5156_v55  ;;  %v2244_v19 = vpop.f32.mrb[94].mxu1  ;;  %v5704_v14 = vsub.f32 1.0, %v4870_v34 }
 0x39d   : > { %2798 = vst [vmem:[%s4724_s12 + $0x158] sm:$0xff] %v2734_v7  ;;  %v2736_v36 = vmul.f32 %v3670_v48, %v5698_v27  ;;  %v2445_v2 = vmul.f32 1.442695, %v2241_v53  ;;  %v2245_v57 = vadd.f32 %v2244_v19, %v5153_v41  ;;  %v2246_v11 = vpop.f32.mrb[95].mxu1 }
 0x39e   : > { %2799 = vst [vmem:[%s4724_s12 + $0x170] sm:$0xff] %v2735_v60  ;;  %v2447_v1 = vmul.f32 1.442695, %v2243_v49  ;;  %v2247_v13 = vadd.f32 %v2246_v11, %v5156_v55  ;;  %v5706_v11 = vsub.f32 1.0, %v4885_v59  ;;  %v5707_v59 = vsub.f32 1.0, %v4900_v43 }
 0x39f   : > { %2800 = vst [vmem:[%s4724_s12 + $0x178] sm:$0xff] %v2736_v36  ;;  %3679 = vpow2.f32 %v2445_v2  ;;  %v2453_v31 = vmul.f32 1.442695, %v2245_v57  ;;  %v5705_v36 = vsub.f32 1.0, %v4877_v17 }
 0x3a0   : > { %3681 = vpow2.f32 %v2447_v1  ;;  %v2455_v47 = vmul.f32 1.442695, %v2247_v13 }
 0x3a1   : > { %v3672_v20 = vpop.eup %3671  ;;  %3683 = vpow2.f32 %v2453_v31 }
 0x3a2   : > { %v3674_v39 = vpop.eup %3673  ;;  %v2737_v61 = vmul.f32 %v3672_v20, %v5699_v8  ;;  %3685 = vpow2.f32 %v2455_v47  ;;  %v2250_v6 = vpop.f32.mrb[96].mxu1 }
 0x3a3   : > { %v3676_v15 = vpop.eup %3675  ;;  %v2738_v4 = vmul.f32 %v3674_v39, %v5700_v25  ;;  %v2251_v40 = vadd.f32 %v2250_v6, %v5153_v41  ;;  %v2252_v16 = vpop.f32.mrb[97].mxu1 }
 0x3a4   : > { %v3678_v12 = vpop.eup %3677  ;;  %2801 = vst [vmem:[%s4724_s12 + $0x190] sm:$0xff] %v2737_v61  ;;  %v2739_v63 = vmul.f32 %v3676_v15, %v5701_v26  ;;  %v2253_v3 = vadd.f32 %v2252_v16, %v5156_v55  ;;  %v2254_v30 = vpop.f32.mrb[98].mxu1 }
 0x3a5   : > { %2802 = vst [vmem:[%s4724_s12 + $0x198] sm:$0xff] %v2738_v4  ;;  %v2740_v9 = vmul.f32 %v3678_v12, %v5702_v21  ;;  %v2461_v5 = vmul.f32 1.442695, %v2251_v40  ;;  %v2255_v28 = vadd.f32 %v2254_v30, %v5153_v41  ;;  %v2256_v22 = vpop.f32.mrb[99].mxu1  ;;  %v5708_v4 = vsub.f32 1.0, %v4906_v54 }
 0x3a6   : > { %2803 = vst [vmem:[%s4724_s12 + $0x1b0] sm:$0xff] %v2739_v63  ;;  %v2463_v18 = vmul.f32 1.442695, %v2253_v3  ;;  %v2257_v0 = vadd.f32 %v2256_v22, %v5156_v55  ;;  %v5709_v63 = vsub.f32 1.0, %v4913_v51  ;;  %v5710_v21 = vsub.f32 1.0, %v4921_v44 }
 0x3a7   : > { %2804 = vst [vmem:[%s4724_s12 + $0x1b8] sm:$0xff] %v2740_v9  ;;  %3687 = vpow2.f32 %v2461_v5  ;;  %v2469_v42 = vmul.f32 1.442695, %v2255_v28  ;;  %v5711_v44 = vsub.f32 1.0, %v4936_v58 }
 0x3a8   : > { %3689 = vpow2.f32 %v2463_v18  ;;  %v2471_v52 = vmul.f32 1.442695, %v2257_v0 }
 0x3a9   : > { %v3680_v23 = vpop.eup %3679  ;;  %3691 = vpow2.f32 %v2469_v42 }
 0x3aa   : > { %v3682_v7 = vpop.eup %3681  ;;  %v2741_v53 = vmul.f32 %v3680_v23, %v5703_v29  ;;  %3693 = vpow2.f32 %v2471_v52  ;;  %v2260_v62 = vpop.f32.mrb[100].mxu1 }
 0x3ab   : > { %v3684_v48 = vpop.eup %3683  ;;  %v2742_v60 = vmul.f32 %v3682_v7, %v5704_v14  ;;  %v2261_v49 = vadd.f32 %v2260_v62, %v5153_v41  ;;  %v2262_v19 = vpop.f32.mrb[101].mxu1 }
 0x3ac   : > { %v3686_v27 = vpop.eup %3685  ;;  %2805 = vst [vmem:[%s4724_s12 + $0x1d0] sm:$0xff] %v2741_v53  ;;  %v2743_v2 = vmul.f32 %v3684_v48, %v5705_v36  ;;  %v2263_v57 = vadd.f32 %v2262_v19, %v5156_v55  ;;  %v2264_v56 = vpop.f32.mrb[102].mxu1  ;;  %v5712_v53 = vld [vmem:[#allocation13_spill] sm:$0xff]  ;;  %v5714_v19 = vld [vmem:[#allocation12_spill] sm:$0xff] }
 0x3ad   : > { %2806 = vst [vmem:[%s4724_s12 + $0x1d8] sm:$0xff] %v2742_v60  ;;  %v2744_v1 = vmul.f32 %v3686_v27, %v5706_v11  ;;  %v2477_v13 = vmul.f32 1.442695, %v2261_v49  ;;  %v2265_v34 = vadd.f32 %v2264_v56, %v5153_v41  ;;  %v2266_v31 = vpop.f32.mrb[103].mxu1  ;;  %v5713_v62 = vsub.f32 1.0, %v5712_v53 }
 0x3ae   : > { %2807 = vst [vmem:[%s4724_s12 + $0x1f0] sm:$0xff] %v2743_v2  ;;  %v2479_v47 = vmul.f32 1.442695, %v2263_v57  ;;  %v2267_v20 = vadd.f32 %v2266_v31, %v5156_v55  ;;  %v5715_v27 = vsub.f32 1.0, %v5714_v19  ;;  %v5716_v57 = vld [vmem:[#allocation16_spill] sm:$0xff] }
 0x3af   : > { %2808 = vst [vmem:[%s4724_s12 + $0x1f8] sm:$0xff] %v2744_v1  ;;  %3695 = vpow2.f32 %v2477_v13  ;;  %v2485_v17 = vmul.f32 1.442695, %v2265_v34  ;;  %v5717_v56 = vsub.f32 1.0, %v5716_v57 }
 0x3b0   : > { %3697 = vpow2.f32 %v2479_v47  ;;  %v2487_v39 = vmul.f32 1.442695, %v2267_v20 }
 0x3b1   : > { %v3688_v8 = vpop.eup %3687  ;;  %3699 = vpow2.f32 %v2485_v17 }
 0x3b2   : > { %v3690_v61 = vpop.eup %3689  ;;  %v2745_v6 = vmul.f32 %v3688_v8, %v5707_v59  ;;  %3701 = vpow2.f32 %v2487_v39  ;;  %v2270_v15 = vpop.f32.mrb[104].mxu1 }
 0x3b3   : > { %v3692_v25 = vpop.eup %3691  ;;  %v2746_v40 = vmul.f32 %v3690_v61, %v5708_v4  ;;  %v2271_v16 = vadd.f32 %v2270_v15, %v5153_v41  ;;  %v2272_v12 = vpop.f32.mrb[105].mxu1  ;;  %v5718_v61 = vld [vmem:[#allocation14_spill] sm:$0xff]  ;;  %v5720_v4 = vld [vmem:[#allocation17_spill] sm:$0xff] }
 0x3b4   : > { %v3694_v26 = vpop.eup %3693  ;;  %2809 = vst [vmem:[%s4724_s12 + $0x210] sm:$0xff] %v2745_v6  ;;  %v2747_v3 = vmul.f32 %v3692_v25, %v5709_v63  ;;  %v2273_v30 = vadd.f32 %v2272_v12, %v5156_v55  ;;  %v2274_v43 = vpop.f32.mrb[106].mxu1  ;;  %v5719_v59 = vsub.f32 1.0, %v5718_v61 }
 0x3b5   : > { %2810 = vst [vmem:[%s4724_s12 + $0x218] sm:$0xff] %v2746_v40  ;;  %v2748_v9 = vmul.f32 %v3694_v26, %v5710_v21  ;;  %v2493_v5 = vmul.f32 1.442695, %v2271_v16  ;;  %v2275_v54 = vadd.f32 %v2274_v43, %v5153_v41  ;;  %v2276_v28 = vpop.f32.mrb[107].mxu1  ;;  %v5721_v40 = vsub.f32 1.0, %v5720_v4 }
 0x3b6   : > { %2811 = vst [vmem:[%s4724_s12 + $0x230] sm:$0xff] %v2747_v3  ;;  %v2495_v22 = vmul.f32 1.442695, %v2273_v30  ;;  %v2277_v18 = vadd.f32 %v2276_v28, %v5156_v55  ;;  %v5722_v3 = vld [vmem:[#allocation15_spill] sm:$0xff] }
 0x3b7   : > { %2812 = vst [vmem:[%s4724_s12 + $0x238] sm:$0xff] %v2748_v9  ;;  %3703 = vpow2.f32 %v2493_v5  ;;  %v2501_v51 = vmul.f32 1.442695, %v2275_v54  ;;  %v5723_v30 = vsub.f32 1.0, %v5722_v3  ;;  %v5724_v5 = vld [vmem:[#allocation20_spill] sm:$0xff] }
 0x3b8   : > { %3705 = vpow2.f32 %v2495_v22  ;;  %v2503_v0 = vmul.f32 1.442695, %v2277_v18  ;;  %v5725_v54 = vsub.f32 1.0, %v5724_v5 }
 0x3b9   : > { %v3696_v42 = vpop.eup %3695  ;;  %3707 = vpow2.f32 %v2501_v51 }
 0x3ba   : > { %v3698_v52 = vpop.eup %3697  ;;  %v2749_v23 = vmul.f32 %v3696_v42, %v5711_v44  ;;  %3709 = vpow2.f32 %v2503_v0  ;;  %v2280_v7 = vpop.f32.mrb[108].mxu1 }
 0x3bb   : > { %v3700_v29 = vpop.eup %3699  ;;  %v2750_v48 = vmul.f32 %v3698_v52, %v5713_v62  ;;  %v2281_v14 = vadd.f32 %v2280_v7, %v5153_v41  ;;  %v2282_v60 = vpop.f32.mrb[109].mxu1 }
 0x3bc   : > { %v3702_v49 = vpop.eup %3701  ;;  %2813 = vst [vmem:[%s4724_s12 + $0x250] sm:$0xff] %v2749_v23  ;;  %v2751_v36 = vmul.f32 %v3700_v29, %v5715_v27  ;;  %v2283_v2 = vadd.f32 %v2282_v60, %v5156_v55  ;;  %v2284_v58 = vpop.f32.mrb[110].mxu1  ;;  %v5726_v29 = vld [vmem:[#allocation18_spill] sm:$0xff]  ;;  %v5728_v60 = vld [vmem:[#allocation21_spill] sm:$0xff] }
 0x3bd   : > { %2814 = vst [vmem:[%s4724_s12 + $0x258] sm:$0xff] %v2750_v48  ;;  %v2752_v11 = vmul.f32 %v3702_v49, %v5717_v56  ;;  %v2509_v1 = vmul.f32 1.442695, %v2281_v14  ;;  %v2285_v13 = vadd.f32 %v2284_v58, %v5153_v41  ;;  %v2286_v34 = vpop.f32.mrb[111].mxu1  ;;  %v5727_v53 = vsub.f32 1.0, %v5726_v29  ;;  %v5730_v58 = vld [vmem:[#allocation19_spill] sm:$0xff] }
 0x3be   : > { %2815 = vst [vmem:[%s4724_s12 + $0x270] sm:$0xff] %v2751_v36  ;;  %v2511_v31 = vmul.f32 1.442695, %v2283_v2  ;;  %v2287_v47 = vadd.f32 %v2286_v34, %v5156_v55  ;;  %v5729_v49 = vsub.f32 1.0, %v5728_v60  ;;  %v5731_v57 = vsub.f32 1.0, %v5730_v58 }
 0x3bf   : > { %2816 = vst [vmem:[%s4724_s12 + $0x278] sm:$0xff] %v2752_v11  ;;  %3711 = vpow2.f32 %v2509_v1  ;;  %v2517_v20 = vmul.f32 1.442695, %v2285_v13  ;;  %v5732_v13 = vld [vmem:[#allocation24_spill] sm:$0xff] }
 0x3c0   : > { %3713 = vpow2.f32 %v2511_v31  ;;  %v2519_v17 = vmul.f32 1.442695, %v2287_v47  ;;  %v5733_v34 = vsub.f32 1.0, %v5732_v13 }
 0x3c1   : > { %v3704_v39 = vpop.eup %3703  ;;  %3715 = vpow2.f32 %v2517_v20 }
 0x3c2   : > { %v3706_v8 = vpop.eup %3705  ;;  %v2753_v6 = vmul.f32 %v3704_v39, %v5719_v59  ;;  %3717 = vpow2.f32 %v2519_v17  ;;  %v2290_v15 = vpop.f32.mrb[112].mxu1 }
 0x3c3   : > { %v3708_v25 = vpop.eup %3707  ;;  %v2754_v16 = vmul.f32 %v3706_v8, %v5721_v40  ;;  %v2291_v12 = vadd.f32 %v2290_v15, %v5153_v41  ;;  %v2292_v26 = vpop.f32.mrb[113].mxu1 }
 0x3c4   : > { %v3710_v63 = vpop.eup %3709  ;;  %2817 = vst [vmem:[%s4724_s12 + $0x290] sm:$0xff] %v2753_v6  ;;  %v2755_v43 = vmul.f32 %v3708_v25, %v5723_v30  ;;  %v2293_v21 = vadd.f32 %v2292_v26, %v5156_v55  ;;  %v2294_v9 = vpop.f32.mrb[114].mxu1  ;;  %v5734_v25 = vld [vmem:[#allocation22_spill] sm:$0xff]  ;;  %v5736_v26 = vld [vmem:[#allocation25_spill] sm:$0xff] }
 0x3c5   : > { %2818 = vst [vmem:[%s4724_s12 + $0x298] sm:$0xff] %v2754_v16  ;;  %v2756_v28 = vmul.f32 %v3710_v63, %v5725_v54  ;;  %v2525_v22 = vmul.f32 1.442695, %v2291_v12  ;;  %v2295_v18 = vadd.f32 %v2294_v9, %v5153_v41  ;;  %v2296_v51 = vpop.f32.mrb[115].mxu1  ;;  %v5735_v4 = vsub.f32 1.0, %v5734_v25  ;;  %v5738_v9 = vld [vmem:[#allocation23_spill] sm:$0xff] }
 0x3c6   : > { %2819 = vst [vmem:[%s4724_s12 + $0x2b0] sm:$0xff] %v2755_v43  ;;  %v2527_v0 = vmul.f32 1.442695, %v2293_v21  ;;  %v2297_v42 = vadd.f32 %v2296_v51, %v5156_v55  ;;  %v5737_v63 = vsub.f32 1.0, %v5736_v26  ;;  %v5739_v5 = vsub.f32 1.0, %v5738_v9 }
 0x3c7   : > { %2820 = vst [vmem:[%s4724_s12 + $0x2b8] sm:$0xff] %v2756_v28  ;;  %3719 = vpow2.f32 %v2525_v22  ;;  %v2533_v52 = vmul.f32 1.442695, %v2295_v18  ;;  %v5740_v18 = vld [vmem:[#allocation26_spill] sm:$0xff] }
 0x3c8   : > { %3721 = vpow2.f32 %v2527_v0  ;;  %v2535_v44 = vmul.f32 1.442695, %v2297_v42  ;;  %v5741_v51 = vsub.f32 1.0, %v5740_v18 }
 0x3c9   : > { %v3712_v23 = vpop.eup %3711  ;;  %3723 = vpow2.f32 %v2533_v52 }
 0x3ca   : > { %v3714_v7 = vpop.eup %3713  ;;  %v2757_v62 = vmul.f32 %v3712_v23, %v5727_v53  ;;  %3725 = vpow2.f32 %v2535_v44  ;;  %v2300_v48 = vpop.f32.mrb[116].mxu1 }
 0x3cb   : > { %v3716_v14 = vpop.eup %3715  ;;  %v2758_v19 = vmul.f32 %v3714_v7, %v5729_v49  ;;  %v2301_v27 = vadd.f32 %v2300_v48, %v5153_v41  ;;  %v2302_v36 = vpop.f32.mrb[117].mxu1 }
 0x3cc   : > { %v3718_v2 = vpop.eup %3717  ;;  %2821 = vst [vmem:[%s4724_s12 + $0x2d0] sm:$0xff] %v2757_v62  ;;  %v2759_v56 = vmul.f32 %v3716_v14, %v5731_v57  ;;  %v2303_v11 = vadd.f32 %v2302_v36, %v5156_v55  ;;  %v2304_v1 = vpop.f32.mrb[118].mxu1  ;;  %v5742_v14 = vld [vmem:[#allocation27_spill] sm:$0xff]  ;;  %v5744_v36 = vld [vmem:[#allocation28_spill] sm:$0xff] }
 0x3cd   : > { %2822 = vst [vmem:[%s4724_s12 + $0x2d8] sm:$0xff] %v2758_v19  ;;  %v2760_v31 = vmul.f32 %v3718_v2, %v5733_v34  ;;  %v2541_v47 = vmul.f32 1.442695, %v2301_v27  ;;  %v2305_v20 = vadd.f32 %v2304_v1, %v5153_v41  ;;  %v2306_v17 = vpop.f32.mrb[119].mxu1  ;;  %v5743_v60 = vsub.f32 1.0, %v5742_v14 }
 0x3ce   : > { %2823 = vst [vmem:[%s4724_s12 + $0x2f0] sm:$0xff] %v2759_v56  ;;  %v2543_v39 = vmul.f32 1.442695, %v2303_v11  ;;  %v2307_v8 = vadd.f32 %v2306_v17, %v5156_v55  ;;  %v5745_v2 = vsub.f32 1.0, %v5744_v36  ;;  %v5746_v1 = vsub.f32 1.0, %v5093_v37 }
 0x3cf   : > { %2824 = vst [vmem:[%s4724_s12 + $0x2f8] sm:$0xff] %v2760_v31  ;;  %3727 = vpow2.f32 %v2541_v47  ;;  %v2549_v61 = vmul.f32 1.442695, %v2305_v20  ;;  %v5747_v47 = vsub.f32 1.0, %v5101_v45 }
 0x3d0   : > { %3729 = vpow2.f32 %v2543_v39  ;;  %v2551_v59 = vmul.f32 1.442695, %v2307_v8 }
 0x3d1   : > { %v3720_v6 = vpop.eup %3719  ;;  %3731 = vpow2.f32 %v2549_v61 }
 0x3d2   : > { %v3722_v15 = vpop.eup %3721  ;;  %v2761_v40 = vmul.f32 %v3720_v6, %v5735_v4  ;;  %3733 = vpow2.f32 %v2551_v59  ;;  %v2310_v16 = vpop.f32.mrb[120].mxu1 }
 0x3d3   : > { %v3724_v12 = vpop.eup %3723  ;;  %v2762_v3 = vmul.f32 %v3722_v15, %v5737_v63  ;;  %v2311_v30 = vadd.f32 %v2310_v16, %v5153_v41  ;;  %v2312_v43 = vpop.f32.mrb[121].mxu1  ;;  %v5750_v16 = vld [vmem:[#allocation30_spill] sm:$0xff]  ;;  %v5752_v63 = vsub.f32 1.0, %v5130_v50 }
 0x3d4   : > { %v3726_v21 = vpop.eup %3725  ;;  %2825 = vst [vmem:[%s4724_s12 + $0x310] sm:$0xff] %v2761_v40  ;;  %v2763_v54 = vmul.f32 %v3724_v12, %v5739_v5  ;;  %v2313_v28 = vadd.f32 %v2312_v43, %v5156_v55  ;;  %v2314_v22 = vpop.f32.mrb[122].mxu1  ;;  %v5754_v5 = vsub.f32 1.0, %v5161_v38 }
 0x3d5   : > { %2826 = vst [vmem:[%s4724_s12 + $0x318] sm:$0xff] %v2762_v3  ;;  %v2764_v0 = vmul.f32 %v3726_v21, %v5741_v51  ;;  %v2557_v42 = vmul.f32 1.442695, %v2311_v30  ;;  %v2315_v52 = vadd.f32 %v2314_v22, %v5153_v41  ;;  %v2316_v44 = vpop.f32.mrb[123].mxu1  ;;  %v5753_v30 = vsub.f32 1.0, %v5139_v24 }
 0x3d6   : > { %2827 = vst [vmem:[%s4724_s12 + $0x330] sm:$0xff] %v2763_v54  ;;  %v2559_v23 = vmul.f32 1.442695, %v2313_v28  ;;  %v2317_v7 = vadd.f32 %v2316_v44, %v5156_v55  ;;  %v5755_v28 = vsub.f32 1.0, %v5167_v33 }
 0x3d7   : > { %2828 = vst [vmem:[%s4724_s12 + $0x338] sm:$0xff] %v2764_v0  ;;  %3735 = vpow2.f32 %v2557_v42  ;;  %v2565_v29 = vmul.f32 1.442695, %v2315_v52 }
 0x3d8   : > { %3737 = vpow2.f32 %v2559_v23  ;;  %v2567_v53 = vmul.f32 1.442695, %v2317_v7 }
 0x3d9   : > { %v3728_v62 = vpop.eup %3727  ;;  %3739 = vpow2.f32 %v2565_v29 }
 0x3da   : > { %v3730_v48 = vpop.eup %3729  ;;  %v2765_v49 = vmul.f32 %v3728_v62, %v5743_v60  ;;  %3741 = vpow2.f32 %v2567_v53  ;;  %v2320_v19 = vpop.f32.mrb[124].mxu1 }
 0x3db   : > { %v3732_v27 = vpop.eup %3731  ;;  %v2766_v58 = vmul.f32 %v3730_v48, %v5745_v2  ;;  %v2321_v57 = vadd.f32 %v2320_v19, %v5153_v41  ;;  %v2322_v56 = vpop.f32.mrb[125].mxu1 }
 0x3dc   : > { %v3734_v11 = vpop.eup %3733  ;;  %2829 = vst [vmem:[%s4724_s12 + $0x350] sm:$0xff] %v2765_v49  ;;  %v2767_v13 = vmul.f32 %v3732_v27, %v5746_v1  ;;  %v2323_v34 = vadd.f32 %v2322_v56, %v5156_v55  ;;  %v2324_v31 = vpop.f32.mrb[126].mxu1 }
 0x3dd   : > { %2830 = vst [vmem:[%s4724_s12 + $0x358] sm:$0xff] %v2766_v58  ;;  %v2768_v20 = vmul.f32 %v3734_v11, %v5747_v47  ;;  %v2573_v17 = vmul.f32 1.442695, %v2321_v57  ;;  %v2325_v39 = vadd.f32 %v2324_v31, %v5153_v41  ;;  %v2326_v8 = vpop.f32.mrb[127].mxu1  ;;  %v5748_v41 = vld [vmem:[#allocation29_spill] sm:$0xff] }
 0x3de   : > { %2831 = vst [vmem:[%s4724_s12 + $0x370] sm:$0xff] %v2767_v13  ;;  %v2575_v61 = vmul.f32 1.442695, %v2323_v34  ;;  %v2327_v59 = vadd.f32 %v2326_v8, %v5156_v55  ;;  %v5749_v25 = vsub.f32 1.0, %v5748_v41  ;;  %v5751_v55 = vsub.f32 1.0, %v5750_v16 }
 0x3df   : > { %2832 = vst [vmem:[%s4724_s12 + $0x378] sm:$0xff] %v2768_v20  ;;  %3743 = vpow2.f32 %v2573_v17  ;;  %v2581_v37 = vmul.f32 1.442695, %v2325_v39 }
 0x3e0   : > { %3745 = vpow2.f32 %v2575_v61  ;;  %v2583_v6 = vmul.f32 1.442695, %v2327_v59 }
 0x3e1   : > { %v3736_v45 = vpop.eup %3735  ;;  %3747 = vpow2.f32 %v2581_v37 }
 0x3e2   : > { %v3738_v15 = vpop.eup %3737  ;;  %v2769_v4 = vmul.f32 %v3736_v45, %v5749_v25  ;;  %3749 = vpow2.f32 %v2583_v6 }
 0x3e3   : > { %v3740_v40 = vpop.eup %3739  ;;  %v2770_v12 = vmul.f32 %v3738_v15, %v5751_v55 }
 0x3e4   : > { %v3742_v26 = vpop.eup %3741  ;;  %2833 = vst [vmem:[%s4724_s12 + $0x390] sm:$0xff] %v2769_v4  ;;  %v2771_v3 = vmul.f32 %v3740_v40, %v5752_v63 }
 0x3e5   : > { %2834 = vst [vmem:[%s4724_s12 + $0x398] sm:$0xff] %v2770_v12  ;;  %v2772_v43 = vmul.f32 %v3742_v26, %v5753_v30 }
 0x3e6   : > { %2835 = vst [vmem:[%s4724_s12 + $0x3b0] sm:$0xff] %v2771_v3 }
 0x3e7   : > { %2836 = vst [vmem:[%s4724_s12 + $0x3b8] sm:$0xff] %v2772_v43 }
 0x3e9   : > { %v3744_v21 = vpop.eup %3743 }
 0x3ea   : > { %v3746_v9 = vpop.eup %3745  ;;  %v2773_v54 = vmul.f32 %v3744_v21, %v5754_v5 }
 0x3eb   : > { %v3748_v50 = vpop.eup %3747  ;;  %v2774_v22 = vmul.f32 %v3746_v9, %v5755_v28 }
 0x3ec   : > { %v3750_v24 = vpop.eup %3749  ;;  %2837 = vst [vmem:[%s4724_s12 + $0x3d0] sm:$0xff] %v2773_v54  ;;  %v2775_v18 = vmul.f32 %v3748_v50, %v529_v46 }
 0x3ed   : > { %2838 = vst [vmem:[%s4724_s12 + $0x3d8] sm:$0xff] %v2774_v22  ;;  %v2776_v38 = vmul.f32 %v3750_v24, %v530_v35 }
 0x3ee   : > { %2839 = vst [vmem:[%s4724_s12 + $0x3f0] sm:$0xff] %v2775_v18 }
 0x3ef   : > { %2840 = vst [vmem:[%s4724_s12 + $0x3f8] sm:$0xff] %v2776_v38 }
 0x3f0   : > { %3931 = shalt.err (!%p3928_p2)
}
 0x3f1   : > { %s3932_s26 = scalar_lea.hbm %s5459_s15, 16384  ;;  %s3936_s12 = scalar_lea.hbm %s5515_s5, 32768 }
 0x3f2   : > { %p3933_p13 = scmp.ne.s32.totalorder %s5459_s15, %s3932_s26  ;;  %p3937_p4 = scmp.lt.u32.totalorder %s5459_s15, %s5515_s5 }
 0x3f3   : > { %p3938_p7 = scmp.lt.u32.totalorder %s3936_s12, %s3932_s26  ;;  %p3940_p11 = scmp.lt.u32.totalorder %s3932_s26, %s5459_s15 }
 0x3f4   : > { %p3934_p6 = pnand %p3933_p13, %p5756_p0 }
 0x3f5   : > { %p3939_p8 = por %p3938_p7, %p3937_p4 }
 0x3f6   : > { %p3935_p10 = pneg %p3934_p6 }
 0x3f7   : > { %p3941_p1 = por %p3940_p11, %p3939_p8 }
 0x3f9   : > { %p3942_p3 = pnand %p3941_p1, %p3935_p10 }
 0x3fb   : > { %3945 = shalt.err (!%p3942_p3)
}
 0x3fc   : > { %s4000_s8 = smov 512   ;;  %s4001_s11 = smov 32  }
 0x3fd   : > { %3238 = dma.vmem_to_hbm [thread:$0]  (%p5756_p0), %s5461_s9, 16384, %s5459_s15, %s2842_s22, %s4000_s8, %s4000_s8, %s4001_s11  }
 0x3fe PF: > { %s2871_s14 = sand.u32 1, %s3976_s18   ;;  %p5757_p5 = scmp.ne.s32.totalorder %s5608_s25, 0 }
 0x3ff   : > { %p5758_p9 = scmp.ge.s32.totalorder %s3988_s21, 2  ;;  %s2872_s23 = scalar_lea.sflag [#allocation4], %s2871_s14 }
 0x401   : > { %p3252_p12 = pnand %p5758_p9, %p5757_p5 }
 0x403   : > { %3971 = dma.done.wait (!%p3252_p12), %s2872_s23, 16384  }
 0x404   : > { %3973 = vsyncadd (!%p3252_p12), %s2872_s23, 4294950912  ;;  %p19_p2 = scmp.ge.s32.totalorder %s4142_s16, 4   ;;  %s5759_s18 = smov %s3980_s19 }
 0x405   : > { %s5760_s19 = smov %s3984_s20  ;;  %s5761_s20 = smov %s4151_s27 }
 0x406   : > { %s5762_s21 = smov %s4142_s16  ;;  %21 = sbr.rel (!%p19_p2) target bundleno = 6 (0x6), region = 93 }
 0x40d   :  { %2877 = vsyncpa [#allocation3], 1 }
 0x40e   :  { %2879 = vsyncpa [#allocation3 + $0x1], 1 }
 0x40f   :  { %2880 = vsyncpa [#allocation6], 1 }
 0x410   :  { %2881 = vsyncpa [#allocation4], 1 }
 0x411   :  { %2883 = vsyncpa [#allocation4 + $0x1], 1 }

</bundles_post_ra>
